<compile_context>
chip_gen: v7x
topology: tpu7x:2x2x1
jax: 0.10.0
libtpu: 0.0.40
codegen_flags: <defaults>
</compile_context>

<pallas_src>
import math

import jax
import jax.numpy as jnp
from jax import lax
from jax.experimental import pallas as pl
from jax.experimental.pallas import tpu as pltpu

HIDDEN = 50          # logical LSTM hidden size
DENSE1 = 25          # logical dense1 width
GP = 128             # lane-aligned per-gate width (HIDDEN padded to 128)
NG = 4               # gates: i, f, g, o (PyTorch order)
DP = 128             # lane-aligned dense width (DENSE1 padded to 128)


def stock_predictor_kernel(x_ref,                       # (TB, S)
                           wih1_ref, whh1_ref, b1_ref,  # (1,4GP) (GP,4GP) (1,4GP)
                           w2_ref, b2_ref,              # (2GP,4GP) (1,4GP)
                           wd1_ref, bd1_ref,            # (GP,DP) (1,DP)
                           wd2_ref, bd2_ref,            # (1,DP) (1,1)
                           out_ref,                     # (TB, 1)
                           gx1_ref):                    # scratch (S, TB, 4GP)
    TB, S = x_ref.shape

    # --- hoisted, fully vectorized layer-1 input projection (+ bias) -------
    # gx1[t] = x[:, t, None] * W_ih1 + (b_ih1 + b_hh1), stored time-major.
    gx1_ref[...] = (jnp.transpose(x_ref[...], (1, 0))[:, :, None]
                    * wih1_ref[...] + b1_ref[...])

    # --- loop-invariant values hoisted out of the recurrence ---------------
    whh1 = whh1_ref[...]                                  # (GP, 4GP)
    w2 = w2_ref[...]                                      # (2GP, 4GP)
    b2b = jnp.broadcast_to(b2_ref[...], (TB, NG * GP))    # broadcast once

    def gates_to_hc(gates, c):
        # PyTorch gate order i, f, g, o; lane-aligned 128-wide slices.
        i = jax.nn.sigmoid(gates[:, 0 * GP:1 * GP])
        f = jax.nn.sigmoid(gates[:, 1 * GP:2 * GP])
        g = jnp.tanh(gates[:, 2 * GP:3 * GP])
        o = jax.nn.sigmoid(gates[:, 3 * GP:4 * GP])
        c_new = f * c + i * g                 # local value, single producer
        h_new = o * jnp.tanh(c_new)           # computed from local c_new
        return h_new, c_new

    def step(t, carry):
        h1, c1, h2, c2 = carry
        # layer 1: hoisted input projection + recurrent matmul
        g1 = gx1_ref[t] + jnp.dot(h1, whh1,
                                  preferred_element_type=jnp.float32)
        h1, c1 = gates_to_hc(g1, c1)
        # layer 2: fused input+recurrent projection [h1, h2] @ [Wih2; Whh2]
        hcat = jnp.concatenate([h1, h2], axis=-1)         # (TB, 2GP)
        g2 = jnp.dot(hcat, w2, preferred_element_type=jnp.float32) + b2b
        h2, c2 = gates_to_hc(g2, c2)
        return (h1, c1, h2, c2)

    zeros = jnp.zeros((TB, GP), jnp.float32)              # PyTorch h0 = c0 = 0
    if S <= 32:
        unroll = True
    else:
        unroll = 4 if S % 4 == 0 else (2 if S % 2 == 0 else 1)
    h1, c1, h2, c2 = lax.fori_loop(0, S, step, (zeros, zeros, zeros, zeros),
                                   unroll=unroll)

    # Dropout(p=0.3) is identity in eval/inference mode.
    d1 = jnp.maximum(
        jnp.dot(h2, wd1_ref[...], preferred_element_type=jnp.float32)
        + bd1_ref[...], 0.0)                              # (TB, DP) zero-padded
    out_ref[...] = (jnp.sum(d1 * wd2_ref[...], axis=-1, keepdims=True)
                    + bd2_ref[...])                       # (TB, 1)


def stock_predictor(x, packed_params, *, batch_tile=None):
    """x: (batch, seq, 1) float32, batch-first like the PyTorch module."""
    B, S, _ = x.shape
    x2 = x[:, :, 0]                                       # (B, S), drop dim-1

    # pad batch to a sublane-friendly multiple and pick a batch tile so that
    # the "parallel" grid axis can be split across TensorCores (v7x megacore).
    Bp = max(8, -(-B // 8) * 8)
    if batch_tile is None:
        batch_tile = Bp if Bp <= 128 else 128
    if Bp % batch_tile != 0:
        Bp = -(-Bp // batch_tile) * batch_tile
    if Bp != B:
        x2 = jnp.pad(x2, ((0, Bp - B), (0, 0)))
    grid = (Bp // batch_tile,)

    def full_spec(a):  # whole weight resident in VMEM, constant block index
        return pl.BlockSpec(a.shape, lambda b, _nd=a.ndim: (0,) * _nd)

    # TODO(synk): for very large S*B (esp. v7x 64 MiB VMEM), chunk the sequence
    # via a second "arbitrary" grid axis with h/c in persistent scratch.
    out = pl.pallas_call(
        stock_predictor_kernel,
        out_shape=jax.ShapeDtypeStruct((Bp, 1), jnp.float32),
        grid_spec=pltpu.PrefetchScalarGridSpec(
            num_scalar_prefetch=0,
            grid=grid,
            in_specs=[pl.BlockSpec((batch_tile, S), lambda b: (b, 0))]
                     + [full_spec(p) for p in packed_params],
            out_specs=pl.BlockSpec((batch_tile, 1), lambda b: (b, 0)),
            scratch_shapes=[pltpu.VMEM((S, batch_tile, NG * GP), jnp.float32)],
        ),
        compiler_params=pltpu.CompilerParams(
            dimension_semantics=("parallel",)),
    )(x2, *packed_params)
    return out[:B]


# ----------------------------- parameters ----------------------------------

def init_params(key):
    """Canonical (unpadded) params mirroring PyTorch default uniform init."""
    ks = jax.random.split(key, 12)
    u = lambda k, shape, b: jax.random.uniform(k, shape, jnp.float32, -b, b)
    bh = 1.0 / math.sqrt(HIDDEN)

    wih1 = u(ks[0], (1, 4 * HIDDEN), bh)
    whh1 = u(ks[1], (HIDDEN, 4 * HIDDEN), bh)
    b1 = u(ks[2], (1, 4 * HIDDEN), bh) + u(ks[3], (1, 4 * HIDDEN), bh)
    wih2 = u(ks[4], (HIDDEN, 4 * HIDDEN), bh)
    whh2 = u(ks[5], (HIDDEN, 4 * HIDDEN), bh)
    b2 = u(ks[6], (1, 4 * HIDDEN), bh) + u(ks[7], (1, 4 * HIDDEN), bh)
    bd = 1.0 / math.sqrt(HIDDEN)
    wd1 = u(ks[8], (HIDDEN, DENSE1), bd)
    bd1 = u(ks[9], (1, DENSE1), bd)
    b2o = 1.0 / math.sqrt(DENSE1)
    wd2 = u(ks[10], (1, DENSE1), b2o)
    bd2 = u(ks[11], (1, 1), b2o)
    return (wih1, whh1, b1, wih2, whh2, b2, wd1, bd1, wd2, bd2)


def pack_params(params):
    """Repack canonical params into the lane-aligned / fused kernel layout."""
    wih1, whh1, b1, wih2, whh2, b2, wd1, bd1, wd2, bd2 = params
    H = HIDDEN

    def pad_gates(w):  # (K, 4H) -> (K, 4*GP), gate k at lane offset k*GP
        out = jnp.zeros((w.shape[0], NG * GP), jnp.float32)
        for k in range(NG):
            out = out.at[:, k * GP:k * GP + H].set(w[:, k * H:(k + 1) * H])
        return out

    def pad_rows(w, rows):
        return jnp.pad(w, ((0, rows - w.shape[0]), (0, 0)))

    wih1_p = pad_gates(wih1)                                  # (1, 4GP)
    whh1_p = pad_rows(pad_gates(whh1), GP)                    # (GP, 4GP)
    b1_p = pad_gates(b1)                                      # (1, 4GP)
    # fused layer-2 weight for [h1 ; h2] @ W2
    w2_p = jnp.concatenate([pad_rows(pad_gates(wih2), GP),
                            pad_rows(pad_gates(whh2), GP)], axis=0)  # (2GP,4GP)
    b2_p = pad_gates(b2)                                      # (1, 4GP)
    wd1_p = jnp.zeros((GP, DP), jnp.float32).at[:H, :DENSE1].set(wd1)
    bd1_p = jnp.zeros((1, DP), jnp.float32).at[:, :DENSE1].set(bd1)
    wd2_p = jnp.zeros((1, DP), jnp.float32).at[:, :DENSE1].set(wd2)
    return (wih1_p, whh1_p, b1_p, w2_p, b2_p, wd1_p, bd1_p, wd2_p, bd2)


# ----------------------------- reference ------------------------------------

def reference(x, params):
    """Pure-JAX reference of the PyTorch forward (dropout in eval mode)."""
    wih1, whh1, b1, wih2, whh2, b2, wd1, bd1, wd2, bd2 = params
    B = x.shape[0]
    H = HIDDEN

    def run_lstm(seq_bf, wih, whh, b):
        def cell(carry, xt):
            h, c = carry
            gates = xt @ wih + h @ whh + b
            i = jax.nn.sigmoid(gates[:, 0 * H:1 * H])
            f = jax.nn.sigmoid(gates[:, 1 * H:2 * H])
            g = jnp.tanh(gates[:, 2 * H:3 * H])
            o = jax.nn.sigmoid(gates[:, 3 * H:4 * H])
            c = f * c + i * g
            h = o * jnp.tanh(c)
            return (h, c), h
        init = (jnp.zeros((B, H), jnp.float32), jnp.zeros((B, H), jnp.float32))
        _, hs = lax.scan(cell, init, jnp.transpose(seq_bf, (1, 0, 2)))
        return jnp.transpose(hs, (1, 0, 2))

    y1 = run_lstm(x, wih1, whh1, b1)
    y2 = run_lstm(y1, wih2, whh2, b2)
    last = y2[:, -1, :]
    d1 = jnp.maximum(last @ wd1 + bd1, 0.0)
    return jnp.sum(d1 * wd2, axis=-1, keepdims=True) + bd2


if __name__ == "__main__":
    key = jax.random.PRNGKey(0)
    pkey, xkey = jax.random.split(key)
    params = init_params(pkey)
    packed = pack_params(params)

    batch, seq = 2, 8
    x = jax.random.normal(xkey, (batch, seq, 1), jnp.float32)

    out = stock_predictor(x, packed)
    jax.block_until_ready(out)

    ref = reference(x, params)
    assert out.shape == (batch, 1), out.shape
    assert jnp.allclose(out, ref, atol=1e-4, rtol=1e-4), (out, ref)
    print("KERNEL_OK")
</pallas_src>

<mosaic_0001>
module attributes {stable_mosaic.version = 11 : i64} {
  func.func @stock_predictor_kernel(%arg0: i32, %arg1: memref<8x8xf32, #tpu.memory_space<vmem>>, %arg2: memref<1x512xf32, #tpu.memory_space<vmem>>, %arg3: memref<128x512xf32, #tpu.memory_space<vmem>>, %arg4: memref<1x512xf32, #tpu.memory_space<vmem>>, %arg5: memref<256x512xf32, #tpu.memory_space<vmem>>, %arg6: memref<1x512xf32, #tpu.memory_space<vmem>>, %arg7: memref<128x128xf32, #tpu.memory_space<vmem>>, %arg8: memref<1x128xf32, #tpu.memory_space<vmem>>, %arg9: memref<1x128xf32, #tpu.memory_space<vmem>>, %arg10: memref<1x1xf32, #tpu.memory_space<vmem>>, %arg11: memref<8x1xf32, #tpu.memory_space<vmem>>, %arg12: memref<8x8x512xf32, #tpu.memory_space<vmem>>) attributes {dimension_semantics = [#tpu.dimension_semantics<parallel>], iteration_bounds = array<i64: 1>, scalar_prefetch = 0 : i64, scratch_operands = 1 : i64, tpu.core_type = #tpu.core_type<tc>, window_params = [{transform_indices = @transform_0, window_bounds = array<i64: 8, 8>}, {pipeline_mode = #tpu.pipeline_mode<synchronous>, transform_indices = @transform_1, window_bounds = array<i64: 1, 512>}, {pipeline_mode = #tpu.pipeline_mode<synchronous>, transform_indices = @transform_2, window_bounds = array<i64: 128, 512>}, {pipeline_mode = #tpu.pipeline_mode<synchronous>, transform_indices = @transform_3, window_bounds = array<i64: 1, 512>}, {pipeline_mode = #tpu.pipeline_mode<synchronous>, transform_indices = @transform_4, window_bounds = array<i64: 256, 512>}, {pipeline_mode = #tpu.pipeline_mode<synchronous>, transform_indices = @transform_5, window_bounds = array<i64: 1, 512>}, {pipeline_mode = #tpu.pipeline_mode<synchronous>, transform_indices = @transform_6, window_bounds = array<i64: 128, 128>}, {pipeline_mode = #tpu.pipeline_mode<synchronous>, transform_indices = @transform_7, window_bounds = array<i64: 1, 128>}, {pipeline_mode = #tpu.pipeline_mode<synchronous>, transform_indices = @transform_8, window_bounds = array<i64: 1, 128>}, {pipeline_mode = #tpu.pipeline_mode<synchronous>, transform_indices = @transform_9, window_bounds = array<i64: 1, 1>}, {transform_indices = @transform_10, window_bounds = array<i64: 8, 1>}]} {
    %c0 = arith.constant 0 : index
    %c0_0 = arith.constant 0 : index
    %0 = vector.load %arg1[%c0, %c0_0] : memref<8x8xf32, #tpu.memory_space<vmem>>, vector<8x8xf32>
    %1 = tpu.transpose %0, [1, 0] : vector<8x8xf32> -> vector<8x8xf32>
    %2 = vector.shape_cast %1 : vector<8x8xf32> to vector<8x8x1xf32>
    %c0_1 = arith.constant 0 : index
    %c0_2 = arith.constant 0 : index
    %3 = vector.load %arg2[%c0_1, %c0_2] : memref<1x512xf32, #tpu.memory_space<vmem>>, vector<1x512xf32>
    %4 = vector.shape_cast %3 : vector<1x512xf32> to vector<1x1x512xf32>
    %5 = vector.broadcast %2 : vector<8x8x1xf32> to vector<8x8x512xf32>
    %6 = vector.broadcast %4 : vector<1x1x512xf32> to vector<8x8x512xf32>
    %7 = arith.mulf %5, %6 : vector<8x8x512xf32>
    %c0_3 = arith.constant 0 : index
    %c0_4 = arith.constant 0 : index
    %8 = vector.load %arg4[%c0_3, %c0_4] : memref<1x512xf32, #tpu.memory_space<vmem>>, vector<1x512xf32>
    %9 = vector.shape_cast %8 : vector<1x512xf32> to vector<1x1x512xf32>
    %10 = vector.broadcast %9 : vector<1x1x512xf32> to vector<8x8x512xf32>
    %11 = arith.addf %7, %10 : vector<8x8x512xf32>
    %c0_5 = arith.constant 0 : index
    %c0_6 = arith.constant 0 : index
    %c0_7 = arith.constant 0 : index
    %12 = vector.load %arg12[%c0_5, %c0_6, %c0_7] : memref<8x8x512xf32, #tpu.memory_space<vmem>>, vector<8x8x512xf32>
    tpu.vector_store %arg12[%c0_5, %c0_6, %c0_7], %11 {strides = array<i32>} : memref<8x8x512xf32, #tpu.memory_space<vmem>>, vector<8x8x512xf32>,
    %c0_8 = arith.constant 0 : index
    %c0_9 = arith.constant 0 : index
    %13 = vector.load %arg3[%c0_8, %c0_9] : memref<128x512xf32, #tpu.memory_space<vmem>>, vector<128x512xf32>
    %c0_10 = arith.constant 0 : index
    %c0_11 = arith.constant 0 : index
    %14 = vector.load %arg5[%c0_10, %c0_11] : memref<256x512xf32, #tpu.memory_space<vmem>>, vector<256x512xf32>
    %c0_12 = arith.constant 0 : index
    %c0_13 = arith.constant 0 : index
    %15 = vector.load %arg6[%c0_12, %c0_13] : memref<1x512xf32, #tpu.memory_space<vmem>>, vector<1x512xf32>
    %16 = vector.shape_cast %15 : vector<1x512xf32> to vector<1x512xf32>
    %17 = vector.broadcast %16 : vector<1x512xf32> to vector<8x512xf32>
    %cst = arith.constant 0.000000e+00 : f32
    %18 = vector.broadcast %cst : f32 to vector<8x128xf32>
    %c0_i32 = arith.constant 0 : i32
    %19 = arith.index_cast %c0_i32 : i32 to index
    %c0_14 = arith.constant 0 : index
    %c0_15 = arith.constant 0 : index
    %20 = vector.load %arg12[%19, %c0_14, %c0_15] : memref<8x8x512xf32, #tpu.memory_space<vmem>>, vector<1x8x512xf32>
    %21 = vector.shape_cast %20 : vector<1x8x512xf32> to vector<8x512xf32>
    %cst_16 = arith.constant dense<0.000000e+00> : vector<8x512xf32>
    %22 = tpu.matmul %18, %13, %cst_16 {dimension_numbers = #tpu.dot_dimension_numbers<[1], [0], [0], [1], [0, 0, 1, 1], [], []>} : vector<8x128xf32>, vector<128x512xf32>, vector<8x512xf32> -> vector<8x512xf32>
    %23 = arith.addf %21, %22 : vector<8x512xf32>
    %24 = vector.extract_strided_slice %23 {offsets = [0, 0], sizes = [8, 128], strides = [1, 1]} : vector<8x512xf32> to vector<8x128xf32>
    %25 = arith.negf %24 : vector<8x128xf32>
    %26 = math.exp %25 : vector<8x128xf32>
    %cst_17 = arith.constant 1.000000e+00 : f32
    %27 = vector.broadcast %cst_17 : f32 to vector<8x128xf32>
    %28 = arith.addf %27, %26 : vector<8x128xf32>
    %29 = arith.divf %27, %28 : vector<8x128xf32>
    %30 = vector.extract_strided_slice %23 {offsets = [0, 128], sizes = [8, 128], strides = [1, 1]} : vector<8x512xf32> to vector<8x128xf32>
    %31 = arith.negf %30 : vector<8x128xf32>
    %32 = math.exp %31 : vector<8x128xf32>
    %cst_18 = arith.constant 1.000000e+00 : f32
    %33 = vector.broadcast %cst_18 : f32 to vector<8x128xf32>
    %34 = arith.addf %33, %32 : vector<8x128xf32>
    %35 = arith.divf %33, %34 : vector<8x128xf32>
    %36 = vector.extract_strided_slice %23 {offsets = [0, 256], sizes = [8, 128], strides = [1, 1]} : vector<8x512xf32> to vector<8x128xf32>
    %37 = math.tanh %36 : vector<8x128xf32>
    %38 = vector.extract_strided_slice %23 {offsets = [0, 384], sizes = [8, 128], strides = [1, 1]} : vector<8x512xf32> to vector<8x128xf32>
    %39 = arith.negf %38 : vector<8x128xf32>
    %40 = math.exp %39 : vector<8x128xf32>
    %cst_19 = arith.constant 1.000000e+00 : f32
    %41 = vector.broadcast %cst_19 : f32 to vector<8x128xf32>
    %42 = arith.addf %41, %40 : vector<8x128xf32>
    %43 = arith.divf %41, %42 : vector<8x128xf32>
    %44 = arith.mulf %35, %18 : vector<8x128xf32>
    %45 = arith.mulf %29, %37 : vector<8x128xf32>
    %46 = arith.addf %44, %45 : vector<8x128xf32>
    %47 = math.tanh %46 : vector<8x128xf32>
    %48 = arith.mulf %43, %47 : vector<8x128xf32>
    %49 = tpu.concatenate %48, %18 in 1 : vector<8x128xf32>, vector<8x128xf32> -> vector<8x256xf32>
    %cst_20 = arith.constant dense<0.000000e+00> : vector<8x512xf32>
    %50 = tpu.matmul %49, %14, %cst_20 {dimension_numbers = #tpu.dot_dimension_numbers<[1], [0], [0], [1], [0, 0, 1, 1], [], []>} : vector<8x256xf32>, vector<256x512xf32>, vector<8x512xf32> -> vector<8x512xf32>
    %51 = arith.addf %50, %17 : vector<8x512xf32>
    %52 = vector.extract_strided_slice %51 {offsets = [0, 0], sizes = [8, 128], strides = [1, 1]} : vector<8x512xf32> to vector<8x128xf32>
    %53 = arith.negf %52 : vector<8x128xf32>
    %54 = math.exp %53 : vector<8x128xf32>
    %cst_21 = arith.constant 1.000000e+00 : f32
    %55 = vector.broadcast %cst_21 : f32 to vector<8x128xf32>
    %56 = arith.addf %55, %54 : vector<8x128xf32>
    %57 = arith.divf %55, %56 : vector<8x128xf32>
    %58 = vector.extract_strided_slice %51 {offsets = [0, 128], sizes = [8, 128], strides = [1, 1]} : vector<8x512xf32> to vector<8x128xf32>
    %59 = arith.negf %58 : vector<8x128xf32>
    %60 = math.exp %59 : vector<8x128xf32>
    %cst_22 = arith.constant 1.000000e+00 : f32
    %61 = vector.broadcast %cst_22 : f32 to vector<8x128xf32>
    %62 = arith.addf %61, %60 : vector<8x128xf32>
    %63 = arith.divf %61, %62 : vector<8x128xf32>
    %64 = vector.extract_strided_slice %51 {offsets = [0, 256], sizes = [8, 128], strides = [1, 1]} : vector<8x512xf32> to vector<8x128xf32>
    %65 = math.tanh %64 : vector<8x128xf32>
    %66 = vector.extract_strided_slice %51 {offsets = [0, 384], sizes = [8, 128], strides = [1, 1]} : vector<8x512xf32> to vector<8x128xf32>
    %67 = arith.negf %66 : vector<8x128xf32>
    %68 = math.exp %67 : vector<8x128xf32>
    %cst_23 = arith.constant 1.000000e+00 : f32
    %69 = vector.broadcast %cst_23 : f32 to vector<8x128xf32>
    %70 = arith.addf %69, %68 : vector<8x128xf32>
    %71 = arith.divf %69, %70 : vector<8x128xf32>
    %72 = arith.mulf %63, %18 : vector<8x128xf32>
    %73 = arith.mulf %57, %65 : vector<8x128xf32>
    %74 = arith.addf %72, %73 : vector<8x128xf32>
    %75 = math.tanh %74 : vector<8x128xf32>
    %76 = arith.mulf %71, %75 : vector<8x128xf32>
    %c1_i32 = arith.constant 1 : i32
    %77 = arith.index_cast %c1_i32 : i32 to index
    %c0_24 = arith.constant 0 : index
    %c0_25 = arith.constant 0 : index
    %78 = vector.load %arg12[%77, %c0_24, %c0_25] : memref<8x8x512xf32, #tpu.memory_space<vmem>>, vector<1x8x512xf32>
    %79 = vector.shape_cast %78 : vector<1x8x512xf32> to vector<8x512xf32>
    %cst_26 = arith.constant dense<0.000000e+00> : vector<8x512xf32>
    %80 = tpu.matmul %48, %13, %cst_26 {dimension_numbers = #tpu.dot_dimension_numbers<[1], [0], [0], [1], [0, 0, 1, 1], [], []>} : vector<8x128xf32>, vector<128x512xf32>, vector<8x512xf32> -> vector<8x512xf32>
    %81 = arith.addf %79, %80 : vector<8x512xf32>
    %82 = vector.extract_strided_slice %81 {offsets = [0, 0], sizes = [8, 128], strides = [1, 1]} : vector<8x512xf32> to vector<8x128xf32>
    %83 = arith.negf %82 : vector<8x128xf32>
    %84 = math.exp %83 : vector<8x128xf32>
    %cst_27 = arith.constant 1.000000e+00 : f32
    %85 = vector.broadcast %cst_27 : f32 to vector<8x128xf32>
    %86 = arith.addf %85, %84 : vector<8x128xf32>
    %87 = arith.divf %85, %86 : vector<8x128xf32>
    %88 = vector.extract_strided_slice %81 {offsets = [0, 128], sizes = [8, 128], strides = [1, 1]} : vector<8x512xf32> to vector<8x128xf32>
    %89 = arith.negf %88 : vector<8x128xf32>
    %90 = math.exp %89 : vector<8x128xf32>
    %cst_28 = arith.constant 1.000000e+00 : f32
    %91 = vector.broadcast %cst_28 : f32 to vector<8x128xf32>
    %92 = arith.addf %91, %90 : vector<8x128xf32>
    %93 = arith.divf %91, %92 : vector<8x128xf32>
    %94 = vector.extract_strided_slice %81 {offsets = [0, 256], sizes = [8, 128], strides = [1, 1]} : vector<8x512xf32> to vector<8x128xf32>
    %95 = math.tanh %94 : vector<8x128xf32>
    %96 = vector.extract_strided_slice %81 {offsets = [0, 384], sizes = [8, 128], strides = [1, 1]} : vector<8x512xf32> to vector<8x128xf32>
    %97 = arith.negf %96 : vector<8x128xf32>
    %98 = math.exp %97 : vector<8x128xf32>
    %cst_29 = arith.constant 1.000000e+00 : f32
    %99 = vector.broadcast %cst_29 : f32 to vector<8x128xf32>
    %100 = arith.addf %99, %98 : vector<8x128xf32>
    %101 = arith.divf %99, %100 : vector<8x128xf32>
    %102 = arith.mulf %93, %46 : vector<8x128xf32>
    %103 = arith.mulf %87, %95 : vector<8x128xf32>
    %104 = arith.addf %102, %103 : vector<8x128xf32>
    %105 = math.tanh %104 : vector<8x128xf32>
    %106 = arith.mulf %101, %105 : vector<8x128xf32>
    %107 = tpu.concatenate %106, %76 in 1 : vector<8x128xf32>, vector<8x128xf32> -> vector<8x256xf32>
    %cst_30 = arith.constant dense<0.000000e+00> : vector<8x512xf32>
    %108 = tpu.matmul %107, %14, %cst_30 {dimension_numbers = #tpu.dot_dimension_numbers<[1], [0], [0], [1], [0, 0, 1, 1], [], []>} : vector<8x256xf32>, vector<256x512xf32>, vector<8x512xf32> -> vector<8x512xf32>
    %109 = arith.addf %108, %17 : vector<8x512xf32>
    %110 = vector.extract_strided_slice %109 {offsets = [0, 0], sizes = [8, 128], strides = [1, 1]} : vector<8x512xf32> to vector<8x128xf32>
    %111 = arith.negf %110 : vector<8x128xf32>
    %112 = math.exp %111 : vector<8x128xf32>
    %cst_31 = arith.constant 1.000000e+00 : f32
    %113 = vector.broadcast %cst_31 : f32 to vector<8x128xf32>
    %114 = arith.addf %113, %112 : vector<8x128xf32>
    %115 = arith.divf %113, %114 : vector<8x128xf32>
    %116 = vector.extract_strided_slice %109 {offsets = [0, 128], sizes = [8, 128], strides = [1, 1]} : vector<8x512xf32> to vector<8x128xf32>
    %117 = arith.negf %116 : vector<8x128xf32>
    %118 = math.exp %117 : vector<8x128xf32>
    %cst_32 = arith.constant 1.000000e+00 : f32
    %119 = vector.broadcast %cst_32 : f32 to vector<8x128xf32>
    %120 = arith.addf %119, %118 : vector<8x128xf32>
    %121 = arith.divf %119, %120 : vector<8x128xf32>
    %122 = vector.extract_strided_slice %109 {offsets = [0, 256], sizes = [8, 128], strides = [1, 1]} : vector<8x512xf32> to vector<8x128xf32>
    %123 = math.tanh %122 : vector<8x128xf32>
    %124 = vector.extract_strided_slice %109 {offsets = [0, 384], sizes = [8, 128], strides = [1, 1]} : vector<8x512xf32> to vector<8x128xf32>
    %125 = arith.negf %124 : vector<8x128xf32>
    %126 = math.exp %125 : vector<8x128xf32>
    %cst_33 = arith.constant 1.000000e+00 : f32
    %127 = vector.broadcast %cst_33 : f32 to vector<8x128xf32>
    %128 = arith.addf %127, %126 : vector<8x128xf32>
    %129 = arith.divf %127, %128 : vector<8x128xf32>
    %130 = arith.mulf %121, %74 : vector<8x128xf32>
    %131 = arith.mulf %115, %123 : vector<8x128xf32>
    %132 = arith.addf %130, %131 : vector<8x128xf32>
    %133 = math.tanh %132 : vector<8x128xf32>
    %134 = arith.mulf %129, %133 : vector<8x128xf32>
    %c2_i32 = arith.constant 2 : i32
    %135 = arith.index_cast %c2_i32 : i32 to index
    %c0_34 = arith.constant 0 : index
    %c0_35 = arith.constant 0 : index
    %136 = vector.load %arg12[%135, %c0_34, %c0_35] : memref<8x8x512xf32, #tpu.memory_space<vmem>>, vector<1x8x512xf32>
    %137 = vector.shape_cast %136 : vector<1x8x512xf32> to vector<8x512xf32>
    %cst_36 = arith.constant dense<0.000000e+00> : vector<8x512xf32>
    %138 = tpu.matmul %106, %13, %cst_36 {dimension_numbers = #tpu.dot_dimension_numbers<[1], [0], [0], [1], [0, 0, 1, 1], [], []>} : vector<8x128xf32>, vector<128x512xf32>, vector<8x512xf32> -> vector<8x512xf32>
    %139 = arith.addf %137, %138 : vector<8x512xf32>
    %140 = vector.extract_strided_slice %139 {offsets = [0, 0], sizes = [8, 128], strides = [1, 1]} : vector<8x512xf32> to vector<8x128xf32>
    %141 = arith.negf %140 : vector<8x128xf32>
    %142 = math.exp %141 : vector<8x128xf32>
    %cst_37 = arith.constant 1.000000e+00 : f32
    %143 = vector.broadcast %cst_37 : f32 to vector<8x128xf32>
    %144 = arith.addf %143, %142 : vector<8x128xf32>
    %145 = arith.divf %143, %144 : vector<8x128xf32>
    %146 = vector.extract_strided_slice %139 {offsets = [0, 128], sizes = [8, 128], strides = [1, 1]} : vector<8x512xf32> to vector<8x128xf32>
    %147 = arith.negf %146 : vector<8x128xf32>
    %148 = math.exp %147 : vector<8x128xf32>
    %cst_38 = arith.constant 1.000000e+00 : f32
    %149 = vector.broadcast %cst_38 : f32 to vector<8x128xf32>
    %150 = arith.addf %149, %148 : vector<8x128xf32>
    %151 = arith.divf %149, %150 : vector<8x128xf32>
    %152 = vector.extract_strided_slice %139 {offsets = [0, 256], sizes = [8, 128], strides = [1, 1]} : vector<8x512xf32> to vector<8x128xf32>
    %153 = math.tanh %152 : vector<8x128xf32>
    %154 = vector.extract_strided_slice %139 {offsets = [0, 384], sizes = [8, 128], strides = [1, 1]} : vector<8x512xf32> to vector<8x128xf32>
    %155 = arith.negf %154 : vector<8x128xf32>
    %156 = math.exp %155 : vector<8x128xf32>
    %cst_39 = arith.constant 1.000000e+00 : f32
    %157 = vector.broadcast %cst_39 : f32 to vector<8x128xf32>
    %158 = arith.addf %157, %156 : vector<8x128xf32>
    %159 = arith.divf %157, %158 : vector<8x128xf32>
    %160 = arith.mulf %151, %104 : vector<8x128xf32>
    %161 = arith.mulf %145, %153 : vector<8x128xf32>
    %162 = arith.addf %160, %161 : vector<8x128xf32>
    %163 = math.tanh %162 : vector<8x128xf32>
    %164 = arith.mulf %159, %163 : vector<8x128xf32>
    %165 = tpu.concatenate %164, %134 in 1 : vector<8x128xf32>, vector<8x128xf32> -> vector<8x256xf32>
    %cst_40 = arith.constant dense<0.000000e+00> : vector<8x512xf32>
    %166 = tpu.matmul %165, %14, %cst_40 {dimension_numbers = #tpu.dot_dimension_numbers<[1], [0], [0], [1], [0, 0, 1, 1], [], []>} : vector<8x256xf32>, vector<256x512xf32>, vector<8x512xf32> -> vector<8x512xf32>
    %167 = arith.addf %166, %17 : vector<8x512xf32>
    %168 = vector.extract_strided_slice %167 {offsets = [0, 0], sizes = [8, 128], strides = [1, 1]} : vector<8x512xf32> to vector<8x128xf32>
    %169 = arith.negf %168 : vector<8x128xf32>
    %170 = math.exp %169 : vector<8x128xf32>
    %cst_41 = arith.constant 1.000000e+00 : f32
    %171 = vector.broadcast %cst_41 : f32 to vector<8x128xf32>
    %172 = arith.addf %171, %170 : vector<8x128xf32>
    %173 = arith.divf %171, %172 : vector<8x128xf32>
    %174 = vector.extract_strided_slice %167 {offsets = [0, 128], sizes = [8, 128], strides = [1, 1]} : vector<8x512xf32> to vector<8x128xf32>
    %175 = arith.negf %174 : vector<8x128xf32>
    %176 = math.exp %175 : vector<8x128xf32>
    %cst_42 = arith.constant 1.000000e+00 : f32
    %177 = vector.broadcast %cst_42 : f32 to vector<8x128xf32>
    %178 = arith.addf %177, %176 : vector<8x128xf32>
    %179 = arith.divf %177, %178 : vector<8x128xf32>
    %180 = vector.extract_strided_slice %167 {offsets = [0, 256], sizes = [8, 128], strides = [1, 1]} : vector<8x512xf32> to vector<8x128xf32>
    %181 = math.tanh %180 : vector<8x128xf32>
    %182 = vector.extract_strided_slice %167 {offsets = [0, 384], sizes = [8, 128], strides = [1, 1]} : vector<8x512xf32> to vector<8x128xf32>
    %183 = arith.negf %182 : vector<8x128xf32>
    %184 = math.exp %183 : vector<8x128xf32>
    %cst_43 = arith.constant 1.000000e+00 : f32
    %185 = vector.broadcast %cst_43 : f32 to vector<8x128xf32>
    %186 = arith.addf %185, %184 : vector<8x128xf32>
    %187 = arith.divf %185, %186 : vector<8x128xf32>
    %188 = arith.mulf %179, %132 : vector<8x128xf32>
    %189 = arith.mulf %173, %181 : vector<8x128xf32>
    %190 = arith.addf %188, %189 : vector<8x128xf32>
    %191 = math.tanh %190 : vector<8x128xf32>
    %192 = arith.mulf %187, %191 : vector<8x128xf32>
    %c3_i32 = arith.constant 3 : i32
    %193 = arith.index_cast %c3_i32 : i32 to index
    %c0_44 = arith.constant 0 : index
    %c0_45 = arith.constant 0 : index
    %194 = vector.load %arg12[%193, %c0_44, %c0_45] : memref<8x8x512xf32, #tpu.memory_space<vmem>>, vector<1x8x512xf32>
    %195 = vector.shape_cast %194 : vector<1x8x512xf32> to vector<8x512xf32>
    %cst_46 = arith.constant dense<0.000000e+00> : vector<8x512xf32>
    %196 = tpu.matmul %164, %13, %cst_46 {dimension_numbers = #tpu.dot_dimension_numbers<[1], [0], [0], [1], [0, 0, 1, 1], [], []>} : vector<8x128xf32>, vector<128x512xf32>, vector<8x512xf32> -> vector<8x512xf32>
    %197 = arith.addf %195, %196 : vector<8x512xf32>
    %198 = vector.extract_strided_slice %197 {offsets = [0, 0], sizes = [8, 128], strides = [1, 1]} : vector<8x512xf32> to vector<8x128xf32>
    %199 = arith.negf %198 : vector<8x128xf32>
    %200 = math.exp %199 : vector<8x128xf32>
    %cst_47 = arith.constant 1.000000e+00 : f32
    %201 = vector.broadcast %cst_47 : f32 to vector<8x128xf32>
    %202 = arith.addf %201, %200 : vector<8x128xf32>
    %203 = arith.divf %201, %202 : vector<8x128xf32>
    %204 = vector.extract_strided_slice %197 {offsets = [0, 128], sizes = [8, 128], strides = [1, 1]} : vector<8x512xf32> to vector<8x128xf32>
    %205 = arith.negf %204 : vector<8x128xf32>
    %206 = math.exp %205 : vector<8x128xf32>
    %cst_48 = arith.constant 1.000000e+00 : f32
    %207 = vector.broadcast %cst_48 : f32 to vector<8x128xf32>
    %208 = arith.addf %207, %206 : vector<8x128xf32>
    %209 = arith.divf %207, %208 : vector<8x128xf32>
    %210 = vector.extract_strided_slice %197 {offsets = [0, 256], sizes = [8, 128], strides = [1, 1]} : vector<8x512xf32> to vector<8x128xf32>
    %211 = math.tanh %210 : vector<8x128xf32>
    %212 = vector.extract_strided_slice %197 {offsets = [0, 384], sizes = [8, 128], strides = [1, 1]} : vector<8x512xf32> to vector<8x128xf32>
    %213 = arith.negf %212 : vector<8x128xf32>
    %214 = math.exp %213 : vector<8x128xf32>
    %cst_49 = arith.constant 1.000000e+00 : f32
    %215 = vector.broadcast %cst_49 : f32 to vector<8x128xf32>
    %216 = arith.addf %215, %214 : vector<8x128xf32>
    %217 = arith.divf %215, %216 : vector<8x128xf32>
    %218 = arith.mulf %209, %162 : vector<8x128xf32>
    %219 = arith.mulf %203, %211 : vector<8x128xf32>
    %220 = arith.addf %218, %219 : vector<8x128xf32>
    %221 = math.tanh %220 : vector<8x128xf32>
    %222 = arith.mulf %217, %221 : vector<8x128xf32>
    %223 = tpu.concatenate %222, %192 in 1 : vector<8x128xf32>, vector<8x128xf32> -> vector<8x256xf32>
    %cst_50 = arith.constant dense<0.000000e+00> : vector<8x512xf32>
    %224 = tpu.matmul %223, %14, %cst_50 {dimension_numbers = #tpu.dot_dimension_numbers<[1], [0], [0], [1], [0, 0, 1, 1], [], []>} : vector<8x256xf32>, vector<256x512xf32>, vector<8x512xf32> -> vector<8x512xf32>
    %225 = arith.addf %224, %17 : vector<8x512xf32>
    %226 = vector.extract_strided_slice %225 {offsets = [0, 0], sizes = [8, 128], strides = [1, 1]} : vector<8x512xf32> to vector<8x128xf32>
    %227 = arith.negf %226 : vector<8x128xf32>
    %228 = math.exp %227 : vector<8x128xf32>
    %cst_51 = arith.constant 1.000000e+00 : f32
    %229 = vector.broadcast %cst_51 : f32 to vector<8x128xf32>
    %230 = arith.addf %229, %228 : vector<8x128xf32>
    %231 = arith.divf %229, %230 : vector<8x128xf32>
    %232 = vector.extract_strided_slice %225 {offsets = [0, 128], sizes = [8, 128], strides = [1, 1]} : vector<8x512xf32> to vector<8x128xf32>
    %233 = arith.negf %232 : vector<8x128xf32>
    %234 = math.exp %233 : vector<8x128xf32>
    %cst_52 = arith.constant 1.000000e+00 : f32
    %235 = vector.broadcast %cst_52 : f32 to vector<8x128xf32>
    %236 = arith.addf %235, %234 : vector<8x128xf32>
    %237 = arith.divf %235, %236 : vector<8x128xf32>
    %238 = vector.extract_strided_slice %225 {offsets = [0, 256], sizes = [8, 128], strides = [1, 1]} : vector<8x512xf32> to vector<8x128xf32>
    %239 = math.tanh %238 : vector<8x128xf32>
    %240 = vector.extract_strided_slice %225 {offsets = [0, 384], sizes = [8, 128], strides = [1, 1]} : vector<8x512xf32> to vector<8x128xf32>
    %241 = arith.negf %240 : vector<8x128xf32>
    %242 = math.exp %241 : vector<8x128xf32>
    %cst_53 = arith.constant 1.000000e+00 : f32
    %243 = vector.broadcast %cst_53 : f32 to vector<8x128xf32>
    %244 = arith.addf %243, %242 : vector<8x128xf32>
    %245 = arith.divf %243, %244 : vector<8x128xf32>
    %246 = arith.mulf %237, %190 : vector<8x128xf32>
    %247 = arith.mulf %231, %239 : vector<8x128xf32>
    %248 = arith.addf %246, %247 : vector<8x128xf32>
    %249 = math.tanh %248 : vector<8x128xf32>
    %250 = arith.mulf %245, %249 : vector<8x128xf32>
    %c4_i32 = arith.constant 4 : i32
    %251 = arith.index_cast %c4_i32 : i32 to index
    %c0_54 = arith.constant 0 : index
    %c0_55 = arith.constant 0 : index
    %252 = vector.load %arg12[%251, %c0_54, %c0_55] : memref<8x8x512xf32, #tpu.memory_space<vmem>>, vector<1x8x512xf32>
    %253 = vector.shape_cast %252 : vector<1x8x512xf32> to vector<8x512xf32>
    %cst_56 = arith.constant dense<0.000000e+00> : vector<8x512xf32>
    %254 = tpu.matmul %222, %13, %cst_56 {dimension_numbers = #tpu.dot_dimension_numbers<[1], [0], [0], [1], [0, 0, 1, 1], [], []>} : vector<8x128xf32>, vector<128x512xf32>, vector<8x512xf32> -> vector<8x512xf32>
    %255 = arith.addf %253, %254 : vector<8x512xf32>
    %256 = vector.extract_strided_slice %255 {offsets = [0, 0], sizes = [8, 128], strides = [1, 1]} : vector<8x512xf32> to vector<8x128xf32>
    %257 = arith.negf %256 : vector<8x128xf32>
    %258 = math.exp %257 : vector<8x128xf32>
    %cst_57 = arith.constant 1.000000e+00 : f32
    %259 = vector.broadcast %cst_57 : f32 to vector<8x128xf32>
    %260 = arith.addf %259, %258 : vector<8x128xf32>
    %261 = arith.divf %259, %260 : vector<8x128xf32>
    %262 = vector.extract_strided_slice %255 {offsets = [0, 128], sizes = [8, 128], strides = [1, 1]} : vector<8x512xf32> to vector<8x128xf32>
    %263 = arith.negf %262 : vector<8x128xf32>
    %264 = math.exp %263 : vector<8x128xf32>
    %cst_58 = arith.constant 1.000000e+00 : f32
    %265 = vector.broadcast %cst_58 : f32 to vector<8x128xf32>
    %266 = arith.addf %265, %264 : vector<8x128xf32>
    %267 = arith.divf %265, %266 : vector<8x128xf32>
    %268 = vector.extract_strided_slice %255 {offsets = [0, 256], sizes = [8, 128], strides = [1, 1]} : vector<8x512xf32> to vector<8x128xf32>
    %269 = math.tanh %268 : vector<8x128xf32>
    %270 = vector.extract_strided_slice %255 {offsets = [0, 384], sizes = [8, 128], strides = [1, 1]} : vector<8x512xf32> to vector<8x128xf32>
    %271 = arith.negf %270 : vector<8x128xf32>
    %272 = math.exp %271 : vector<8x128xf32>
    %cst_59 = arith.constant 1.000000e+00 : f32
    %273 = vector.broadcast %cst_59 : f32 to vector<8x128xf32>
    %274 = arith.addf %273, %272 : vector<8x128xf32>
    %275 = arith.divf %273, %274 : vector<8x128xf32>
    %276 = arith.mulf %267, %220 : vector<8x128xf32>
    %277 = arith.mulf %261, %269 : vector<8x128xf32>
    %278 = arith.addf %276, %277 : vector<8x128xf32>
    %279 = math.tanh %278 : vector<8x128xf32>
    %280 = arith.mulf %275, %279 : vector<8x128xf32>
    %281 = tpu.concatenate %280, %250 in 1 : vector<8x128xf32>, vector<8x128xf32> -> vector<8x256xf32>
    %cst_60 = arith.constant dense<0.000000e+00> : vector<8x512xf32>
    %282 = tpu.matmul %281, %14, %cst_60 {dimension_numbers = #tpu.dot_dimension_numbers<[1], [0], [0], [1], [0, 0, 1, 1], [], []>} : vector<8x256xf32>, vector<256x512xf32>, vector<8x512xf32> -> vector<8x512xf32>
    %283 = arith.addf %282, %17 : vector<8x512xf32>
    %284 = vector.extract_strided_slice %283 {offsets = [0, 0], sizes = [8, 128], strides = [1, 1]} : vector<8x512xf32> to vector<8x128xf32>
    %285 = arith.negf %284 : vector<8x128xf32>
    %286 = math.exp %285 : vector<8x128xf32>
    %cst_61 = arith.constant 1.000000e+00 : f32
    %287 = vector.broadcast %cst_61 : f32 to vector<8x128xf32>
    %288 = arith.addf %287, %286 : vector<8x128xf32>
    %289 = arith.divf %287, %288 : vector<8x128xf32>
    %290 = vector.extract_strided_slice %283 {offsets = [0, 128], sizes = [8, 128], strides = [1, 1]} : vector<8x512xf32> to vector<8x128xf32>
    %291 = arith.negf %290 : vector<8x128xf32>
    %292 = math.exp %291 : vector<8x128xf32>
    %cst_62 = arith.constant 1.000000e+00 : f32
    %293 = vector.broadcast %cst_62 : f32 to vector<8x128xf32>
    %294 = arith.addf %293, %292 : vector<8x128xf32>
    %295 = arith.divf %293, %294 : vector<8x128xf32>
    %296 = vector.extract_strided_slice %283 {offsets = [0, 256], sizes = [8, 128], strides = [1, 1]} : vector<8x512xf32> to vector<8x128xf32>
    %297 = math.tanh %296 : vector<8x128xf32>
    %298 = vector.extract_strided_slice %283 {offsets = [0, 384], sizes = [8, 128], strides = [1, 1]} : vector<8x512xf32> to vector<8x128xf32>
    %299 = arith.negf %298 : vector<8x128xf32>
    %300 = math.exp %299 : vector<8x128xf32>
    %cst_63 = arith.constant 1.000000e+00 : f32
    %301 = vector.broadcast %cst_63 : f32 to vector<8x128xf32>
    %302 = arith.addf %301, %300 : vector<8x128xf32>
    %303 = arith.divf %301, %302 : vector<8x128xf32>
    %304 = arith.mulf %295, %248 : vector<8x128xf32>
    %305 = arith.mulf %289, %297 : vector<8x128xf32>
    %306 = arith.addf %304, %305 : vector<8x128xf32>
    %307 = math.tanh %306 : vector<8x128xf32>
    %308 = arith.mulf %303, %307 : vector<8x128xf32>
    %c5_i32 = arith.constant 5 : i32
    %309 = arith.index_cast %c5_i32 : i32 to index
    %c0_64 = arith.constant 0 : index
    %c0_65 = arith.constant 0 : index
    %310 = vector.load %arg12[%309, %c0_64, %c0_65] : memref<8x8x512xf32, #tpu.memory_space<vmem>>, vector<1x8x512xf32>
    %311 = vector.shape_cast %310 : vector<1x8x512xf32> to vector<8x512xf32>
    %cst_66 = arith.constant dense<0.000000e+00> : vector<8x512xf32>
    %312 = tpu.matmul %280, %13, %cst_66 {dimension_numbers = #tpu.dot_dimension_numbers<[1], [0], [0], [1], [0, 0, 1, 1], [], []>} : vector<8x128xf32>, vector<128x512xf32>, vector<8x512xf32> -> vector<8x512xf32>
    %313 = arith.addf %311, %312 : vector<8x512xf32>
    %314 = vector.extract_strided_slice %313 {offsets = [0, 0], sizes = [8, 128], strides = [1, 1]} : vector<8x512xf32> to vector<8x128xf32>
    %315 = arith.negf %314 : vector<8x128xf32>
    %316 = math.exp %315 : vector<8x128xf32>
    %cst_67 = arith.constant 1.000000e+00 : f32
    %317 = vector.broadcast %cst_67 : f32 to vector<8x128xf32>
    %318 = arith.addf %317, %316 : vector<8x128xf32>
    %319 = arith.divf %317, %318 : vector<8x128xf32>
    %320 = vector.extract_strided_slice %313 {offsets = [0, 128], sizes = [8, 128], strides = [1, 1]} : vector<8x512xf32> to vector<8x128xf32>
    %321 = arith.negf %320 : vector<8x128xf32>
    %322 = math.exp %321 : vector<8x128xf32>
    %cst_68 = arith.constant 1.000000e+00 : f32
    %323 = vector.broadcast %cst_68 : f32 to vector<8x128xf32>
    %324 = arith.addf %323, %322 : vector<8x128xf32>
    %325 = arith.divf %323, %324 : vector<8x128xf32>
    %326 = vector.extract_strided_slice %313 {offsets = [0, 256], sizes = [8, 128], strides = [1, 1]} : vector<8x512xf32> to vector<8x128xf32>
    %327 = math.tanh %326 : vector<8x128xf32>
    %328 = vector.extract_strided_slice %313 {offsets = [0, 384], sizes = [8, 128], strides = [1, 1]} : vector<8x512xf32> to vector<8x128xf32>
    %329 = arith.negf %328 : vector<8x128xf32>
    %330 = math.exp %329 : vector<8x128xf32>
    %cst_69 = arith.constant 1.000000e+00 : f32
    %331 = vector.broadcast %cst_69 : f32 to vector<8x128xf32>
    %332 = arith.addf %331, %330 : vector<8x128xf32>
    %333 = arith.divf %331, %332 : vector<8x128xf32>
    %334 = arith.mulf %325, %278 : vector<8x128xf32>
    %335 = arith.mulf %319, %327 : vector<8x128xf32>
    %336 = arith.addf %334, %335 : vector<8x128xf32>
    %337 = math.tanh %336 : vector<8x128xf32>
    %338 = arith.mulf %333, %337 : vector<8x128xf32>
    %339 = tpu.concatenate %338, %308 in 1 : vector<8x128xf32>, vector<8x128xf32> -> vector<8x256xf32>
    %cst_70 = arith.constant dense<0.000000e+00> : vector<8x512xf32>
    %340 = tpu.matmul %339, %14, %cst_70 {dimension_numbers = #tpu.dot_dimension_numbers<[1], [0], [0], [1], [0, 0, 1, 1], [], []>} : vector<8x256xf32>, vector<256x512xf32>, vector<8x512xf32> -> vector<8x512xf32>
    %341 = arith.addf %340, %17 : vector<8x512xf32>
    %342 = vector.extract_strided_slice %341 {offsets = [0, 0], sizes = [8, 128], strides = [1, 1]} : vector<8x512xf32> to vector<8x128xf32>
    %343 = arith.negf %342 : vector<8x128xf32>
    %344 = math.exp %343 : vector<8x128xf32>
    %cst_71 = arith.constant 1.000000e+00 : f32
    %345 = vector.broadcast %cst_71 : f32 to vector<8x128xf32>
    %346 = arith.addf %345, %344 : vector<8x128xf32>
    %347 = arith.divf %345, %346 : vector<8x128xf32>
    %348 = vector.extract_strided_slice %341 {offsets = [0, 128], sizes = [8, 128], strides = [1, 1]} : vector<8x512xf32> to vector<8x128xf32>
    %349 = arith.negf %348 : vector<8x128xf32>
    %350 = math.exp %349 : vector<8x128xf32>
    %cst_72 = arith.constant 1.000000e+00 : f32
    %351 = vector.broadcast %cst_72 : f32 to vector<8x128xf32>
    %352 = arith.addf %351, %350 : vector<8x128xf32>
    %353 = arith.divf %351, %352 : vector<8x128xf32>
    %354 = vector.extract_strided_slice %341 {offsets = [0, 256], sizes = [8, 128], strides = [1, 1]} : vector<8x512xf32> to vector<8x128xf32>
    %355 = math.tanh %354 : vector<8x128xf32>
    %356 = vector.extract_strided_slice %341 {offsets = [0, 384], sizes = [8, 128], strides = [1, 1]} : vector<8x512xf32> to vector<8x128xf32>
    %357 = arith.negf %356 : vector<8x128xf32>
    %358 = math.exp %357 : vector<8x128xf32>
    %cst_73 = arith.constant 1.000000e+00 : f32
    %359 = vector.broadcast %cst_73 : f32 to vector<8x128xf32>
    %360 = arith.addf %359, %358 : vector<8x128xf32>
    %361 = arith.divf %359, %360 : vector<8x128xf32>
    %362 = arith.mulf %353, %306 : vector<8x128xf32>
    %363 = arith.mulf %347, %355 : vector<8x128xf32>
    %364 = arith.addf %362, %363 : vector<8x128xf32>
    %365 = math.tanh %364 : vector<8x128xf32>
    %366 = arith.mulf %361, %365 : vector<8x128xf32>
    %c6_i32 = arith.constant 6 : i32
    %367 = arith.index_cast %c6_i32 : i32 to index
    %c0_74 = arith.constant 0 : index
    %c0_75 = arith.constant 0 : index
    %368 = vector.load %arg12[%367, %c0_74, %c0_75] : memref<8x8x512xf32, #tpu.memory_space<vmem>>, vector<1x8x512xf32>
    %369 = vector.shape_cast %368 : vector<1x8x512xf32> to vector<8x512xf32>
    %cst_76 = arith.constant dense<0.000000e+00> : vector<8x512xf32>
    %370 = tpu.matmul %338, %13, %cst_76 {dimension_numbers = #tpu.dot_dimension_numbers<[1], [0], [0], [1], [0, 0, 1, 1], [], []>} : vector<8x128xf32>, vector<128x512xf32>, vector<8x512xf32> -> vector<8x512xf32>
    %371 = arith.addf %369, %370 : vector<8x512xf32>
    %372 = vector.extract_strided_slice %371 {offsets = [0, 0], sizes = [8, 128], strides = [1, 1]} : vector<8x512xf32> to vector<8x128xf32>
    %373 = arith.negf %372 : vector<8x128xf32>
    %374 = math.exp %373 : vector<8x128xf32>
    %cst_77 = arith.constant 1.000000e+00 : f32
    %375 = vector.broadcast %cst_77 : f32 to vector<8x128xf32>
    %376 = arith.addf %375, %374 : vector<8x128xf32>
    %377 = arith.divf %375, %376 : vector<8x128xf32>
    %378 = vector.extract_strided_slice %371 {offsets = [0, 128], sizes = [8, 128], strides = [1, 1]} : vector<8x512xf32> to vector<8x128xf32>
    %379 = arith.negf %378 : vector<8x128xf32>
    %380 = math.exp %379 : vector<8x128xf32>
    %cst_78 = arith.constant 1.000000e+00 : f32
    %381 = vector.broadcast %cst_78 : f32 to vector<8x128xf32>
    %382 = arith.addf %381, %380 : vector<8x128xf32>
    %383 = arith.divf %381, %382 : vector<8x128xf32>
    %384 = vector.extract_strided_slice %371 {offsets = [0, 256], sizes = [8, 128], strides = [1, 1]} : vector<8x512xf32> to vector<8x128xf32>
    %385 = math.tanh %384 : vector<8x128xf32>
    %386 = vector.extract_strided_slice %371 {offsets = [0, 384], sizes = [8, 128], strides = [1, 1]} : vector<8x512xf32> to vector<8x128xf32>
    %387 = arith.negf %386 : vector<8x128xf32>
    %388 = math.exp %387 : vector<8x128xf32>
    %cst_79 = arith.constant 1.000000e+00 : f32
    %389 = vector.broadcast %cst_79 : f32 to vector<8x128xf32>
    %390 = arith.addf %389, %388 : vector<8x128xf32>
    %391 = arith.divf %389, %390 : vector<8x128xf32>
    %392 = arith.mulf %383, %336 : vector<8x128xf32>
    %393 = arith.mulf %377, %385 : vector<8x128xf32>
    %394 = arith.addf %392, %393 : vector<8x128xf32>
    %395 = math.tanh %394 : vector<8x128xf32>
    %396 = arith.mulf %391, %395 : vector<8x128xf32>
    %397 = tpu.concatenate %396, %366 in 1 : vector<8x128xf32>, vector<8x128xf32> -> vector<8x256xf32>
    %cst_80 = arith.constant dense<0.000000e+00> : vector<8x512xf32>
    %398 = tpu.matmul %397, %14, %cst_80 {dimension_numbers = #tpu.dot_dimension_numbers<[1], [0], [0], [1], [0, 0, 1, 1], [], []>} : vector<8x256xf32>, vector<256x512xf32>, vector<8x512xf32> -> vector<8x512xf32>
    %399 = arith.addf %398, %17 : vector<8x512xf32>
    %400 = vector.extract_strided_slice %399 {offsets = [0, 0], sizes = [8, 128], strides = [1, 1]} : vector<8x512xf32> to vector<8x128xf32>
    %401 = arith.negf %400 : vector<8x128xf32>
    %402 = math.exp %401 : vector<8x128xf32>
    %cst_81 = arith.constant 1.000000e+00 : f32
    %403 = vector.broadcast %cst_81 : f32 to vector<8x128xf32>
    %404 = arith.addf %403, %402 : vector<8x128xf32>
    %405 = arith.divf %403, %404 : vector<8x128xf32>
    %406 = vector.extract_strided_slice %399 {offsets = [0, 128], sizes = [8, 128], strides = [1, 1]} : vector<8x512xf32> to vector<8x128xf32>
    %407 = arith.negf %406 : vector<8x128xf32>
    %408 = math.exp %407 : vector<8x128xf32>
    %cst_82 = arith.constant 1.000000e+00 : f32
    %409 = vector.broadcast %cst_82 : f32 to vector<8x128xf32>
    %410 = arith.addf %409, %408 : vector<8x128xf32>
    %411 = arith.divf %409, %410 : vector<8x128xf32>
    %412 = vector.extract_strided_slice %399 {offsets = [0, 256], sizes = [8, 128], strides = [1, 1]} : vector<8x512xf32> to vector<8x128xf32>
    %413 = math.tanh %412 : vector<8x128xf32>
    %414 = vector.extract_strided_slice %399 {offsets = [0, 384], sizes = [8, 128], strides = [1, 1]} : vector<8x512xf32> to vector<8x128xf32>
    %415 = arith.negf %414 : vector<8x128xf32>
    %416 = math.exp %415 : vector<8x128xf32>
    %cst_83 = arith.constant 1.000000e+00 : f32
    %417 = vector.broadcast %cst_83 : f32 to vector<8x128xf32>
    %418 = arith.addf %417, %416 : vector<8x128xf32>
    %419 = arith.divf %417, %418 : vector<8x128xf32>
    %420 = arith.mulf %411, %364 : vector<8x128xf32>
    %421 = arith.mulf %405, %413 : vector<8x128xf32>
    %422 = arith.addf %420, %421 : vector<8x128xf32>
    %423 = math.tanh %422 : vector<8x128xf32>
    %424 = arith.mulf %419, %423 : vector<8x128xf32>
    %c7_i32 = arith.constant 7 : i32
    %425 = arith.index_cast %c7_i32 : i32 to index
    %c0_84 = arith.constant 0 : index
    %c0_85 = arith.constant 0 : index
    %426 = vector.load %arg12[%425, %c0_84, %c0_85] : memref<8x8x512xf32, #tpu.memory_space<vmem>>, vector<1x8x512xf32>
    %427 = vector.shape_cast %426 : vector<1x8x512xf32> to vector<8x512xf32>
    %cst_86 = arith.constant dense<0.000000e+00> : vector<8x512xf32>
    %428 = tpu.matmul %396, %13, %cst_86 {dimension_numbers = #tpu.dot_dimension_numbers<[1], [0], [0], [1], [0, 0, 1, 1], [], []>} : vector<8x128xf32>, vector<128x512xf32>, vector<8x512xf32> -> vector<8x512xf32>
    %429 = arith.addf %427, %428 : vector<8x512xf32>
    %430 = vector.extract_strided_slice %429 {offsets = [0, 0], sizes = [8, 128], strides = [1, 1]} : vector<8x512xf32> to vector<8x128xf32>
    %431 = arith.negf %430 : vector<8x128xf32>
    %432 = math.exp %431 : vector<8x128xf32>
    %cst_87 = arith.constant 1.000000e+00 : f32
    %433 = vector.broadcast %cst_87 : f32 to vector<8x128xf32>
    %434 = arith.addf %433, %432 : vector<8x128xf32>
    %435 = arith.divf %433, %434 : vector<8x128xf32>
    %436 = vector.extract_strided_slice %429 {offsets = [0, 128], sizes = [8, 128], strides = [1, 1]} : vector<8x512xf32> to vector<8x128xf32>
    %437 = arith.negf %436 : vector<8x128xf32>
    %438 = math.exp %437 : vector<8x128xf32>
    %cst_88 = arith.constant 1.000000e+00 : f32
    %439 = vector.broadcast %cst_88 : f32 to vector<8x128xf32>
    %440 = arith.addf %439, %438 : vector<8x128xf32>
    %441 = arith.divf %439, %440 : vector<8x128xf32>
    %442 = vector.extract_strided_slice %429 {offsets = [0, 256], sizes = [8, 128], strides = [1, 1]} : vector<8x512xf32> to vector<8x128xf32>
    %443 = math.tanh %442 : vector<8x128xf32>
    %444 = vector.extract_strided_slice %429 {offsets = [0, 384], sizes = [8, 128], strides = [1, 1]} : vector<8x512xf32> to vector<8x128xf32>
    %445 = arith.negf %444 : vector<8x128xf32>
    %446 = math.exp %445 : vector<8x128xf32>
    %cst_89 = arith.constant 1.000000e+00 : f32
    %447 = vector.broadcast %cst_89 : f32 to vector<8x128xf32>
    %448 = arith.addf %447, %446 : vector<8x128xf32>
    %449 = arith.divf %447, %448 : vector<8x128xf32>
    %450 = arith.mulf %441, %394 : vector<8x128xf32>
    %451 = arith.mulf %435, %443 : vector<8x128xf32>
    %452 = arith.addf %450, %451 : vector<8x128xf32>
    %453 = math.tanh %452 : vector<8x128xf32>
    %454 = arith.mulf %449, %453 : vector<8x128xf32>
    %455 = tpu.concatenate %454, %424 in 1 : vector<8x128xf32>, vector<8x128xf32> -> vector<8x256xf32>
    %cst_90 = arith.constant dense<0.000000e+00> : vector<8x512xf32>
    %456 = tpu.matmul %455, %14, %cst_90 {dimension_numbers = #tpu.dot_dimension_numbers<[1], [0], [0], [1], [0, 0, 1, 1], [], []>} : vector<8x256xf32>, vector<256x512xf32>, vector<8x512xf32> -> vector<8x512xf32>
    %457 = arith.addf %456, %17 : vector<8x512xf32>
    %458 = vector.extract_strided_slice %457 {offsets = [0, 0], sizes = [8, 128], strides = [1, 1]} : vector<8x512xf32> to vector<8x128xf32>
    %459 = arith.negf %458 : vector<8x128xf32>
    %460 = math.exp %459 : vector<8x128xf32>
    %cst_91 = arith.constant 1.000000e+00 : f32
    %461 = vector.broadcast %cst_91 : f32 to vector<8x128xf32>
    %462 = arith.addf %461, %460 : vector<8x128xf32>
    %463 = arith.divf %461, %462 : vector<8x128xf32>
    %464 = vector.extract_strided_slice %457 {offsets = [0, 128], sizes = [8, 128], strides = [1, 1]} : vector<8x512xf32> to vector<8x128xf32>
    %465 = arith.negf %464 : vector<8x128xf32>
    %466 = math.exp %465 : vector<8x128xf32>
    %cst_92 = arith.constant 1.000000e+00 : f32
    %467 = vector.broadcast %cst_92 : f32 to vector<8x128xf32>
    %468 = arith.addf %467, %466 : vector<8x128xf32>
    %469 = arith.divf %467, %468 : vector<8x128xf32>
    %470 = vector.extract_strided_slice %457 {offsets = [0, 256], sizes = [8, 128], strides = [1, 1]} : vector<8x512xf32> to vector<8x128xf32>
    %471 = math.tanh %470 : vector<8x128xf32>
    %472 = vector.extract_strided_slice %457 {offsets = [0, 384], sizes = [8, 128], strides = [1, 1]} : vector<8x512xf32> to vector<8x128xf32>
    %473 = arith.negf %472 : vector<8x128xf32>
    %474 = math.exp %473 : vector<8x128xf32>
    %cst_93 = arith.constant 1.000000e+00 : f32
    %475 = vector.broadcast %cst_93 : f32 to vector<8x128xf32>
    %476 = arith.addf %475, %474 : vector<8x128xf32>
    %477 = arith.divf %475, %476 : vector<8x128xf32>
    %478 = arith.mulf %469, %422 : vector<8x128xf32>
    %479 = arith.mulf %463, %471 : vector<8x128xf32>
    %480 = arith.addf %478, %479 : vector<8x128xf32>
    %481 = math.tanh %480 : vector<8x128xf32>
    %482 = arith.mulf %477, %481 : vector<8x128xf32>
    %c8_i32 = arith.constant 8 : i32
    %c0_94 = arith.constant 0 : index
    %c0_95 = arith.constant 0 : index
    %483 = vector.load %arg7[%c0_94, %c0_95] : memref<128x128xf32, #tpu.memory_space<vmem>>, vector<128x128xf32>
    %cst_96 = arith.constant dense<0.000000e+00> : vector<8x128xf32>
    %484 = tpu.matmul %482, %483, %cst_96 {dimension_numbers = #tpu.dot_dimension_numbers<[1], [0], [0], [1], [0, 0, 1, 1], [], []>} : vector<8x128xf32>, vector<128x128xf32>, vector<8x128xf32> -> vector<8x128xf32>
    %c0_97 = arith.constant 0 : index
    %c0_98 = arith.constant 0 : index
    %485 = vector.load %arg8[%c0_97, %c0_98] : memref<1x128xf32, #tpu.memory_space<vmem>>, vector<1x128xf32>
    %486 = vector.broadcast %485 : vector<1x128xf32> to vector<8x128xf32>
    %487 = arith.addf %484, %486 : vector<8x128xf32>
    %cst_99 = arith.constant 0.000000e+00 : f32
    %488 = vector.broadcast %cst_99 : f32 to vector<8x128xf32>
    %489 = arith.maximumf %487, %488 : vector<8x128xf32>
    %c0_100 = arith.constant 0 : index
    %c0_101 = arith.constant 0 : index
    %490 = vector.load %arg9[%c0_100, %c0_101] : memref<1x128xf32, #tpu.memory_space<vmem>>, vector<1x128xf32>
    %491 = vector.broadcast %490 : vector<1x128xf32> to vector<8x128xf32>
    %492 = arith.mulf %489, %491 : vector<8x128xf32>
    %cst_102 = arith.constant dense<0.000000e+00> : vector<8xf32>
    %493 = vector.multi_reduction <add>, %492, %cst_102 [1] : vector<8x128xf32> to vector<8xf32>
    %494 = vector.shape_cast %493 : vector<8xf32> to vector<8x1xf32>
    %c0_103 = arith.constant 0 : index
    %c0_104 = arith.constant 0 : index
    %495 = vector.load %arg10[%c0_103, %c0_104] : memref<1x1xf32, #tpu.memory_space<vmem>>, vector<1x1xf32>
    %496 = vector.broadcast %495 : vector<1x1xf32> to vector<8x1xf32>
    %497 = arith.addf %494, %496 : vector<8x1xf32>
    %c0_105 = arith.constant 0 : index
    %c0_106 = arith.constant 0 : index
    %498 = vector.load %arg11[%c0_105, %c0_106] : memref<8x1xf32, #tpu.memory_space<vmem>>, vector<8x1xf32>
    tpu.vector_store %arg11[%c0_105, %c0_106], %497 {strides = array<i32>} : memref<8x1xf32, #tpu.memory_space<vmem>>, vector<8x1xf32>,
    return
  }
  func.func @transform_0(%arg0: i32) -> (i32, i32) {
    %c0_i32 = arith.constant 0 : i32
    %c0_i32_0 = arith.constant 0 : i32
    return %arg0, %c0_i32 : i32, i32
  }
  func.func @transform_1(%arg0: i32) -> (i32, i32) {
    %c0_i32 = arith.constant 0 : i32
    %c0_i32_0 = arith.constant 0 : i32
    %c0_i32_1 = arith.constant 0 : i32
    return %c0_i32, %c0_i32_0 : i32, i32
  }
  func.func @transform_2(%arg0: i32) -> (i32, i32) {
    %c0_i32 = arith.constant 0 : i32
    %c0_i32_0 = arith.constant 0 : i32
    %c0_i32_1 = arith.constant 0 : i32
    return %c0_i32, %c0_i32_0 : i32, i32
  }
  func.func @transform_3(%arg0: i32) -> (i32, i32) {
    %c0_i32 = arith.constant 0 : i32
    %c0_i32_0 = arith.constant 0 : i32
    %c0_i32_1 = arith.constant 0 : i32
    return %c0_i32, %c0_i32_0 : i32, i32
  }
  func.func @transform_4(%arg0: i32) -> (i32, i32) {
    %c0_i32 = arith.constant 0 : i32
    %c0_i32_0 = arith.constant 0 : i32
    %c0_i32_1 = arith.constant 0 : i32
    return %c0_i32, %c0_i32_0 : i32, i32
  }
  func.func @transform_5(%arg0: i32) -> (i32, i32) {
    %c0_i32 = arith.constant 0 : i32
    %c0_i32_0 = arith.constant 0 : i32
    %c0_i32_1 = arith.constant 0 : i32
    return %c0_i32, %c0_i32_0 : i32, i32
  }
  func.func @transform_6(%arg0: i32) -> (i32, i32) {
    %c0_i32 = arith.constant 0 : i32
    %c0_i32_0 = arith.constant 0 : i32
    %c0_i32_1 = arith.constant 0 : i32
    return %c0_i32, %c0_i32_0 : i32, i32
  }
  func.func @transform_7(%arg0: i32) -> (i32, i32) {
    %c0_i32 = arith.constant 0 : i32
    %c0_i32_0 = arith.constant 0 : i32
    %c0_i32_1 = arith.constant 0 : i32
    return %c0_i32, %c0_i32_0 : i32, i32
  }
  func.func @transform_8(%arg0: i32) -> (i32, i32) {
    %c0_i32 = arith.constant 0 : i32
    %c0_i32_0 = arith.constant 0 : i32
    %c0_i32_1 = arith.constant 0 : i32
    return %c0_i32, %c0_i32_0 : i32, i32
  }
  func.func @transform_9(%arg0: i32) -> (i32, i32) {
    %c0_i32 = arith.constant 0 : i32
    %c0_i32_0 = arith.constant 0 : i32
    %c0_i32_1 = arith.constant 0 : i32
    return %c0_i32, %c0_i32_0 : i32, i32
  }
  func.func @transform_10(%arg0: i32) -> (i32, i32) {
    %c0_i32 = arith.constant 0 : i32
    %c0_i32_0 = arith.constant 0 : i32
    return %arg0, %c0_i32 : i32, i32
  }
}

</mosaic_0001>

<bundles_post_ra>
// kernel: tpu_custom_call.1
= control target key start
LH: loop header
LB: loop body
LE: loop exit
PB: predicated region body
PF: predicated region fallthrough
CT: control target
= control target key end

     0   :  { %s6831_s0 = inlined_call_operand.hbm [shape: f32[8,8], index: 0, kind: input, shape index: {}]   ;;  %s6832_s1 = inlined_call_operand.vmem [shape: f32[1,512], index: 1, kind: input, shape index: {}]   ;;  %s6833_s2 = inlined_call_operand.hbm [shape: f32[128,512], index: 2, kind: input, shape index: {}]   ;;  %s6834_s3 = inlined_call_operand.vmem [shape: f32[1,512], index: 3, kind: input, shape index: {}]   ;;  %s6835_s4 = inlined_call_operand.hbm [shape: f32[256,512], index: 4, kind: input, shape index: {}]   ;;  %s6836_s5 = inlined_call_operand.vmem [shape: f32[1,512], index: 5, kind: input, shape index: {}]   ;;  %s6837_s6 = inlined_call_operand.hbm [shape: f32[128,128], index: 6, kind: input, shape index: {}]   ;;  %s6838_s7 = inlined_call_operand.vmem [shape: f32[1,128], index: 7, kind: input, shape index: {}]   ;;  %s6839_s8 = inlined_call_operand.vmem [shape: f32[1,128], index: 8, kind: input, shape index: {}]   ;;  %s6840_s9 = inlined_call_operand.<no memory space> [shape: f32[1,1], index: 9, kind: input, shape index: {}]   ;;  %s6841_s10 = inlined_call_operand.vmem [shape: f32[8,1], index: 10, kind: output, shape index: {}]  }
   0x1   :  { %v15_v0 = vstv %s6840_s9 }
   0x2   :  { %16 = vst [vmem:[#allocation3] sm:$0x1] %v15_v0 }
   0x3   :  { %17 = vsyncpa [#allocation5], 0 }
   0x4   :  { %18 = vsyncpa [#allocation7], 0 }
   0x5   :  { %19 = vsyncpa [#allocation10], 0  ;;  %s5405_s15 = smov [#allocation6]   ;;  %s5311_s19 = scalar_lea.hbm %s6833_s2, 8192 }
   0x6   :  { %s37_s16 = sshll.u32 %s5405_s15, 4  ;;  %p5312_p0 = scmp.ne.s32.totalorder %s6833_s2, %s5311_s19  ;;  %s38_s16 = int_to_ptr.vmem [resolvable:$true] %s37_s16 }
   0x7   :  { %p5315_p1 = scmp.lt.u32.totalorder %s5311_s19, %s6833_s2 }
   0x9   :  { %p5317_p2 = pnand %p5315_p1, %p5312_p0 }
   0xb   :  { %5320 = shalt.err (!%p5317_p2)
}
   0xc   :  { %s5321_s9 = scalar_lea.vmem %s38_s16, 8192  ;;  %p5326_p4 = scmp.lt.s32.totalorder %s38_s16, %s38_s16 }
   0xd   :  { %p5322_p3 = scmp.ne.s32.totalorder %s38_s16, %s5321_s9  ;;  %p5327_p5 = scmp.lt.s32.totalorder %s5321_s9, %s5321_s9 }
   0xf   :  { %p5328_p6 = por %p5327_p5, %p5326_p4 }
  0x11   :  { %p5329_p7 = pnand %p5328_p6, %p5322_p3 }
  0x13   :  { %5332 = shalt.err (!%p5329_p7)
}
  0x14   :  { %s5406_s24 = smov 512   ;;  %s5407_s25 = smov 32  }
  0x15   :  { %43 = dma.hbm_to_vmem [thread:$0]  %s6833_s2, 8192, %s38_s16, [#allocation7], %s5406_s24, %s5406_s24, %s5407_s25  }
  0x16   :  { %s5408_s28 = smov [#allocation4]   ;;  %s5409_s30 = smov [#allocation8]  }
  0x17   :  { %s26_s29 = sshll.u32 %s5408_s28, 4  ;;  %s51_s11 = sshll.u32 %s5409_s30, 4  ;;  %s27_s29 = int_to_ptr.vmem [resolvable:$true] %s26_s29  ;;  %s52_s11 = int_to_ptr.vmem [resolvable:$true] %s51_s11 }
  0x18   :  { %s5333_s14 = scalar_lea.hbm %s6831_s0, 128 }
  0x19   :  { %p5334_p8 = scmp.ne.s32.totalorder %s6831_s0, %s5333_s14  ;;  %p5337_p9 = scmp.lt.u32.totalorder %s5333_s14, %s6831_s0 }
  0x1b   :  { %p5339_p10 = pnand %p5337_p9, %p5334_p8 }
  0x1d   :  { %5342 = shalt.err (!%p5339_p10)
}
  0x1e   :  { %s5343_s2 = scalar_lea.vmem %s27_s29, 128  ;;  %p5348_p12 = scmp.lt.s32.totalorder %s27_s29, %s27_s29 }
  0x1f   :  { %p5344_p11 = scmp.ne.s32.totalorder %s27_s29, %s5343_s2  ;;  %p5349_p13 = scmp.lt.s32.totalorder %s5343_s2, %s5343_s2 }
  0x21   :  { %p5350_p0 = por %p5349_p13, %p5348_p12 }
  0x23   :  { %p5351_p1 = pnand %p5350_p0, %p5344_p11 }
  0x25   :  { %5354 = shalt.err (!%p5351_p1)
}
  0x26   :  { %29 = dma.hbm_to_vmem [thread:$0]  %s6831_s0, 128, %s27_s29, [#allocation5]  }
  0x27   :  { %s5355_s23 = scalar_lea.hbm %s6835_s4, 16384 }
  0x28   :  { %p5356_p2 = scmp.ne.s32.totalorder %s6835_s4, %s5355_s23  ;;  %p5359_p3 = scmp.lt.u32.totalorder %s5355_s23, %s6835_s4 }
  0x2a   :  { %p5361_p4 = pnand %p5359_p3, %p5356_p2 }
  0x2c   :  { %5364 = shalt.err (!%p5361_p4)
}
  0x2d   :  { %s5365_s30 = scalar_lea.vmem %s52_s11, 16384  ;;  %p5370_p6 = scmp.lt.s32.totalorder %s52_s11, %s52_s11 }
  0x2e   :  { %p5366_p5 = scmp.ne.s32.totalorder %s52_s11, %s5365_s30  ;;  %p5371_p7 = scmp.lt.s32.totalorder %s5365_s30, %s5365_s30 }
  0x30   :  { %p5372_p8 = por %p5371_p7, %p5370_p6 }
  0x32   :  { %p5373_p9 = pnand %p5372_p8, %p5366_p5 }
  0x34   :  { %5376 = shalt.err (!%p5373_p9)
}
  0x35   :  { %57 = dma.hbm_to_vmem [thread:$0]  %s6835_s4, 16384, %s52_s11, [#allocation7], %s5406_s24, %s5406_s24, %s5407_s25  }
  0x36   :  { %s5410_s12 = smov [#allocation9]   ;;  %s5377_s17 = scalar_lea.hbm %s6837_s6, 2048 }
  0x37   :  { %s65_s13 = sshll.u32 %s5410_s12, 4  ;;  %p5378_p10 = scmp.ne.s32.totalorder %s6837_s6, %s5377_s17  ;;  %s66_s13 = int_to_ptr.vmem [resolvable:$true] %s65_s13 }
  0x38   :  { %p5381_p11 = scmp.lt.u32.totalorder %s5377_s17, %s6837_s6 }
  0x3a   :  { %p5383_p12 = pnand %p5381_p11, %p5378_p10 }
  0x3c   :  { %5386 = shalt.err (!%p5383_p12)
}
  0x3d   :  { %s5387_s20 = scalar_lea.vmem %s66_s13, 2048  ;;  %p5392_p0 = scmp.lt.s32.totalorder %s66_s13, %s66_s13 }
  0x3e   :  { %p5388_p13 = scmp.ne.s32.totalorder %s66_s13, %s5387_s20  ;;  %p5393_p1 = scmp.lt.s32.totalorder %s5387_s20, %s5387_s20 }
  0x40   :  { %p5394_p2 = por %p5393_p1, %p5392_p0 }
  0x42   :  { %p5395_p3 = pnand %p5394_p2, %p5388_p13 }
  0x44   :  { %5398 = shalt.err (!%p5395_p3)
}
  0x45   :  { %s5411_s4 = smov 128   ;;  %s5412_s24 = smov 8  }
  0x46   :  { %71 = dma.hbm_to_vmem [thread:$0]  %s6837_s6, 2048, %s66_s13, [#allocation10], %s5411_s4, %s5411_s4, %s5412_s24  }
  0x47   :  { %5399 = dma.done.wait [#allocation5], 128  }
  0x48   :  { %5400 = vsyncadd [#allocation5], 4294967168 }
  0x49   :  { %5401 = dma.done.wait [#allocation7], 24576  }
  0x4a   :  { %5402 = vsyncadd [#allocation7], 4294942720 }
  0x4b   :  { %5403 = dma.done.wait [#allocation10], 2048  }
  0x4c   :  { %5404 = vsyncadd [#allocation10], 4294965248  ;;  %v6842_v1 = vmov 0.0   ;;  %v90_v2 = vld [vmem:[#allocation4] sm:$0xff]  ;;  %v320_v3 = vld [vmem:[#allocation6 + $0x8] sm:$0xff]  ;;  %vm5415_vm0 = vmmov 0  }
  0x4d   :  { %601 = vmatprep.mubr.f32.mxu0 %v6842_v1  ;;  %672 = vmatprep.mubr.f32.mxu1 %v6842_v1  ;;  %v324_v4 = vld [vmem:[#allocation6 + $0x28] sm:$0xff]  ;;  %v319_v6 = vld [vmem:[#allocation6] sm:$0xff]  ;;  %v322_v8 = vld [vmem:[#allocation6 + $0x18] sm:$0xff]  ;;  %vm3372_vm1 = vcmask 7168  }
  0x4e   :  { %91 = vxpose.xlu0.b32.start.end [1/1] (short) (narrow) %v90_v2, 8  ;;  %v5530_v5 = vpack.c.bf16 %v324_v4, %v320_v3  ;;  %v323_v7 = vld [vmem:[#allocation6 + $0x20] sm:$0xff]  ;;  %v326_v10 = vld [vmem:[#allocation6 + $0x38] sm:$0xff]  ;;  %v321_v11 = vld [vmem:[#allocation6 + $0x10] sm:$0xff] }
  0x4f   :  { %v5532_v9 = vpack.c.bf16 %v323_v7, %v319_v6  ;;  %v325_v12 = vld [vmem:[#allocation6 + $0x30] sm:$0xff]  ;;  %v5535_v13 = vpack.c.bf16 %v326_v10, %v322_v8  ;;  %v328_v15 = vld [vmem:[#allocation6 + $0x48] sm:$0xff]  ;;  %v327_v17 = vld [vmem:[#allocation6 + $0x40] sm:$0xff] }
  0x50   :  { %6981 = vst [vmem:[#allocation14_spill] sm:$0xff] %v5530_v5  ;;  %3485 = vmatprep.subr.bf16.mxu0 %v5530_v5  ;;  %v5537_v14 = vpack.c.bf16 %v325_v12, %v321_v11  ;;  %v332_v16 = vld [vmem:[#allocation6 + $0x68] sm:$0xff]  ;;  %v331_v19 = vld [vmem:[#allocation6 + $0x60] sm:$0xff]  ;;  %v330_v20 = vld [vmem:[#allocation6 + $0x58] sm:$0xff] }
  0x51   :  { %6982 = vst [vmem:[#allocation15_spill] sm:$0xff] %v5535_v13  ;;  %3487 = vmatpush1.bf16.msra.mxu0 %v5532_v9  ;;  %v5540_v18 = vpack.c.bf16 %v332_v16, %v328_v15  ;;  %v334_v21 = vld [vmem:[#allocation6 + $0x78] sm:$0xff]  ;;  %3517 = vmatprep.subr.bf16.mxu1 %v5535_v13  ;;  %v5543_v22 = vpack.c.bf16 %v331_v19, %v327_v17  ;;  %v329_v24 = vld [vmem:[#allocation6 + $0x50] sm:$0xff]  ;;  %v336_v26 = vld [vmem:[#allocation6 + $0x88] sm:$0xff] }
  0x52   :  { %v5545_v23 = vpack.c.bf16 %v334_v21, %v330_v20  ;;  %v333_v25 = vld [vmem:[#allocation6 + $0x70] sm:$0xff]  ;;  %3519 = vmatpush1.bf16.msra.mxu1 %v5537_v14  ;;  %v340_v28 = vld [vmem:[#allocation6 + $0xa8] sm:$0xff]  ;;  %v335_v29 = vld [vmem:[#allocation6 + $0x80] sm:$0xff] }
  0x53   :  { %3489 = vmatprep.subr.bf16.mxu0 %v5540_v18  ;;  %v5549_v27 = vpack.c.bf16 %v333_v25, %v329_v24  ;;  %v339_v30 = vld [vmem:[#allocation6 + $0xa0] sm:$0xff]  ;;  %v5552_v31 = vpack.c.bf16 %v340_v28, %v336_v26  ;;  %v338_v32 = vld [vmem:[#allocation6 + $0x98] sm:$0xff]  ;;  %v337_v34 = vld [vmem:[#allocation6 + $0x90] sm:$0xff] }
  0x54   :  { %3521 = vmatprep.subr.bf16.mxu1 %v5545_v23  ;;  %v342_v33 = vld [vmem:[#allocation6 + $0xb8] sm:$0xff]  ;;  %v5555_v35 = vpack.c.bf16 %v339_v30, %v335_v29  ;;  %v341_v37 = vld [vmem:[#allocation6 + $0xb0] sm:$0xff]  ;;  %v344_v38 = vld [vmem:[#allocation6 + $0xc8] sm:$0xff] }
  0x55   :  { %3491 = vmatpush1.bf16.msra.mxu0 %v5543_v22  ;;  %v5557_v36 = vpack.c.bf16 %v342_v33, %v338_v32  ;;  %v348_v39 = vld [vmem:[#allocation6 + $0xe8] sm:$0xff]  ;;  %v343_v41 = vld [vmem:[#allocation6 + $0xc0] sm:$0xff]  ;;  %v346_v43 = vld [vmem:[#allocation6 + $0xd8] sm:$0xff]  ;;  %v5563_v44 = vpack.c.bf16 %v341_v37, %v337_v34 }
  0x56   :  { %3493 = vmatprep.subr.bf16.mxu0 %v5552_v31  ;;  %v5560_v40 = vpack.c.bf16 %v348_v39, %v344_v38  ;;  %v347_v42 = vld [vmem:[#allocation6 + $0xe0] sm:$0xff]  ;;  %3523 = vmatpush1.bf16.msra.mxu1 %v5549_v27  ;;  %v350_v45 = vld [vmem:[#allocation6 + $0xf8] sm:$0xff]  ;;  %v345_v46 = vld [vmem:[#allocation6 + $0xd0] sm:$0xff] }
  0x57   :  { %3525 = vmatprep.subr.bf16.mxu1 %v5557_v36  ;;  %v5566_v47 = vpack.c.bf16 %v350_v45, %v346_v43  ;;  %v349_v48 = vld [vmem:[#allocation6 + $0xf0] sm:$0xff]  ;;  %v352_v49 = vld [vmem:[#allocation6 + $0x108] sm:$0xff]  ;;  %v5569_v51 = vpack.c.bf16 %v347_v42, %v343_v41  ;;  %v354_v52 = vld [vmem:[#allocation6 + $0x118] sm:$0xff] }
  0x58   :  { %v356_v50 = vld [vmem:[#allocation6 + $0x128] sm:$0xff]  ;;  %v358_v53 = vld [vmem:[#allocation6 + $0x138] sm:$0xff]  ;;  %v351_v55 = vld [vmem:[#allocation6 + $0x100] sm:$0xff]  ;;  %v5575_v57 = vpack.c.bf16 %v349_v48, %v345_v46 }
  0x59   :  { %3495 = vmatpush1.bf16.msra.mxu0 %v5555_v35  ;;  %v5572_v54 = vpack.c.bf16 %v356_v50, %v352_v49  ;;  %v355_v56 = vld [vmem:[#allocation6 + $0x120] sm:$0xff]  ;;  %v360_v58 = vld [vmem:[#allocation6 + $0x148] sm:$0xff]  ;;  %v5578_v60 = vpack.c.bf16 %v358_v53, %v354_v52  ;;  %v353_v61 = vld [vmem:[#allocation6 + $0x110] sm:$0xff] }
  0x5a   :  { %3497 = vmatprep.subr.bf16.mxu0 %v5560_v40  ;;  %3527 = vmatpush1.bf16.msra.mxu1 %v5563_v44  ;;  %v364_v59 = vld [vmem:[#allocation6 + $0x168] sm:$0xff]  ;;  %v357_v62 = vld [vmem:[#allocation6 + $0x130] sm:$0xff]  ;;  %v5581_v63 = vpack.c.bf16 %v355_v56, %v351_v55  ;;  %v362_v0 = vld [vmem:[#allocation6 + $0x158] sm:$0xff] }
  0x5b   :  { %3529 = vmatprep.subr.bf16.mxu1 %v5566_v47  ;;  %v366_v2 = vld [vmem:[#allocation6 + $0x178] sm:$0xff]  ;;  %v5584_v3 = vpack.c.bf16 %v364_v59, %v360_v58  ;;  %v359_v4 = vld [vmem:[#allocation6 + $0x140] sm:$0xff]  ;;  %v5587_v7 = vpack.c.bf16 %v357_v62, %v353_v61  ;;  %v368_v8 = vld [vmem:[#allocation6 + $0x188] sm:$0xff] }
  0x5c   :  { %v363_v6 = vld [vmem:[#allocation6 + $0x160] sm:$0xff]  ;;  %v372_v10 = vld [vmem:[#allocation6 + $0x1a8] sm:$0xff]  ;;  %v5590_v11 = vpack.c.bf16 %v366_v2, %v362_v0  ;;  %v361_v12 = vld [vmem:[#allocation6 + $0x150] sm:$0xff] }
  0x5d   :  { %3499 = vmatpush1.bf16.msra.mxu0 %v5569_v51  ;;  %v365_v15 = vld [vmem:[#allocation6 + $0x170] sm:$0xff]  ;;  %v5593_v16 = vpack.c.bf16 %v363_v6, %v359_v4  ;;  %v370_v17 = vld [vmem:[#allocation6 + $0x198] sm:$0xff]  ;;  %v5596_v20 = vpack.c.bf16 %v372_v10, %v368_v8  ;;  %v367_v21 = vld [vmem:[#allocation6 + $0x180] sm:$0xff] }
  0x5e   :  { %3501 = vmatprep.subr.bf16.mxu0 %v5572_v54  ;;  %3531 = vmatpush1.bf16.msra.mxu1 %v5575_v57  ;;  %v374_v19 = vld [vmem:[#allocation6 + $0x1b8] sm:$0xff]  ;;  %v371_v24 = vld [vmem:[#allocation6 + $0x1a0] sm:$0xff]  ;;  %v5599_v25 = vpack.c.bf16 %v365_v15, %v361_v12  ;;  %v376_v26 = vld [vmem:[#allocation6 + $0x1c8] sm:$0xff] }
  0x5f   :  { %3533 = vmatprep.subr.bf16.mxu1 %v5578_v60  ;;  %v380_v28 = vld [vmem:[#allocation6 + $0x1e8] sm:$0xff]  ;;  %v5602_v29 = vpack.c.bf16 %v374_v19, %v370_v17  ;;  %v369_v30 = vld [vmem:[#allocation6 + $0x190] sm:$0xff]  ;;  %v5605_v33 = vpack.c.bf16 %v371_v24, %v367_v21  ;;  %v378_v34 = vld [vmem:[#allocation6 + $0x1d8] sm:$0xff] }
  0x60   :  { %v373_v32 = vld [vmem:[#allocation6 + $0x1b0] sm:$0xff]  ;;  %v382_v37 = vld [vmem:[#allocation6 + $0x1f8] sm:$0xff]  ;;  %v5608_v38 = vpack.c.bf16 %v380_v28, %v376_v26  ;;  %v375_v39 = vld [vmem:[#allocation6 + $0x1c0] sm:$0xff] }
  0x61   :  { %3503 = vmatpush1.bf16.msra.mxu0 %v5581_v63  ;;  %v379_v41 = vld [vmem:[#allocation6 + $0x1e0] sm:$0xff]  ;;  %v5611_v42 = vpack.c.bf16 %v373_v32, %v369_v30  ;;  %v5614_v43 = vpack.c.bf16 %v382_v37, %v378_v34  ;;  %v377_v45 = vld [vmem:[#allocation6 + $0x1d0] sm:$0xff]  ;;  %v384_v49 = vld [vmem:[#allocation8 + $0x8] sm:$0xff] }
  0x62   :  { %3505 = vmatprep.subr.bf16.mxu0 %v5584_v3  ;;  %3535 = vmatpush1.bf16.msra.mxu1 %v5587_v7  ;;  %v381_v46 = vld [vmem:[#allocation6 + $0x1f0] sm:$0xff]  ;;  %v5617_v48 = vpack.c.bf16 %v379_v41, %v375_v39  ;;  %v388_v50 = vld [vmem:[#allocation8 + $0x28] sm:$0xff]  ;;  %v386_v52 = vld [vmem:[#allocation8 + $0x18] sm:$0xff] }
  0x63   :  { %3537 = vmatprep.subr.bf16.mxu1 %v5590_v11  ;;  %v5620_v53 = vpack.c.bf16 %v388_v50, %v384_v49  ;;  %v390_v55 = vld [vmem:[#allocation8 + $0x38] sm:$0xff]  ;;  %v383_v56 = vld [vmem:[#allocation8] sm:$0xff]  ;;  %v5623_v59 = vpack.c.bf16 %v381_v46, %v377_v45  ;;  %v392_v61 = vld [vmem:[#allocation8 + $0x48] sm:$0xff] }
  0x64   :  { %v387_v58 = vld [vmem:[#allocation8 + $0x20] sm:$0xff]  ;;  %v5626_v62 = vpack.c.bf16 %v390_v55, %v386_v52  ;;  %v385_v0 = vld [vmem:[#allocation8 + $0x10] sm:$0xff]  ;;  %v396_v4 = vld [vmem:[#allocation8 + $0x68] sm:$0xff] }
  0x65   :  { %3507 = vmatpush1.bf16.msra.mxu0 %v5593_v16  ;;  %v389_v2 = vld [vmem:[#allocation8 + $0x30] sm:$0xff]  ;;  %v5629_v6 = vpack.c.bf16 %v387_v58, %v383_v56  ;;  %v394_v8 = vld [vmem:[#allocation8 + $0x58] sm:$0xff]  ;;  %v5632_v12 = vpack.c.bf16 %v396_v4, %v392_v61  ;;  %v391_v15 = vld [vmem:[#allocation8 + $0x40] sm:$0xff] }
  0x66   :  { %3509 = vmatprep.subr.bf16.mxu0 %v5596_v20  ;;  %3539 = vmatpush1.bf16.msra.mxu1 %v5599_v25  ;;  %v398_v10 = vld [vmem:[#allocation8 + $0x78] sm:$0xff]  ;;  %v395_v17 = vld [vmem:[#allocation8 + $0x60] sm:$0xff]  ;;  %v5635_v19 = vpack.c.bf16 %v389_v2, %v385_v0  ;;  %v400_v21 = vld [vmem:[#allocation8 + $0x88] sm:$0xff] }
  0x67   :  { %3541 = vmatprep.subr.bf16.mxu1 %v5602_v29  ;;  %6983 = vst [vmem:[#allocation16_spill] sm:$0xff] %v5632_v12  ;;  %v404_v24 = vld [vmem:[#allocation8 + $0xa8] sm:$0xff]  ;;  %v5639_v26 = vpack.c.bf16 %v398_v10, %v394_v8  ;;  %v393_v28 = vld [vmem:[#allocation8 + $0x50] sm:$0xff]  ;;  %v5642_v32 = vpack.c.bf16 %v395_v17, %v391_v15  ;;  %v402_v34 = vld [vmem:[#allocation8 + $0x98] sm:$0xff] }
  0x68   :  { %v397_v30 = vld [vmem:[#allocation8 + $0x70] sm:$0xff]  ;;  %v406_v37 = vld [vmem:[#allocation8 + $0xb8] sm:$0xff]  ;;  %v5647_v39 = vpack.c.bf16 %v404_v24, %v400_v21  ;;  %v399_v41 = vld [vmem:[#allocation8 + $0x80] sm:$0xff] }
  0x69   :  { %3511 = vmatpush1.bf16.msra.mxu0 %v5605_v33  ;;  %6984 = vst [vmem:[#allocation17_spill] sm:$0xff] %v5639_v26  ;;  %6985 = vst [vmem:[#allocation18_spill] sm:$0xff] %v5642_v32  ;;  %v403_v45 = vld [vmem:[#allocation8 + $0xa0] sm:$0xff]  ;;  %v5650_v46 = vpack.c.bf16 %v397_v30, %v393_v28  ;;  %v408_v49 = vld [vmem:[#allocation8 + $0xc8] sm:$0xff]  ;;  %v5654_v52 = vpack.c.bf16 %v406_v37, %v402_v34 }
  0x6a   :  { %3513 = vmatprep.subr.bf16.mxu0 %v5608_v38  ;;  %3543 = vmatpush1.bf16.msra.mxu1 %v5611_v42  ;;  %6986 = vst [vmem:[#allocation19_spill] sm:$0xff] %v5647_v39  ;;  %v412_v50 = vld [vmem:[#allocation8 + $0xe8] sm:$0xff]  ;;  %v401_v55 = vld [vmem:[#allocation8 + $0x90] sm:$0xff]  ;;  %v5657_v58 = vpack.c.bf16 %v403_v45, %v399_v41  ;;  %v410_v61 = vld [vmem:[#allocation8 + $0xd8] sm:$0xff]  ;;  %v123_v41 = vlaneseq }
  0x6b   :  { %3545 = vmatprep.subr.bf16.mxu1 %v5614_v43  ;;  %6987 = vst [vmem:[#allocation20_spill] sm:$0xff] %v5650_v46  ;;  %6988 = vst [vmem:[#allocation21_spill] sm:$0xff] %v5654_v52  ;;  %v405_v56 = vld [vmem:[#allocation8 + $0xb0] sm:$0xff]  ;;  %v414_v0 = vld [vmem:[#allocation8 + $0xf8] sm:$0xff]  ;;  %v5660_v2 = vpack.c.bf16 %v412_v50, %v408_v49 }
  0x6c   :  { %6989 = vst [vmem:[#allocation22_spill] sm:$0xff] %v5657_v58  ;;  %v407_v4 = vld [vmem:[#allocation8 + $0xc0] sm:$0xff]  ;;  %v5663_v10 = vpack.c.bf16 %v405_v56, %v401_v55  ;;  %v5666_v15 = vpack.c.bf16 %v414_v0, %v410_v61  ;;  %v409_v17 = vld [vmem:[#allocation8 + $0xd0] sm:$0xff]  ;;  %v416_v30 = vld [vmem:[#allocation8 + $0x108] sm:$0xff] }
  0x6d   :  { %3515 = vmatpush1.bf16.msra.mxu0 %v5617_v48  ;;  %6990 = vst [vmem:[#allocation23_spill] sm:$0xff] %v5660_v2  ;;  %v411_v8 = vld [vmem:[#allocation8 + $0xe0] sm:$0xff]  ;;  %v413_v21 = vld [vmem:[#allocation8 + $0xf0] sm:$0xff]  ;;  %v420_v34 = vld [vmem:[#allocation8 + $0x128] sm:$0xff] }
  0x6e   :  { %3549 = vmatprep.subr.bf16.mxu0 %v5620_v53  ;;  %3547 = vmatpush1.bf16.msra.mxu1 %v5623_v59  ;;  %6991 = vst [vmem:[#allocation24_spill] sm:$0xff] %v5663_v10  ;;  %6992 = vst [vmem:[#allocation25_spill] sm:$0xff] %v5666_v15  ;;  %v5669_v24 = vpack.c.bf16 %v411_v8, %v407_v4  ;;  %v5673_v28 = vpack.c.bf16 %v413_v21, %v409_v17  ;;  %v418_v37 = vld [vmem:[#allocation8 + $0x118] sm:$0xff]  ;;  %v415_v50 = vld [vmem:[#allocation8 + $0x100] sm:$0xff]  ;;  %v5689_v17 = vshrl.u32 %v123_v41, 7 }
  0x6f   :  { %3613 = vmatprep.subr.bf16.mxu1 %v5626_v62  ;;  %v5678_v45 = vpack.c.bf16 %v420_v34, %v416_v30  ;;  %v422_v49 = vld [vmem:[#allocation8 + $0x138] sm:$0xff]  ;;  %v419_v55 = vld [vmem:[#allocation8 + $0x120] sm:$0xff]  ;;  %v417_v0 = vld [vmem:[#allocation8 + $0x110] sm:$0xff] }
  0x70   :  { %602 = vmatmul.mubr.f32.vlgmr.msra.gmra.mrb[0].mxu0 %v6842_v1  ;;  %6993 = vst [vmem:[#allocation26_spill] sm:$0xff] %v5669_v24  ;;  %6994 = vst [vmem:[#allocation27_spill] sm:$0xff] %v5673_v28  ;;  %v5680_v56 = vpack.c.bf16 %v422_v49, %v418_v37  ;;  %v5682_v61 = vpack.c.bf16 %v419_v55, %v415_v50  ;;  %v421_v4 = vld [vmem:[#allocation8 + $0x130] sm:$0xff]  ;;  %v424_v21 = vld [vmem:[#allocation8 + $0x148] sm:$0xff] }
  0x71   :  { %3551 = vmatpush1.bf16.msra.mxu0 %v5629_v6  ;;  %771 = vmatprep.mubr.f32.mxu0 %v6842_v1  ;;  %6995 = vst [vmem:[#allocation28_spill] sm:$0xff] %v5678_v45  ;;  %v5685_v8 = vpack.c.bf16 %v421_v4, %v417_v0  ;;  %v428_v30 = vld [vmem:[#allocation8 + $0x168] sm:$0xff]  ;;  %v426_v34 = vld [vmem:[#allocation8 + $0x158] sm:$0xff]  ;;  %v423_v50 = vld [vmem:[#allocation8 + $0x140] sm:$0xff] }
  0x72   :  { %673 = vmatmul.mubr.f32.vlgmr.msra.gmra.mrb[0].mxu1 %v6842_v1  ;;  %3553 = vmatprep.subr.bf16.mxu0 %v5632_v12  ;;  %6996 = vst [vmem:[#allocation29_spill] sm:$0xff] %v5680_v56  ;;  %6997 = vst [vmem:[#allocation30_spill] sm:$0xff] %v5682_v61  ;;  %v5692_v37 = vpack.c.bf16 %v428_v30, %v424_v21  ;;  %v430_v49 = vld [vmem:[#allocation8 + $0x178] sm:$0xff]  ;;  %v427_v55 = vld [vmem:[#allocation8 + $0x160] sm:$0xff] }
  0x73   :  { %3615 = vmatpush1.bf16.msra.mxu1 %v5635_v19  ;;  %842 = vmatprep.mubr.f32.mxu1 %v6842_v1  ;;  %6998 = vst [vmem:[#allocation31_spill] sm:$0xff] %v5685_v8  ;;  %v5694_v1 = vpack.c.bf16 %v430_v49, %v426_v34  ;;  %v5696_v0 = vpack.c.bf16 %v427_v55, %v423_v50  ;;  %v425_v4 = vld [vmem:[#allocation8 + $0x150] sm:$0xff]  ;;  %v432_v21 = vld [vmem:[#allocation8 + $0x188] sm:$0xff]  ;;  %v434_v34 = vld [vmem:[#allocation8 + $0x198] sm:$0xff] }
  0x74   :  { %3617 = vmatprep.subr.bf16.mxu1 %v5639_v26  ;;  %6999 = vst [vmem:[#allocation32_spill] sm:$0xff] %v5692_v37  ;;  %v436_v30 = vld [vmem:[#allocation8 + $0x1a8] sm:$0xff]  ;;  %v438_v50 = vld [vmem:[#allocation8 + $0x1b8] sm:$0xff]  ;;  %v435_v55 = vld [vmem:[#allocation8 + $0x1a0] sm:$0xff] }
  0x75   :  { %3555 = vmatpush1.bf16.msra.mxu0 %v5642_v32  ;;  %7000 = vst [vmem:[#allocation33_spill] sm:$0xff] %v5694_v1  ;;  %7001 = vst [vmem:[#allocation34_spill] sm:$0xff] %v5696_v0  ;;  %v5710_v49 = vpack.c.bf16 %v436_v30, %v432_v21  ;;  %v5726_v30 = vsub.s32 2, %v5689_v17 }
  0x76   :  { %3557 = vmatprep.subr.bf16.mxu0 %v5647_v39 }
  0x77   :  { %3619 = vmatpush1.bf16.msra.mxu1 %v5650_v46  ;;  %7005 = vst [vmem:[#allocation38_spill] sm:$0xff] %v5710_v49  ;;  %7009 = vst [vmem:[#allocation42_spill] sm:$0xff] %v5726_v30 }
  0x78   :  { %3621 = vmatprep.subr.bf16.mxu1 %v5654_v52 }
  0x79   :  { %3559 = vmatpush1.bf16.msra.mxu0 %v5657_v58  ;;  %v5742_v58 = vsub.s32 3, %v5689_v17 }
  0x7a   :  { %3561 = vmatprep.subr.bf16.mxu0 %v5660_v2  ;;  %v441_v2 = vld [vmem:[#allocation8 + $0x1d0] sm:$0xff] }
  0x7b   :  { %3623 = vmatpush1.bf16.msra.mxu1 %v5663_v10  ;;  %v445_v10 = vld [vmem:[#allocation8 + $0x1f0] sm:$0xff]  ;;  %7014 = vst [vmem:[#allocation47_spill] sm:$0xff] %v5742_v58 }
  0x7c   :  { %3625 = vmatprep.subr.bf16.mxu1 %v5666_v15 }
  0x7d   :  { %3563 = vmatpush1.bf16.msra.mxu0 %v5669_v24 }
  0x7e   :  { %3565 = vmatprep.subr.bf16.mxu0 %v5678_v45  ;;  %v433_v45 = vld [vmem:[#allocation8 + $0x190] sm:$0xff] }
  0x7f   :  { %3627 = vmatpush1.bf16.msra.mxu1 %v5673_v28  ;;  %v437_v28 = vld [vmem:[#allocation8 + $0x1b0] sm:$0xff] }
  0x80   :  { %3629 = vmatprep.subr.bf16.mxu1 %v5680_v56  ;;  %v429_v56 = vld [vmem:[#allocation8 + $0x170] sm:$0xff] }
  0x81   :  { %3567 = vmatpush1.bf16.msra.mxu0 %v5682_v61  ;;  %v5699_v41 = vpack.c.bf16 %v429_v56, %v425_v4  ;;  %v5705_v61 = vsub.s32 0, %v5689_v17  ;;  %v431_v56 = vld [vmem:[#allocation8 + $0x180] sm:$0xff]  ;;  %v5712_v4 = vpack.c.bf16 %v438_v50, %v434_v34  ;;  %v440_v34 = vld [vmem:[#allocation8 + $0x1c8] sm:$0xff] }
  0x82   :  { %3569 = vmatprep.subr.bf16.mxu0 %v5692_v37  ;;  %v5714_v37 = vpack.c.bf16 %v435_v55, %v431_v56  ;;  %v444_v50 = vld [vmem:[#allocation8 + $0x1e8] sm:$0xff]  ;;  %v442_v56 = vld [vmem:[#allocation8 + $0x1d8] sm:$0xff] }
  0x83   :  { %3631 = vmatpush1.bf16.msra.mxu1 %v5685_v8  ;;  %7002 = vst [vmem:[#allocation35_spill] sm:$0xff] %v5699_v41  ;;  %v5702_v8 = vsub.s32 1, %v5689_v17  ;;  %7004 = vst [vmem:[#allocation37_spill] sm:$0xff] %v5705_v61  ;;  %v446_v55 = vld [vmem:[#allocation8 + $0x1f8] sm:$0xff] }
  0x84   :  { %3633 = vmatprep.subr.bf16.mxu1 %v5694_v1  ;;  %7006 = vst [vmem:[#allocation39_spill] sm:$0xff] %v5712_v4  ;;  %7007 = vst [vmem:[#allocation40_spill] sm:$0xff] %v5714_v37  ;;  %v5732_v1 = vpack.c.bf16 %v446_v55, %v442_v56 }
  0x85   :  { %7003 = vst [vmem:[#allocation36_spill] sm:$0xff] %v5702_v8  ;;  %3571 = vmatpush1.bf16.msra.mxu0 %v5696_v0  ;;  %v5719_v0 = vpack.c.bf16 %v437_v28, %v433_v45  ;;  %v443_v28 = vld [vmem:[#allocation8 + $0x1e0] sm:$0xff]  ;;  %v5730_v45 = vpack.c.bf16 %v444_v50, %v440_v34  ;;  %v454_v50 = vld [vmem:[#allocation8 + $0x238] sm:$0xff] }
  0x86   :  { %3573 = vmatprep.subr.bf16.mxu0 %v5710_v49  ;;  %v439_v49 = vld [vmem:[#allocation8 + $0x1c0] sm:$0xff]  ;;  %7011 = vst [vmem:[#allocation44_spill] sm:$0xff] %v5732_v1 }
  0x87   :  { %3635 = vmatpush1.bf16.msra.mxu1 %v5699_v41  ;;  %7008 = vst [vmem:[#allocation41_spill] sm:$0xff] %v5719_v0  ;;  %7010 = vst [vmem:[#allocation43_spill] sm:$0xff] %v5730_v45  ;;  %v5734_v15 = vpack.c.bf16 %v443_v28, %v439_v49  ;;  %v450_v49 = vld [vmem:[#allocation8 + $0x218] sm:$0xff]  ;;  %v449_v28 = vld [vmem:[#allocation8 + $0x210] sm:$0xff] }
  0x88   :  { %3637 = vmatprep.subr.bf16.mxu1 %v5712_v4  ;;  %v5737_v4 = vpack.c.bf16 %v445_v10, %v441_v2  ;;  %v447_v2 = vld [vmem:[#allocation8 + $0x200] sm:$0xff]  ;;  %v5749_v56 = vpack.c.bf16 %v454_v50, %v450_v49  ;;  %v460_v49 = vld [vmem:[#allocation8 + $0x268] sm:$0xff]  ;;  %v458_v50 = vld [vmem:[#allocation8 + $0x258] sm:$0xff] }
  0x89   :  { %3575 = vmatpush1.bf16.msra.mxu0 %v5714_v37  ;;  %7012 = vst [vmem:[#allocation45_spill] sm:$0xff] %v5734_v15  ;;  %v451_v10 = vld [vmem:[#allocation8 + $0x220] sm:$0xff] }
  0x8a   :  { %7013 = vst [vmem:[#allocation46_spill] sm:$0xff] %v5737_v4  ;;  %3577 = vmatprep.subr.bf16.mxu0 %v5730_v45  ;;  %7016 = vst [vmem:[#allocation49_spill] sm:$0xff] %v5749_v56  ;;  %v5751_v55 = vpack.c.bf16 %v451_v10, %v447_v2  ;;  %v462_v10 = vld [vmem:[#allocation8 + $0x278] sm:$0xff]  ;;  %v461_v45 = vld [vmem:[#allocation8 + $0x270] sm:$0xff] }
  0x8b   :  { %3639 = vmatpush1.bf16.msra.mxu1 %v5719_v0  ;;  %v453_v0 = vld [vmem:[#allocation8 + $0x230] sm:$0xff] }
  0x8c   :  { %3641 = vmatprep.subr.bf16.mxu1 %v5732_v1  ;;  %7017 = vst [vmem:[#allocation50_spill] sm:$0xff] %v5751_v55  ;;  %v5755_v1 = vpack.c.bf16 %v453_v0, %v449_v28  ;;  %v5764_v0 = vpack.c.bf16 %v462_v10, %v458_v50  ;;  %v466_v50 = vld [vmem:[#allocation8 + $0x298] sm:$0xff]  ;;  %v463_v10 = vld [vmem:[#allocation8 + $0x280] sm:$0xff] }
  0x8d   :  { %3579 = vmatpush1.bf16.msra.mxu0 %v5734_v15  ;;  %v459_v15 = vld [vmem:[#allocation8 + $0x260] sm:$0xff] }
  0x8e   :  { %7018 = vst [vmem:[#allocation51_spill] sm:$0xff] %v5755_v1  ;;  %7020 = vst [vmem:[#allocation53_spill] sm:$0xff] %v5764_v0 }
  0x8f   :  { %3643 = vmatpush1.bf16.msra.mxu1 %v5737_v4  ;;  %v455_v4 = vld [vmem:[#allocation8 + $0x240] sm:$0xff] }
  0x90   :  { %3645 = vmatprep.subr.bf16.mxu1 %v5749_v56  ;;  %v5766_v28 = vpack.c.bf16 %v459_v15, %v455_v4  ;;  %v470_v4 = vld [vmem:[#allocation8 + $0x2b8] sm:$0xff] }
  0x92   :  { %7021 = vst [vmem:[#allocation54_spill] sm:$0xff] %v5766_v28 }
  0x93   :  { %3647 = vmatpush1.bf16.msra.mxu1 %v5755_v1  ;;  %v467_v1 = vld [vmem:[#allocation8 + $0x2a0] sm:$0xff] }
  0x94   :  { %3649 = vmatprep.subr.bf16.mxu1 %v5764_v0 }
  0xce   :  { %v5716_v24 = vpop.trf.xlu0 }
  0xcf   :  { %v133_v41 = vrot.slane %v5716_v24, %v5702_v8  ;;  %v126_v21 = vrot.slane %v5716_v24, %v5705_v61  ;;  %v140_v37 = vrot.slane %v5716_v24, %v5726_v30 }
  0xd1   :  { %135 = vbcast.lane.b32.xlu1 %v133_v41, 256  ;;  %128 = vbcast.lane.b32.xlu0 %v126_v21, 256  ;;  %v448_v41 = vld [vmem:[#allocation8 + $0x208] sm:$0xff] }
  0xd2   :  { %v452_v21 = vld [vmem:[#allocation8 + $0x228] sm:$0xff] }
  0xd3   :  { %v5747_v34 = vpack.c.bf16 %v452_v21, %v448_v41  ;;  %v147_v41 = vrot.slane %v5716_v24, %v5742_v58  ;;  %v153_v21 = vsub.s32 4, %v5689_v17 }
  0xd5   :  { %7015 = vst [vmem:[#allocation48_spill] sm:$0xff] %v5747_v34  ;;  %142 = vbcast.lane.b32.xlu1 %v140_v37, 256  ;;  %3581 = vmatprep.subr.bf16.mxu0 %v5747_v34  ;;  %v456_v37 = vld [vmem:[#allocation8 + $0x248] sm:$0xff]  ;;  %v457_v34 = vld [vmem:[#allocation8 + $0x250] sm:$0xff] }
  0xd6   :  { %3583 = vmatpush1.bf16.msra.mxu0 %v5751_v55  ;;  %v5762_v2 = vpack.c.bf16 %v460_v49, %v456_v37  ;;  %v5770_v56 = vpack.c.bf16 %v461_v45, %v457_v34  ;;  %v154_v55 = vrot.slane %v5716_v24, %v153_v21  ;;  %v160_v37 = vsub.s32 5, %v5689_v17  ;;  %v464_v49 = vld [vmem:[#allocation8 + $0x288] sm:$0xff]  ;;  %v465_v34 = vld [vmem:[#allocation8 + $0x290] sm:$0xff] }
  0xd7   :  { %v5780_v45 = vpack.c.bf16 %v467_v1, %v463_v10  ;;  %v469_v21 = vld [vmem:[#allocation8 + $0x2b0] sm:$0xff]  ;;  %v471_v10 = vld [vmem:[#allocation8 + $0x2c0] sm:$0xff] }
  0xd8   :  { %7019 = vst [vmem:[#allocation52_spill] sm:$0xff] %v5762_v2  ;;  %3585 = vmatprep.subr.bf16.mxu0 %v5762_v2  ;;  %7022 = vst [vmem:[#allocation55_spill] sm:$0xff] %v5770_v56  ;;  %v5778_v2 = vpack.c.bf16 %v470_v4, %v466_v50  ;;  %3651 = vmatpush1.bf16.msra.mxu1 %v5770_v56  ;;  %v5784_v0 = vpack.c.bf16 %v469_v21, %v465_v34  ;;  %v474_v50 = vld [vmem:[#allocation8 + $0x2d8] sm:$0xff]  ;;  %v475_v56 = vld [vmem:[#allocation8 + $0x2e0] sm:$0xff] }
  0xd9   :  { %149 = vbcast.lane.b32.xlu1 %v147_v41, 256  ;;  %v468_v41 = vld [vmem:[#allocation8 + $0x2a8] sm:$0xff]  ;;  %7025 = vst [vmem:[#allocation58_spill] sm:$0xff] %v5780_v45  ;;  %v478_v4 = vld [vmem:[#allocation8 + $0x2f8] sm:$0xff]  ;;  %v5794_v34 = vpack.c.bf16 %v475_v56, %v471_v10  ;;  %v477_v21 = vld [vmem:[#allocation8 + $0x2f0] sm:$0xff] }
  0xda   :  { %3587 = vmatpush1.bf16.msra.mxu0 %v5766_v28  ;;  %v5776_v15 = vpack.c.bf16 %v468_v41, %v464_v49  ;;  %7024 = vst [vmem:[#allocation57_spill] sm:$0xff] %v5778_v2  ;;  %7026 = vst [vmem:[#allocation59_spill] sm:$0xff] %v5784_v0  ;;  %v161_v28 = vrot.slane %v5716_v24, %v160_v37  ;;  %v167_v49 = vsub.s32 6, %v5689_v17  ;;  %3653 = vmatprep.subr.bf16.mxu1 %v5778_v2  ;;  %v472_v41 = vld [vmem:[#allocation8 + $0x2c8] sm:$0xff]  ;;  %v473_v37 = vld [vmem:[#allocation8 + $0x2d0] sm:$0xff] }
  0xdb   :  { %7029 = vst [vmem:[#allocation62_spill] sm:$0xff] %v5794_v34  ;;  %v5798_v2 = vpack.c.bf16 %v477_v21, %v473_v37  ;;  %v479_v10 = vld [vmem:[#allocation8 + $0x300] sm:$0xff]  ;;  %v485_v21 = vld [vmem:[#allocation8 + $0x330] sm:$0xff] }
  0xdc   :  { %7023 = vst [vmem:[#allocation56_spill] sm:$0xff] %v5776_v15  ;;  %3589 = vmatprep.subr.bf16.mxu0 %v5776_v15  ;;  %v5792_v15 = vpack.c.bf16 %v478_v4, %v474_v50  ;;  %3655 = vmatpush1.bf16.msra.mxu1 %v5784_v0  ;;  %v482_v50 = vld [vmem:[#allocation8 + $0x318] sm:$0xff]  ;;  %v483_v0 = vld [vmem:[#allocation8 + $0x320] sm:$0xff] }
  0xdd   :  { %156 = vbcast.lane.b32.xlu1 %v154_v55, 256  ;;  %v476_v55 = vld [vmem:[#allocation8 + $0x2e8] sm:$0xff]  ;;  %7030 = vst [vmem:[#allocation63_spill] sm:$0xff] %v5798_v2  ;;  %v486_v4 = vld [vmem:[#allocation8 + $0x338] sm:$0xff]  ;;  %v5808_v37 = vpack.c.bf16 %v483_v0, %v479_v10 }
  0xde   :  { %3591 = vmatpush1.bf16.msra.mxu0 %v5780_v45  ;;  %v5790_v1 = vpack.c.bf16 %v476_v55, %v472_v41  ;;  %7028 = vst [vmem:[#allocation61_spill] sm:$0xff] %v5792_v15  ;;  %v168_v45 = vrot.slane %v5716_v24, %v167_v49  ;;  %v174_v41 = vsub.s32 7, %v5689_v17  ;;  %3657 = vmatprep.subr.bf16.mxu1 %v5792_v15  ;;  %v480_v55 = vld [vmem:[#allocation8 + $0x308] sm:$0xff]  ;;  %v481_v49 = vld [vmem:[#allocation8 + $0x310] sm:$0xff]  ;;  %v490_v15 = vld [vmem:[#allocation8 + $0x358] sm:$0xff] }
  0xdf   :  { %7033 = vst [vmem:[#allocation66_spill] sm:$0xff] %v5808_v37  ;;  %v5812_v17 = vpack.c.bf16 %v485_v21, %v481_v49  ;;  %v494_v0 = vld [vmem:[#allocation8 + $0x378] sm:$0xff]  ;;  %v489_v49 = vld [vmem:[#allocation8 + $0x350] sm:$0xff] }
  0xe0   :  { %7027 = vst [vmem:[#allocation60_spill] sm:$0xff] %v5790_v1  ;;  %3593 = vmatprep.subr.bf16.mxu0 %v5790_v1  ;;  %v5806_v1 = vpack.c.bf16 %v486_v4, %v482_v50  ;;  %3659 = vmatpush1.bf16.msra.mxu1 %v5798_v2  ;;  %v487_v50 = vld [vmem:[#allocation8 + $0x340] sm:$0xff]  ;;  %v5819_v10 = vpack.c.bf16 %v494_v0, %v490_v15  ;;  %v493_v21 = vld [vmem:[#allocation8 + $0x370] sm:$0xff]  ;;  %v506_v2 = vld [vmem:[#allocation8 + $0x3d8] sm:$0xff] }
  0xe1   :  { %163 = vbcast.lane.b32.xlu1 %v161_v28, 256  ;;  %v484_v28 = vld [vmem:[#allocation8 + $0x328] sm:$0xff]  ;;  %7034 = vst [vmem:[#allocation67_spill] sm:$0xff] %v5812_v17  ;;  %v491_v4 = vld [vmem:[#allocation8 + $0x360] sm:$0xff] }
  0xe2   :  { %3595 = vmatpush1.bf16.msra.mxu0 %v5794_v34  ;;  %v5804_v56 = vpack.c.bf16 %v484_v28, %v480_v55  ;;  %7032 = vst [vmem:[#allocation65_spill] sm:$0xff] %v5806_v1  ;;  %v175_v34 = vrot.slane %v5716_v24, %v174_v41  ;;  %3661 = vmatprep.subr.bf16.mxu1 %v5806_v1  ;;  %v488_v55 = vld [vmem:[#allocation8 + $0x348] sm:$0xff]  ;;  %7036 = vst [vmem:[#allocation69_spill] sm:$0xff] %v5819_v10  ;;  %v499_v0 = vld [vmem:[#allocation8 + $0x3a0] sm:$0xff] }
  0xe3   :  { %v492_v28 = vld [vmem:[#allocation8 + $0x368] sm:$0xff]  ;;  %v5825_v41 = vpack.c.bf16 %v493_v21, %v489_v49 }
  0xe4   :  { %7031 = vst [vmem:[#allocation64_spill] sm:$0xff] %v5804_v56  ;;  %3597 = vmatprep.subr.bf16.mxu0 %v5804_v56  ;;  %v5821_v56 = vpack.c.bf16 %v491_v4, %v487_v50  ;;  %v496_v24 = vld [vmem:[#allocation8 + $0x388] sm:$0xff]  ;;  %3663 = vmatpush1.bf16.msra.mxu1 %v5812_v17  ;;  %v497_v50 = vld [vmem:[#allocation8 + $0x390] sm:$0xff] }
  0xe5   :  { %170 = vbcast.lane.b32.xlu1 %v168_v45, 256  ;;  %v5817_v45 = vpack.c.bf16 %v492_v28, %v488_v55  ;;  %7038 = vst [vmem:[#allocation71_spill] sm:$0xff] %v5825_v41  ;;  %v498_v55 = vld [vmem:[#allocation8 + $0x398] sm:$0xff]  ;;  %3665 = vmatprep.subr.bf16.mxu1 %v5819_v10  ;;  %v501_v17 = vld [vmem:[#allocation8 + $0x3b0] sm:$0xff]  ;;  %v508_v49 = vld [vmem:[#allocation8 + $0x3e8] sm:$0xff] }
  0xe6   :  { %3599 = vmatpush1.bf16.msra.mxu0 %v5808_v37  ;;  %7037 = vst [vmem:[#allocation70_spill] sm:$0xff] %v5821_v56  ;;  %v500_v37 = vld [vmem:[#allocation8 + $0x3a8] sm:$0xff]  ;;  %v502_v28 = vld [vmem:[#allocation8 + $0x3b8] sm:$0xff] }
  0xe7   :  { %7035 = vst [vmem:[#allocation68_spill] sm:$0xff] %v5817_v45  ;;  %3601 = vmatprep.subr.bf16.mxu0 %v5817_v45  ;;  %v5828_v1 = vpack.c.bf16 %v500_v37, %v496_v24  ;;  %v5830_v15 = vpack.c.bf16 %v502_v28, %v498_v55  ;;  %v504_v45 = vld [vmem:[#allocation8 + $0x3c8] sm:$0xff]  ;;  %v510_v10 = vld [vmem:[#allocation8 + $0x3f8] sm:$0xff]  ;;  %v503_v37 = vld [vmem:[#allocation8 + $0x3c0] sm:$0xff]  ;;  %v5839_v24 = vpack.c.bf16 %v501_v17, %v497_v50 }
  0xe8   :  { %v5836_v21 = vpack.c.bf16 %v508_v49, %v504_v45  ;;  %3667 = vmatpush1.bf16.msra.mxu1 %v5825_v41  ;;  %v507_v55 = vld [vmem:[#allocation8 + $0x3e0] sm:$0xff]  ;;  %v5842_v28 = vpack.c.bf16 %v510_v10, %v506_v2  ;;  %v179_v2 = vld [vmem:[%s6832_s1] sm:$0xf] }
  0xe9   :  { %177 = vbcast.lane.b32.xlu1 %v175_v34, 256  ;;  %7039 = vst [vmem:[#allocation72_spill] sm:$0xff] %v5828_v1  ;;  %7040 = vst [vmem:[#allocation73_spill] sm:$0xff] %v5830_v15  ;;  %v495_v34 = vld [vmem:[#allocation8 + $0x380] sm:$0xff]  ;;  %3669 = vmatprep.subr.bf16.mxu1 %v5830_v15  ;;  %v233_v17 = vld [vmem:[%s6834_s3] sm:$0xf]  ;;  %v5863_v10 = vrot.slane %v179_v2, %v5702_v8  ;;  %v5866_v50 = vrot.slane %v179_v2, %v5705_v61 }
  0xea   :  { %3603 = vmatpush1.bf16.msra.mxu0 %v5821_v56  ;;  %v5833_v4 = vpack.c.bf16 %v499_v0, %v495_v34  ;;  %7042 = vst [vmem:[#allocation75_spill] sm:$0xff] %v5836_v21  ;;  %7043 = vst [vmem:[#allocation76_spill] sm:$0xff] %v5839_v24  ;;  %v505_v34 = vld [vmem:[#allocation8 + $0x3d0] sm:$0xff]  ;;  %v5845_v56 = vpack.c.bf16 %v507_v55, %v503_v37  ;;  %v5869_v49 = vrot.slane %v179_v2, %v5726_v30 }
  0xeb   :  { %3605 = vmatprep.subr.bf16.mxu0 %v5828_v1  ;;  %7044 = vst [vmem:[#allocation77_spill] sm:$0xff] %v5842_v28  ;;  %v509_v0 = vld [vmem:[#allocation8 + $0x3f0] sm:$0xff]  ;;  %v5872_v37 = vrot.slane %v179_v2, %v5742_v58  ;;  %v5875_v55 = vrot.slane %v233_v17, %v5702_v8 }
  0xec   :  { %7041 = vst [vmem:[#allocation74_spill] sm:$0xff] %v5833_v4  ;;  %7045 = vst [vmem:[#allocation78_spill] sm:$0xff] %v5845_v56  ;;  %3671 = vmatpush1.bf16.msra.mxu1 %v5839_v24  ;;  %v5849_v45 = vpack.c.bf16 %v509_v0, %v505_v34  ;;  %v5878_v34 = vrot.slane %v233_v17, %v5705_v61  ;;  %v5881_v0 = vrot.slane %v233_v17, %v5726_v30 }
  0xed   :  { %3673 = vmatprep.subr.bf16.mxu1 %v5842_v28 }
  0xee   :  { %3607 = vmatpush1.bf16.msra.mxu0 %v5833_v4  ;;  %7046 = vst [vmem:[#allocation79_spill] sm:$0xff] %v5849_v45 }
  0xef   :  { %3609 = vmatprep.subr.bf16.mxu0 %v5836_v21 }
  0xf0   :  { %3675 = vmatpush1.bf16.msra.mxu1 %v5849_v45 }
  0xf1   :  { %3709 = vmatprep.subr.bf16.mxu1 %v5535_v13  ;;  %v5884_v13 = vrot.slane %v233_v17, %v5742_v58 }
  0xf2   :  { %3611 = vmatpush1.bf16.msra.mxu0 %v5845_v56 }
  0xf3   :  { %3677 = vmatprep.subr.bf16.mxu0 %v5530_v5 }
 0x143   :  { %v136_v5 = vpop.permute.xlu1 %135  ;;  %v129_v45 = vpop.permute.xlu0 %128 }
 0x144   :  { %v201_v56 = vmul.f32 %v5866_v50, %v129_v45  ;;  %v202_v28 = vmul.f32 %v5863_v10, %v129_v45  ;;  %v603_v2 = vpop.f32.mrb[0].mxu0  ;;  %v205_v8 = vmul.f32 %v5866_v50, %v136_v5  ;;  %v207_v61 = vmul.f32 %v5869_v49, %v136_v5 }
 0x145   :  { %v605_v21 = vpop.f32.mrb[1].mxu0  ;;  %v674_v24 = vpop.f32.mrb[0].mxu1  ;;  %v206_v4 = vmul.f32 %v5863_v10, %v136_v5  ;;  %v208_v30 = vmul.f32 %v5872_v37, %v136_v5  ;;  %v204_v17 = vmul.f32 %v5872_v37, %v129_v45  ;;  %v203_v5 = vmul.f32 %v5869_v49, %v129_v45 }
 0x146   :  { %v255_v58 = vadd.f32 %v5878_v34, %v201_v56  ;;  %v256_v15 = vadd.f32 %v5875_v55, %v202_v28  ;;  %v676_v1 = vpop.f32.mrb[1].mxu1  ;;  %v5896_v52 = vadd.f32 %v5878_v34, %v205_v8  ;;  %v5899_v39 = vadd.f32 %v5881_v0, %v207_v61 }
 0x147   :  { %v143_v41 = vpop.permute.xlu1 %142  ;;  %v5902_v46 = vadd.f32 %v5875_v55, %v206_v4  ;;  %v5905_v32 = vadd.f32 %v5884_v13, %v208_v30  ;;  %v258_v4 = vadd.f32 %v5884_v13, %v204_v17 }
 0x148   :  { %7047 = vst [vmem:[#allocation80_spill] sm:$0xff] %v5896_v52  ;;  %7048 = vst [vmem:[#allocation81_spill] sm:$0xff] %v5899_v39  ;;  %v679_v26 = vadd.f32 %v603_v2, %v255_v58  ;;  %v680_v56 = vadd.f32 %v605_v21, %v256_v15  ;;  %v209_v28 = vmul.f32 %v5866_v50, %v143_v41 }
 0x149   :  { %7049 = vst [vmem:[#allocation82_spill] sm:$0xff] %v5902_v46  ;;  %v211_v12 = vmul.f32 %v5869_v49, %v143_v41  ;;  %v210_v8 = vmul.f32 %v5863_v10, %v143_v41  ;;  %v212_v52 = vmul.f32 %v5872_v37, %v143_v41  ;;  %v257_v2 = vadd.f32 %v5881_v0, %v203_v5 }
 0x14a   :  { %v3381_v61 = vmul.f32 -1.442695, %v679_v26  ;;  %v3382_v39 = vmul.f32 -1.442695, %v680_v56  ;;  %v5914_v30 = vadd.f32 %v5878_v34, %v209_v28  ;;  %v682_v28 = vadd.f32 %v676_v1, %v258_v4 }
 0x14b   :  { %v150_v46 = vpop.permute.xlu1 %149  ;;  %v5917_v45 = vadd.f32 %v5881_v0, %v211_v12  ;;  %v5920_v58 = vadd.f32 %v5875_v55, %v210_v8  ;;  %v5923_v15 = vadd.f32 %v5884_v13, %v212_v52 }
 0x14c   :  { %7050 = vst [vmem:[#allocation83_spill] sm:$0xff] %v5914_v30  ;;  %5055 = vpow2.f32 %v3381_v61  ;;  %v213_v41 = vmul.f32 %v5866_v50, %v150_v46  ;;  %v215_v26 = vmul.f32 %v5869_v49, %v150_v46  ;;  %v214_v21 = vmul.f32 %v5863_v10, %v150_v46  ;;  %v7101_v30 = vld [vmem:[#allocation45_spill] sm:$0xff] }
 0x14d   :  { %7051 = vst [vmem:[#allocation84_spill] sm:$0xff] %v5917_v45  ;;  %7052 = vst [vmem:[#allocation85_spill] sm:$0xff] %v5920_v58  ;;  %5057 = vpow2.f32 %v3382_v39  ;;  %v216_v17 = vmul.f32 %v5872_v37, %v150_v46  ;;  %v7099_v58 = vld [vmem:[#allocation43_spill] sm:$0xff]  ;;  %v7100_v45 = vld [vmem:[#allocation44_spill] sm:$0xff] }
 0x14e   :  { %7053 = vst [vmem:[#allocation86_spill] sm:$0xff] %v5923_v15  ;;  %v5931_v12 = vadd.f32 %v5878_v34, %v213_v41  ;;  %v5934_v56 = vadd.f32 %v5881_v0, %v215_v26  ;;  %v5937_v52 = vadd.f32 %v5875_v55, %v214_v21  ;;  %v7098_v15 = vld [vmem:[#allocation41_spill] sm:$0xff] }
 0x14f   :  { %v157_v8 = vpop.permute.xlu1 %156  ;;  %v5940_v61 = vadd.f32 %v5884_v13, %v216_v17  ;;  %v3383_v17 = vmul.f32 -1.442695, %v682_v28 }
 0x150   :  { %7054 = vst [vmem:[#allocation87_spill] sm:$0xff] %v5931_v12  ;;  %7055 = vst [vmem:[#allocation88_spill] sm:$0xff] %v5934_v56  ;;  %v217_v39 = vmul.f32 %v5866_v50, %v157_v8  ;;  %v219_v5 = vmul.f32 %v5869_v49, %v157_v8  ;;  %v218_v46 = vmul.f32 %v5863_v10, %v157_v8 }
 0x151   :  { %7056 = vst [vmem:[#allocation89_spill] sm:$0xff] %v5937_v52  ;;  %7057 = vst [vmem:[#allocation90_spill] sm:$0xff] %v5940_v61  ;;  %v220_v41 = vmul.f32 %v5872_v37, %v157_v8  ;;  %v681_v12 = vadd.f32 %v674_v24, %v257_v2 }
 0x152   :  { %v5947_v26 = vadd.f32 %v5878_v34, %v217_v39  ;;  %v5950_v21 = vadd.f32 %v5881_v0, %v219_v5  ;;  %v5953_v1 = vadd.f32 %v5875_v55, %v218_v46 }
 0x153   :  { %v5956_v4 = vadd.f32 %v5884_v13, %v220_v41  ;;  %v164_v61 = vpop.permute.xlu1 %163  ;;  %5059 = vtanh.f32 %v681_v12 }
 0x154   :  { %7058 = vst [vmem:[#allocation91_spill] sm:$0xff] %v5947_v26  ;;  %7059 = vst [vmem:[#allocation92_spill] sm:$0xff] %v5950_v21  ;;  %v221_v52 = vmul.f32 %v5866_v50, %v164_v61  ;;  %v223_v56 = vmul.f32 %v5869_v49, %v164_v61  ;;  %v222_v24 = vmul.f32 %v5863_v10, %v164_v61  ;;  %5061 = vpow2.f32 %v3383_v17  ;;  %v7097_v26 = vld [vmem:[#allocation40_spill] sm:$0xff] }
 0x155   :  { %7060 = vst [vmem:[#allocation93_spill] sm:$0xff] %v5953_v1  ;;  %7061 = vst [vmem:[#allocation94_spill] sm:$0xff] %v5956_v4  ;;  %v224_v2 = vmul.f32 %v5872_v37, %v164_v61 }
 0x156   :  { %v5056_v8 = vpop.eup %5055  ;;  %v5963_v39 = vadd.f32 %v5878_v34, %v221_v52  ;;  %v5966_v5 = vadd.f32 %v5881_v0, %v223_v56  ;;  %v5969_v46 = vadd.f32 %v5875_v55, %v222_v24 }
 0x157   :  { %v5972_v28 = vadd.f32 %v5884_v13, %v224_v2  ;;  %v5058_v41 = vpop.eup %5057  ;;  %v686_v4 = vadd.f32 1.0, %v5056_v8  ;;  %v171_v1 = vpop.permute.xlu1 %170 }
 0x158   :  { %7062 = vst [vmem:[#allocation95_spill] sm:$0xff] %v5963_v39  ;;  %7063 = vst [vmem:[#allocation96_spill] sm:$0xff] %v5966_v5  ;;  %v692_v21 = vadd.f32 1.0, %v5058_v41  ;;  %v225_v12 = vmul.f32 %v5866_v50, %v171_v1  ;;  %v227_v61 = vmul.f32 %v5869_v49, %v171_v1  ;;  %v226_v52 = vmul.f32 %v5863_v10, %v171_v1  ;;  %v7095_v5 = vld [vmem:[#allocation38_spill] sm:$0xff]  ;;  %v7096_v39 = vld [vmem:[#allocation39_spill] sm:$0xff] }
 0x159   :  { %7064 = vst [vmem:[#allocation97_spill] sm:$0xff] %v5969_v46  ;;  %7065 = vst [vmem:[#allocation98_spill] sm:$0xff] %v5972_v28  ;;  %5063 = vrcp.f32 %v686_v4  ;;  %v228_v56 = vmul.f32 %v5872_v37, %v171_v1  ;;  %v7094_v46 = vld [vmem:[#allocation35_spill] sm:$0xff] }
 0x15a   :  { %5065 = vrcp.f32 %v692_v21  ;;  %v5979_v24 = vadd.f32 %v5878_v34, %v225_v12  ;;  %v5982_v2 = vadd.f32 %v5881_v0, %v227_v61  ;;  %v5985_v17 = vadd.f32 %v5875_v55, %v226_v52 }
 0x15b   :  { %v178_v8 = vpop.permute.xlu1 %177  ;;  %v5988_v41 = vadd.f32 %v5884_v13, %v228_v56 }
 0x15c   :  { %7066 = vst [vmem:[#allocation99_spill] sm:$0xff] %v5979_v24  ;;  %7067 = vst [vmem:[#allocation100_spill] sm:$0xff] %v5982_v2  ;;  %v229_v28 = vmul.f32 %v5866_v50, %v178_v8  ;;  %v231_v4 = vmul.f32 %v5869_v49, %v178_v8  ;;  %v230_v1 = vmul.f32 %v5863_v10, %v178_v8 }
 0x15d   :  { %7068 = vst [vmem:[#allocation101_spill] sm:$0xff] %v5985_v17  ;;  %7069 = vst [vmem:[#allocation102_spill] sm:$0xff] %v5988_v41  ;;  %v232_v21 = vmul.f32 %v5872_v37, %v178_v8  ;;  %v5060_v41 = vpop.eup %5059  ;;  %v7079_v8 = vld [vmem:[#allocation19_spill] sm:$0xff] }
 0x15e   :  { %v5995_v12 = vadd.f32 %v5878_v34, %v229_v28  ;;  %v5998_v61 = vadd.f32 %v5881_v0, %v231_v4  ;;  %v6001_v52 = vadd.f32 %v5875_v55, %v230_v1  ;;  %v5062_v50 = vpop.eup %5061  ;;  %v7075_v55 = vld [vmem:[#allocation16_spill] sm:$0xff]  ;;  %v7081_v4 = vld [vmem:[#allocation22_spill] sm:$0xff] }
 0x15f   :  { %v6004_v56 = vadd.f32 %v5884_v13, %v232_v21  ;;  %v699_v10 = vadd.f32 1.0, %v5062_v50  ;;  %v7074_v13 = vmov 0.0   ;;  %v7082_v1 = vld [vmem:[#allocation24_spill] sm:$0xff]  ;;  %v7083_v21 = vld [vmem:[#allocation23_spill] sm:$0xff]  ;;  %v7084_v50 = vld [vmem:[#allocation25_spill] sm:$0xff] }
 0x160   :  { %7070 = vst [vmem:[#allocation103_spill] sm:$0xff] %v5995_v12  ;;  %7071 = vst [vmem:[#allocation104_spill] sm:$0xff] %v5998_v61  ;;  %v7092_v61 = vld [vmem:[#allocation33_spill] sm:$0xff]  ;;  %v7093_v12 = vld [vmem:[#allocation34_spill] sm:$0xff] }
 0x161   :  { %7072 = vst [vmem:[#allocation105_spill] sm:$0xff] %v6001_v52  ;;  %7073 = vst [vmem:[#allocation106_spill] sm:$0xff] %v6004_v56  ;;  %5067 = vrcp.f32 %v699_v10  ;;  %v7086_v10 = vld [vmem:[#allocation27_spill] sm:$0xff]  ;;  %v7091_v52 = vld [vmem:[#allocation32_spill] sm:$0xff] }
 0x162   :  { %v7090_v56 = vld [vmem:[#allocation31_spill] sm:$0xff] }
 0x163   :  { %v5064_v17 = vpop.eup %5063 }
 0x164   :  { %v5066_v49 = vpop.eup %5065  ;;  %v703_v2 = vmul.f32 %v5064_v17, %v5060_v41  ;;  %v7078_v17 = vld [vmem:[#allocation20_spill] sm:$0xff]  ;;  %v7080_v41 = vld [vmem:[#allocation21_spill] sm:$0xff] }
 0x165   :  { %v702_v24 = vmul.f32 0.0, %v5066_v49  ;;  %v7085_v49 = vld [vmem:[#allocation26_spill] sm:$0xff] }
 0x167   :  { %v6006_v37 = vadd.f32 %v703_v2, %v702_v24  ;;  %v7076_v24 = vld [vmem:[#allocation17_spill] sm:$0xff]  ;;  %v7077_v2 = vld [vmem:[#allocation18_spill] sm:$0xff] }
 0x169   :  { %5069 = vtanh.f32 %v6006_v37 }
 0x16b   :  { %v5068_v34 = vpop.eup %5067 }
 0x173   :  { %v5070_v0 = vpop.eup %5069 }
 0x174   :  { %v706_v28 = vmul.f32 %v5070_v0, %v5068_v34  ;;  %v7087_v34 = vld [vmem:[#allocation28_spill] sm:$0xff]  ;;  %v7088_v0 = vld [vmem:[#allocation29_spill] sm:$0xff] }
 0x176   :  { %772 = vmatmul.mubr.f32.vlgmr.msra.gmra.mrb[2].mxu0 %v706_v28  ;;  %843 = vmatmul.mubr.f32.vlgmr.msra.gmra.mrb[2].mxu1 %v706_v28 }
 0x177   :  { %3679 = vmatpush1.bf16.msra.mxu0 %v5532_v9  ;;  %3711 = vmatpush1.bf16.msra.mxu1 %v5537_v14 }
 0x178   :  { %3681 = vmatprep.subr.bf16.mxu0 %v5540_v18  ;;  %3713 = vmatprep.subr.bf16.mxu1 %v5545_v23 }
 0x179   :  { %942 = vmatprep.mubr.f32.mxu0 %v7074_v13  ;;  %1013 = vmatprep.mubr.f32.mxu1 %v7074_v13 }
 0x17b   :  { %3683 = vmatpush1.bf16.msra.mxu0 %v5543_v22  ;;  %3715 = vmatpush1.bf16.msra.mxu1 %v5549_v27 }
 0x17c   :  { %3685 = vmatprep.subr.bf16.mxu0 %v5552_v31  ;;  %3717 = vmatprep.subr.bf16.mxu1 %v5557_v36 }
 0x17f   :  { %3687 = vmatpush1.bf16.msra.mxu0 %v5555_v35  ;;  %3719 = vmatpush1.bf16.msra.mxu1 %v5563_v44 }
 0x180   :  { %3689 = vmatprep.subr.bf16.mxu0 %v5560_v40  ;;  %3721 = vmatprep.subr.bf16.mxu1 %v5566_v47 }
 0x183   :  { %3691 = vmatpush1.bf16.msra.mxu0 %v5569_v51  ;;  %3723 = vmatpush1.bf16.msra.mxu1 %v5575_v57 }
 0x184   :  { %3693 = vmatprep.subr.bf16.mxu0 %v5572_v54  ;;  %3725 = vmatprep.subr.bf16.mxu1 %v5578_v60 }
 0x187   :  { %3695 = vmatpush1.bf16.msra.mxu0 %v5581_v63  ;;  %3727 = vmatpush1.bf16.msra.mxu1 %v5587_v7 }
 0x188   :  { %3697 = vmatprep.subr.bf16.mxu0 %v5584_v3  ;;  %3729 = vmatprep.subr.bf16.mxu1 %v5590_v11 }
 0x18b   :  { %3699 = vmatpush1.bf16.msra.mxu0 %v5593_v16  ;;  %3731 = vmatpush1.bf16.msra.mxu1 %v5599_v25 }
 0x18c   :  { %3701 = vmatprep.subr.bf16.mxu0 %v5596_v20  ;;  %3733 = vmatprep.subr.bf16.mxu1 %v5602_v29 }
 0x18f   :  { %3703 = vmatpush1.bf16.msra.mxu0 %v5605_v33  ;;  %3735 = vmatpush1.bf16.msra.mxu1 %v5611_v42 }
 0x190   :  { %3705 = vmatprep.subr.bf16.mxu0 %v5608_v38  ;;  %3737 = vmatprep.subr.bf16.mxu1 %v5614_v43 }
 0x193   :  { %3707 = vmatpush1.bf16.msra.mxu0 %v5617_v48  ;;  %3739 = vmatpush1.bf16.msra.mxu1 %v5623_v59 }
 0x194   :  { %3741 = vmatprep.subr.bf16.mxu0 %v5620_v53  ;;  %3805 = vmatprep.subr.bf16.mxu1 %v5626_v62 }
 0x196   :  { %943 = vmatmul.mubr.f32.vlgmr.msra.gmra.mrb[4].mxu0 %v706_v28  ;;  %1014 = vmatmul.mubr.f32.vlgmr.msra.gmra.mrb[4].mxu1 %v706_v28  ;;  %v7089_v28 = vld [vmem:[#allocation30_spill] sm:$0xff] }
 0x197   :  { %3743 = vmatpush1.bf16.msra.mxu0 %v5629_v6  ;;  %3807 = vmatpush1.bf16.msra.mxu1 %v5635_v19 }
 0x198   :  { %3745 = vmatprep.subr.bf16.mxu0 %v7075_v55  ;;  %3809 = vmatprep.subr.bf16.mxu1 %v7076_v24 }
 0x19b   :  { %3747 = vmatpush1.bf16.msra.mxu0 %v7077_v2  ;;  %3811 = vmatpush1.bf16.msra.mxu1 %v7078_v17 }
 0x19c   :  { %3749 = vmatprep.subr.bf16.mxu0 %v7079_v8  ;;  %3813 = vmatprep.subr.bf16.mxu1 %v7080_v41 }
 0x19f   :  { %3751 = vmatpush1.bf16.msra.mxu0 %v7081_v4  ;;  %3815 = vmatpush1.bf16.msra.mxu1 %v7082_v1 }
 0x1a0   :  { %3753 = vmatprep.subr.bf16.mxu0 %v7083_v21  ;;  %3817 = vmatprep.subr.bf16.mxu1 %v7084_v50 }
 0x1a3   :  { %3755 = vmatpush1.bf16.msra.mxu0 %v7085_v49  ;;  %3819 = vmatpush1.bf16.msra.mxu1 %v7086_v10  ;;  %v7143_v10 = vld [vmem:[#allocation42_spill] sm:$0xff] }
 0x1a4   :  { %3757 = vmatprep.subr.bf16.mxu0 %v7087_v34  ;;  %3821 = vmatprep.subr.bf16.mxu1 %v7088_v0 }
 0x1a7   :  { %3759 = vmatpush1.bf16.msra.mxu0 %v7089_v28  ;;  %3823 = vmatpush1.bf16.msra.mxu1 %v7090_v56 }
 0x1a8   :  { %3761 = vmatprep.subr.bf16.mxu0 %v7091_v52  ;;  %3825 = vmatprep.subr.bf16.mxu1 %v7092_v61  ;;  %v7102_v52 = vld [vmem:[#allocation46_spill] sm:$0xff]  ;;  %v7103_v61 = vld [vmem:[#allocation48_spill] sm:$0xff] }
 0x1ab   :  { %3763 = vmatpush1.bf16.msra.mxu0 %v7093_v12  ;;  %3827 = vmatpush1.bf16.msra.mxu1 %v7094_v46  ;;  %v7104_v12 = vld [vmem:[#allocation49_spill] sm:$0xff]  ;;  %v7105_v46 = vld [vmem:[#allocation50_spill] sm:$0xff] }
 0x1ac   :  { %3765 = vmatprep.subr.bf16.mxu0 %v7095_v5  ;;  %3829 = vmatprep.subr.bf16.mxu1 %v7096_v39  ;;  %v7106_v5 = vld [vmem:[#allocation51_spill] sm:$0xff]  ;;  %v7107_v39 = vld [vmem:[#allocation52_spill] sm:$0xff] }
 0x1af   :  { %3767 = vmatpush1.bf16.msra.mxu0 %v7097_v26  ;;  %3831 = vmatpush1.bf16.msra.mxu1 %v7098_v15  ;;  %v7108_v26 = vld [vmem:[#allocation53_spill] sm:$0xff]  ;;  %v7109_v15 = vld [vmem:[#allocation54_spill] sm:$0xff] }
 0x1b0   :  { %3769 = vmatprep.subr.bf16.mxu0 %v7099_v58  ;;  %3833 = vmatprep.subr.bf16.mxu1 %v7100_v45  ;;  %v7110_v58 = vld [vmem:[#allocation55_spill] sm:$0xff]  ;;  %v7111_v45 = vld [vmem:[#allocation56_spill] sm:$0xff] }
 0x1b3   :  { %3771 = vmatpush1.bf16.msra.mxu0 %v7101_v30  ;;  %3835 = vmatpush1.bf16.msra.mxu1 %v7102_v52  ;;  %v7112_v30 = vld [vmem:[#allocation57_spill] sm:$0xff]  ;;  %v7113_v52 = vld [vmem:[#allocation58_spill] sm:$0xff] }
 0x1b4   :  { %3773 = vmatprep.subr.bf16.mxu0 %v7103_v61  ;;  %3837 = vmatprep.subr.bf16.mxu1 %v7104_v12  ;;  %v7114_v61 = vld [vmem:[#allocation59_spill] sm:$0xff]  ;;  %v7115_v12 = vld [vmem:[#allocation60_spill] sm:$0xff] }
 0x1b7   :  { %3775 = vmatpush1.bf16.msra.mxu0 %v7105_v46  ;;  %3839 = vmatpush1.bf16.msra.mxu1 %v7106_v5  ;;  %v7116_v46 = vld [vmem:[#allocation61_spill] sm:$0xff]  ;;  %v7117_v5 = vld [vmem:[#allocation62_spill] sm:$0xff] }
 0x1b8   :  { %3777 = vmatprep.subr.bf16.mxu0 %v7107_v39  ;;  %3841 = vmatprep.subr.bf16.mxu1 %v7108_v26  ;;  %v7118_v39 = vld [vmem:[#allocation63_spill] sm:$0xff]  ;;  %v7119_v26 = vld [vmem:[#allocation64_spill] sm:$0xff] }
 0x1bb   :  { %3779 = vmatpush1.bf16.msra.mxu0 %v7109_v15  ;;  %3843 = vmatpush1.bf16.msra.mxu1 %v7110_v58  ;;  %v7120_v15 = vld [vmem:[#allocation65_spill] sm:$0xff]  ;;  %v7121_v58 = vld [vmem:[#allocation66_spill] sm:$0xff] }
 0x1bc   :  { %3781 = vmatprep.subr.bf16.mxu0 %v7111_v45  ;;  %3845 = vmatprep.subr.bf16.mxu1 %v7112_v30  ;;  %v7122_v45 = vld [vmem:[#allocation67_spill] sm:$0xff]  ;;  %v7123_v30 = vld [vmem:[#allocation68_spill] sm:$0xff] }
 0x1bf   :  { %3783 = vmatpush1.bf16.msra.mxu0 %v7113_v52  ;;  %3847 = vmatpush1.bf16.msra.mxu1 %v7114_v61  ;;  %v7124_v52 = vld [vmem:[#allocation69_spill] sm:$0xff]  ;;  %v7125_v61 = vld [vmem:[#allocation70_spill] sm:$0xff] }
 0x1c0   :  { %3785 = vmatprep.subr.bf16.mxu0 %v7115_v12  ;;  %3849 = vmatprep.subr.bf16.mxu1 %v7116_v46  ;;  %v7126_v12 = vld [vmem:[#allocation71_spill] sm:$0xff]  ;;  %v7127_v46 = vld [vmem:[#allocation72_spill] sm:$0xff] }
 0x1c3   :  { %3787 = vmatpush1.bf16.msra.mxu0 %v7117_v5  ;;  %3851 = vmatpush1.bf16.msra.mxu1 %v7118_v39  ;;  %v7128_v5 = vld [vmem:[#allocation73_spill] sm:$0xff]  ;;  %v7129_v39 = vld [vmem:[#allocation74_spill] sm:$0xff] }
 0x1c4   :  { %3789 = vmatprep.subr.bf16.mxu0 %v7119_v26  ;;  %3853 = vmatprep.subr.bf16.mxu1 %v7120_v15  ;;  %v7130_v26 = vld [vmem:[#allocation76_spill] sm:$0xff]  ;;  %v7131_v15 = vld [vmem:[#allocation75_spill] sm:$0xff] }
 0x1c7   :  { %3791 = vmatpush1.bf16.msra.mxu0 %v7121_v58  ;;  %3855 = vmatpush1.bf16.msra.mxu1 %v7122_v45  ;;  %v7132_v58 = vld [vmem:[#allocation77_spill] sm:$0xff]  ;;  %v7133_v45 = vld [vmem:[#allocation78_spill] sm:$0xff] }
 0x1c8   :  { %3793 = vmatprep.subr.bf16.mxu0 %v7123_v30  ;;  %3857 = vmatprep.subr.bf16.mxu1 %v7124_v52  ;;  %v7134_v30 = vld [vmem:[#allocation79_spill] sm:$0xff]  ;;  %v7135_v52 = vld [vmem:[#allocation14_spill] sm:$0xff] }
 0x1cb   :  { %3795 = vmatpush1.bf16.msra.mxu0 %v7125_v61  ;;  %3859 = vmatpush1.bf16.msra.mxu1 %v7126_v12  ;;  %v7136_v61 = vld [vmem:[#allocation15_spill] sm:$0xff] }
 0x1cc   :  { %3797 = vmatprep.subr.bf16.mxu0 %v7127_v46  ;;  %3861 = vmatprep.subr.bf16.mxu1 %v7128_v5  ;;  %v511_v5 = vld [vmem:[%s6836_s5] sm:$0xf] }
 0x1cd   :  { %v7137_v46 = vld [vmem:[#allocation37_spill] sm:$0xff] }
 0x1cf   :  { %3799 = vmatpush1.bf16.msra.mxu0 %v7129_v39  ;;  %3863 = vmatpush1.bf16.msra.mxu1 %v7130_v26  ;;  %v6111_v39 = vrot.slane %v511_v5, %v7137_v46  ;;  %v7139_v26 = vld [vmem:[#allocation36_spill] sm:$0xff] }
 0x1d0   :  { %3801 = vmatprep.subr.bf16.mxu0 %v7131_v15  ;;  %3865 = vmatprep.subr.bf16.mxu1 %v7132_v58  ;;  %v6114_v12 = vrot.slane %v511_v5, %v7139_v26  ;;  %v6123_v26 = vrot.slane %v511_v5, %v7143_v10 }
 0x1d1   :  { %7138 = vst [vmem:[#allocation16_spill] sm:$0xff] %v6111_v39 }
 0x1d2   :  { %7140 = vst [vmem:[#allocation17_spill] sm:$0xff] %v6114_v12  ;;  %7144 = vst [vmem:[#allocation20_spill] sm:$0xff] %v6123_v26 }
 0x1d3   :  { %3803 = vmatpush1.bf16.msra.mxu0 %v7133_v45  ;;  %3867 = vmatpush1.bf16.msra.mxu1 %v7134_v30 }
 0x1d4   :  { %3869 = vmatprep.subr.bf16.mxu0 %v7135_v52  ;;  %3901 = vmatprep.subr.bf16.mxu1 %v7136_v61  ;;  %v7141_v61 = vld [vmem:[#allocation47_spill] sm:$0xff] }
 0x1d5   :  { %v6119_v0 = vrot.slane %v511_v5, %v7141_v61 }
 0x1d7   :  { %7142 = vst [vmem:[#allocation18_spill] sm:$0xff] %v6119_v0 }
 0x249   :  { %v773_v15 = vpop.f32.mrb[2].mxu0  ;;  %v844_v58 = vpop.f32.mrb[2].mxu1 }
 0x24a   :  { %v774_v45 = vadd.f32 %v773_v15, %v6111_v39  ;;  %v775_v56 = vpop.f32.mrb[3].mxu0  ;;  %v846_v30 = vpop.f32.mrb[3].mxu1  ;;  %v845_v50 = vadd.f32 %v844_v58, %v6123_v26  ;;  %v7145_v58 = vld [vmem:[#allocation80_spill] sm:$0xff] }
 0x24b   :  { %v776_v52 = vadd.f32 %v775_v56, %v6114_v12  ;;  %v847_v46 = vadd.f32 %v846_v30, %v6119_v0 }
 0x24c   :  { %v3384_v28 = vmul.f32 -1.442695, %v774_v45 }
 0x24d   :  { %v3385_v34 = vmul.f32 -1.442695, %v776_v52  ;;  %v3386_v49 = vmul.f32 -1.442695, %v847_v46 }
 0x24e   :  { %5071 = vpow2.f32 %v3384_v28 }
 0x24f   :  { %5073 = vpow2.f32 %v3385_v34 }
 0x250   :  { %5075 = vpow2.f32 %v3386_v49 }
 0x251   :  { %5077 = vtanh.f32 %v845_v50 }
 0x258   :  { %v5072_v15 = vpop.eup %5071 }
 0x259   :  { %v5074_v39 = vpop.eup %5073  ;;  %v852_v21 = vadd.f32 1.0, %v5072_v15  ;;  %v7146_v15 = vld [vmem:[#allocation81_spill] sm:$0xff] }
 0x25a   :  { %v858_v45 = vadd.f32 1.0, %v5074_v39  ;;  %v5076_v61 = vpop.eup %5075 }
 0x25b   :  { %5079 = vrcp.f32 %v852_v21  ;;  %v5078_v52 = vpop.eup %5077  ;;  %v865_v30 = vadd.f32 1.0, %v5076_v61  ;;  %v7147_v21 = vld [vmem:[#allocation82_spill] sm:$0xff] }
 0x25c   :  { %5081 = vrcp.f32 %v858_v45 }
 0x25d   :  { %5083 = vrcp.f32 %v865_v30 }
 0x265   :  { %v5080_v56 = vpop.eup %5079 }
 0x266   :  { %v5082_v34 = vpop.eup %5081  ;;  %v869_v28 = vmul.f32 %v5080_v56, %v5078_v52 }
 0x267   :  { %v868_v0 = vmul.f32 0.0, %v5082_v34 }
 0x269   :  { %v6126_v5 = vadd.f32 %v869_v28, %v868_v0  ;;  %v944_v10 = vpop.f32.mrb[4].mxu0  ;;  %v1015_v46 = vpop.f32.mrb[4].mxu1 }
 0x26a   :  { %v1020_v26 = vadd.f32 %v944_v10, %v7145_v58  ;;  %v1022_v49 = vadd.f32 %v1015_v46, %v7146_v15  ;;  %v946_v50 = vpop.f32.mrb[5].mxu0  ;;  %v1017_v39 = vpop.f32.mrb[5].mxu1 }
 0x26b   :  { %5085 = vtanh.f32 %v6126_v5  ;;  %v1021_v45 = vadd.f32 %v946_v50, %v7147_v21  ;;  %v1023_v12 = vadd.f32 %v1017_v39, %v5905_v32  ;;  %v5084_v0 = vpop.eup %5083 }
 0x26c   :  { %v3387_v52 = vmul.f32 -1.442695, %v1020_v26 }
 0x26d   :  { %v3388_v61 = vmul.f32 -1.442695, %v1021_v45  ;;  %v3389_v34 = vmul.f32 -1.442695, %v1023_v12 }
 0x26e   :  { %5087 = vpow2.f32 %v3387_v52 }
 0x26f   :  { %5089 = vpow2.f32 %v3388_v61 }
 0x270   :  { %5091 = vpow2.f32 %v3389_v34  ;;  %v7151_v34 = vld [vmem:[#allocation27_spill] sm:$0xff] }
 0x271   :  { %5093 = vtanh.f32 %v1022_v49  ;;  %v7149_v49 = vld [vmem:[#allocation25_spill] sm:$0xff] }
 0x275   :  { %v5086_v56 = vpop.eup %5085 }
 0x276   :  { %v872_v28 = vmul.f32 %v5086_v56, %v5084_v0  ;;  %v7150_v56 = vld [vmem:[#allocation26_spill] sm:$0xff] }
 0x278   :  { %v5088_v30 = vpop.eup %5087  ;;  %1112 = vmatprep.mubr.f32.mxu0 %v872_v28  ;;  %1183 = vmatprep.mubr.f32.mxu1 %v872_v28  ;;  %v7152_v28 = vld [vmem:[#allocation28_spill] sm:$0xff] }
 0x279   :  { %v5090_v10 = vpop.eup %5089  ;;  %v1027_v46 = vadd.f32 1.0, %v5088_v30  ;;  %v7153_v30 = vld [vmem:[#allocation29_spill] sm:$0xff] }
 0x27a   :  { %v1033_v58 = vadd.f32 1.0, %v5090_v10  ;;  %v5092_v15 = vpop.eup %5091  ;;  %v7154_v10 = vld [vmem:[#allocation30_spill] sm:$0xff] }
 0x27b   :  { %5095 = vrcp.f32 %v1027_v46  ;;  %v5094_v32 = vpop.eup %5093  ;;  %v1040_v21 = vadd.f32 1.0, %v5092_v15  ;;  %v7155_v46 = vld [vmem:[#allocation31_spill] sm:$0xff]  ;;  %v7157_v15 = vld [vmem:[#allocation33_spill] sm:$0xff] }
 0x27c   :  { %5097 = vrcp.f32 %v1033_v58  ;;  %v7156_v58 = vld [vmem:[#allocation32_spill] sm:$0xff] }
 0x27d   :  { %5099 = vrcp.f32 %v1040_v21  ;;  %v7162_v21 = vld [vmem:[#allocation40_spill] sm:$0xff] }
 0x285   :  { %v5096_v26 = vpop.eup %5095 }
 0x286   :  { %v5098_v50 = vpop.eup %5097  ;;  %v1044_v39 = vmul.f32 %v5096_v26, %v5094_v32  ;;  %v7158_v32 = vld [vmem:[#allocation34_spill] sm:$0xff]  ;;  %v7159_v26 = vld [vmem:[#allocation35_spill] sm:$0xff] }
 0x287   :  { %v1043_v45 = vmul.f32 %v5098_v50, %v6006_v37  ;;  %v5100_v52 = vpop.eup %5099  ;;  %v7148_v37 = vld [vmem:[#allocation23_spill] sm:$0xff]  ;;  %v7160_v50 = vld [vmem:[#allocation38_spill] sm:$0xff] }
 0x289   :  { %v6134_v12 = vadd.f32 %v1044_v39, %v1043_v45  ;;  %v7161_v39 = vld [vmem:[#allocation39_spill] sm:$0xff]  ;;  %v7163_v45 = vld [vmem:[#allocation41_spill] sm:$0xff] }
 0x28b   :  { %5101 = vtanh.f32 %v6134_v12 }
 0x295   :  { %v5102_v61 = vpop.eup %5101 }
 0x296   :  { %v1047_v0 = vmul.f32 %v5102_v61, %v5100_v52  ;;  %v7164_v52 = vld [vmem:[#allocation43_spill] sm:$0xff]  ;;  %v7165_v61 = vld [vmem:[#allocation44_spill] sm:$0xff] }
 0x298   :  { %1113 = vmatmul.mubr.f32.vlgmr.msra.gmra.mrb[6].mxu0 %v1047_v0  ;;  %1184 = vmatmul.mubr.f32.vlgmr.msra.gmra.mrb[6].mxu1 %v1047_v0 }
 0x299   :  { %3871 = vmatpush1.bf16.msra.mxu0 %v5532_v9  ;;  %3903 = vmatpush1.bf16.msra.mxu1 %v5537_v14 }
 0x29a   :  { %3873 = vmatprep.subr.bf16.mxu0 %v5540_v18  ;;  %3905 = vmatprep.subr.bf16.mxu1 %v5545_v23 }
 0x29b   :  { %1283 = vmatprep.mubr.f32.mxu0 %v7074_v13  ;;  %1354 = vmatprep.mubr.f32.mxu1 %v7074_v13 }
 0x29d   :  { %3875 = vmatpush1.bf16.msra.mxu0 %v5543_v22  ;;  %3907 = vmatpush1.bf16.msra.mxu1 %v5549_v27 }
 0x29e   :  { %3877 = vmatprep.subr.bf16.mxu0 %v5552_v31  ;;  %3909 = vmatprep.subr.bf16.mxu1 %v5557_v36 }
 0x2a1   :  { %3879 = vmatpush1.bf16.msra.mxu0 %v5555_v35  ;;  %3911 = vmatpush1.bf16.msra.mxu1 %v5563_v44 }
 0x2a2   :  { %3881 = vmatprep.subr.bf16.mxu0 %v5560_v40  ;;  %3913 = vmatprep.subr.bf16.mxu1 %v5566_v47 }
 0x2a5   :  { %3883 = vmatpush1.bf16.msra.mxu0 %v5569_v51  ;;  %3915 = vmatpush1.bf16.msra.mxu1 %v5575_v57 }
 0x2a6   :  { %3885 = vmatprep.subr.bf16.mxu0 %v5572_v54  ;;  %3917 = vmatprep.subr.bf16.mxu1 %v5578_v60 }
 0x2a9   :  { %3887 = vmatpush1.bf16.msra.mxu0 %v5581_v63  ;;  %3919 = vmatpush1.bf16.msra.mxu1 %v5587_v7 }
 0x2aa   :  { %3889 = vmatprep.subr.bf16.mxu0 %v5584_v3  ;;  %3921 = vmatprep.subr.bf16.mxu1 %v5590_v11 }
 0x2ad   :  { %3891 = vmatpush1.bf16.msra.mxu0 %v5593_v16  ;;  %3923 = vmatpush1.bf16.msra.mxu1 %v5599_v25 }
 0x2ae   :  { %3893 = vmatprep.subr.bf16.mxu0 %v5596_v20  ;;  %3925 = vmatprep.subr.bf16.mxu1 %v5602_v29 }
 0x2b1   :  { %3895 = vmatpush1.bf16.msra.mxu0 %v5605_v33  ;;  %3927 = vmatpush1.bf16.msra.mxu1 %v5611_v42 }
 0x2b2   :  { %3897 = vmatprep.subr.bf16.mxu0 %v5608_v38  ;;  %3929 = vmatprep.subr.bf16.mxu1 %v5614_v43 }
 0x2b5   :  { %3899 = vmatpush1.bf16.msra.mxu0 %v5617_v48  ;;  %3931 = vmatpush1.bf16.msra.mxu1 %v5623_v59 }
 0x2b6   :  { %3933 = vmatprep.subr.bf16.mxu0 %v5620_v53  ;;  %3997 = vmatprep.subr.bf16.mxu1 %v5626_v62 }
 0x2b8   :  { %1284 = vmatmul.mubr.f32.vlgmr.msra.gmra.mrb[8].mxu0 %v1047_v0  ;;  %1355 = vmatmul.mubr.f32.vlgmr.msra.gmra.mrb[8].mxu1 %v1047_v0  ;;  %v7166_v0 = vld [vmem:[#allocation45_spill] sm:$0xff] }
 0x2b9   :  { %3935 = vmatpush1.bf16.msra.mxu0 %v5629_v6  ;;  %3999 = vmatpush1.bf16.msra.mxu1 %v5635_v19 }
 0x2ba   :  { %3937 = vmatprep.subr.bf16.mxu0 %v7075_v55  ;;  %4001 = vmatprep.subr.bf16.mxu1 %v7076_v24 }
 0x2bd   :  { %3939 = vmatpush1.bf16.msra.mxu0 %v7077_v2  ;;  %4003 = vmatpush1.bf16.msra.mxu1 %v7078_v17 }
 0x2be   :  { %3941 = vmatprep.subr.bf16.mxu0 %v7079_v8  ;;  %4005 = vmatprep.subr.bf16.mxu1 %v7080_v41 }
 0x2c1   :  { %3943 = vmatpush1.bf16.msra.mxu0 %v7081_v4  ;;  %4007 = vmatpush1.bf16.msra.mxu1 %v7082_v1 }
 0x2c2   :  { %3945 = vmatprep.subr.bf16.mxu0 %v7148_v37  ;;  %4009 = vmatprep.subr.bf16.mxu1 %v7149_v49 }
 0x2c5   :  { %3947 = vmatpush1.bf16.msra.mxu0 %v7150_v56  ;;  %4011 = vmatpush1.bf16.msra.mxu1 %v7151_v34 }
 0x2c6   :  { %3949 = vmatprep.subr.bf16.mxu0 %v7152_v28  ;;  %4013 = vmatprep.subr.bf16.mxu1 %v7153_v30  ;;  %v7203_v30 = vld [vmem:[#allocation17_spill] sm:$0xff] }
 0x2c9   :  { %3951 = vmatpush1.bf16.msra.mxu0 %v7154_v10  ;;  %4015 = vmatpush1.bf16.msra.mxu1 %v7155_v46  ;;  %v7202_v46 = vld [vmem:[#allocation16_spill] sm:$0xff] }
 0x2ca   :  { %3953 = vmatprep.subr.bf16.mxu0 %v7156_v58  ;;  %4017 = vmatprep.subr.bf16.mxu1 %v7157_v15  ;;  %v7167_v58 = vld [vmem:[#allocation46_spill] sm:$0xff]  ;;  %v7168_v15 = vld [vmem:[#allocation48_spill] sm:$0xff] }
 0x2cd   :  { %3955 = vmatpush1.bf16.msra.mxu0 %v7158_v32  ;;  %4019 = vmatpush1.bf16.msra.mxu1 %v7159_v26  ;;  %v7169_v32 = vld [vmem:[#allocation49_spill] sm:$0xff]  ;;  %v7170_v26 = vld [vmem:[#allocation50_spill] sm:$0xff] }
 0x2ce   :  { %3957 = vmatprep.subr.bf16.mxu0 %v7160_v50  ;;  %4021 = vmatprep.subr.bf16.mxu1 %v7161_v39  ;;  %v7171_v50 = vld [vmem:[#allocation51_spill] sm:$0xff]  ;;  %v7172_v39 = vld [vmem:[#allocation52_spill] sm:$0xff] }
 0x2d1   :  { %3959 = vmatpush1.bf16.msra.mxu0 %v7162_v21  ;;  %4023 = vmatpush1.bf16.msra.mxu1 %v7163_v45  ;;  %v7173_v21 = vld [vmem:[#allocation53_spill] sm:$0xff]  ;;  %v7174_v45 = vld [vmem:[#allocation54_spill] sm:$0xff] }
 0x2d2   :  { %3961 = vmatprep.subr.bf16.mxu0 %v7164_v52  ;;  %4025 = vmatprep.subr.bf16.mxu1 %v7165_v61  ;;  %v7175_v52 = vld [vmem:[#allocation55_spill] sm:$0xff]  ;;  %v7176_v61 = vld [vmem:[#allocation56_spill] sm:$0xff] }
 0x2d5   :  { %3963 = vmatpush1.bf16.msra.mxu0 %v7166_v0  ;;  %4027 = vmatpush1.bf16.msra.mxu1 %v7167_v58  ;;  %v7177_v0 = vld [vmem:[#allocation57_spill] sm:$0xff]  ;;  %v7178_v58 = vld [vmem:[#allocation58_spill] sm:$0xff] }
 0x2d6   :  { %3965 = vmatprep.subr.bf16.mxu0 %v7168_v15  ;;  %4029 = vmatprep.subr.bf16.mxu1 %v7169_v32  ;;  %v7179_v15 = vld [vmem:[#allocation59_spill] sm:$0xff]  ;;  %v7180_v32 = vld [vmem:[#allocation60_spill] sm:$0xff] }
 0x2d9   :  { %3967 = vmatpush1.bf16.msra.mxu0 %v7170_v26  ;;  %4031 = vmatpush1.bf16.msra.mxu1 %v7171_v50  ;;  %v7181_v26 = vld [vmem:[#allocation61_spill] sm:$0xff]  ;;  %v7182_v50 = vld [vmem:[#allocation62_spill] sm:$0xff] }
 0x2da   :  { %3969 = vmatprep.subr.bf16.mxu0 %v7172_v39  ;;  %4033 = vmatprep.subr.bf16.mxu1 %v7173_v21  ;;  %v7183_v39 = vld [vmem:[#allocation63_spill] sm:$0xff]  ;;  %v7184_v21 = vld [vmem:[#allocation64_spill] sm:$0xff] }
 0x2dd   :  { %3971 = vmatpush1.bf16.msra.mxu0 %v7174_v45  ;;  %4035 = vmatpush1.bf16.msra.mxu1 %v7175_v52  ;;  %v7185_v45 = vld [vmem:[#allocation65_spill] sm:$0xff]  ;;  %v7186_v52 = vld [vmem:[#allocation66_spill] sm:$0xff] }
 0x2de   :  { %3973 = vmatprep.subr.bf16.mxu0 %v7176_v61  ;;  %4037 = vmatprep.subr.bf16.mxu1 %v7177_v0  ;;  %v7187_v61 = vld [vmem:[#allocation67_spill] sm:$0xff]  ;;  %v7188_v0 = vld [vmem:[#allocation68_spill] sm:$0xff] }
 0x2e1   :  { %3975 = vmatpush1.bf16.msra.mxu0 %v7178_v58  ;;  %4039 = vmatpush1.bf16.msra.mxu1 %v7179_v15  ;;  %v7189_v58 = vld [vmem:[#allocation69_spill] sm:$0xff]  ;;  %v7190_v15 = vld [vmem:[#allocation70_spill] sm:$0xff] }
 0x2e2   :  { %3977 = vmatprep.subr.bf16.mxu0 %v7180_v32  ;;  %4041 = vmatprep.subr.bf16.mxu1 %v7181_v26  ;;  %v7191_v32 = vld [vmem:[#allocation71_spill] sm:$0xff]  ;;  %v7192_v26 = vld [vmem:[#allocation72_spill] sm:$0xff] }
 0x2e5   :  { %3979 = vmatpush1.bf16.msra.mxu0 %v7182_v50  ;;  %4043 = vmatpush1.bf16.msra.mxu1 %v7183_v39  ;;  %v7193_v50 = vld [vmem:[#allocation73_spill] sm:$0xff]  ;;  %v7194_v39 = vld [vmem:[#allocation74_spill] sm:$0xff] }
 0x2e6   :  { %3981 = vmatprep.subr.bf16.mxu0 %v7184_v21  ;;  %4045 = vmatprep.subr.bf16.mxu1 %v7185_v45  ;;  %v7195_v21 = vld [vmem:[#allocation76_spill] sm:$0xff]  ;;  %v7196_v45 = vld [vmem:[#allocation75_spill] sm:$0xff] }
 0x2e9   :  { %3983 = vmatpush1.bf16.msra.mxu0 %v7186_v52  ;;  %4047 = vmatpush1.bf16.msra.mxu1 %v7187_v61  ;;  %v7197_v52 = vld [vmem:[#allocation77_spill] sm:$0xff]  ;;  %v7198_v61 = vld [vmem:[#allocation78_spill] sm:$0xff] }
 0x2ea   :  { %3985 = vmatprep.subr.bf16.mxu0 %v7188_v0  ;;  %4049 = vmatprep.subr.bf16.mxu1 %v7189_v58  ;;  %v7199_v0 = vld [vmem:[#allocation79_spill] sm:$0xff]  ;;  %v7200_v58 = vld [vmem:[#allocation14_spill] sm:$0xff] }
 0x2ed   :  { %3987 = vmatpush1.bf16.msra.mxu0 %v7190_v15  ;;  %4051 = vmatpush1.bf16.msra.mxu1 %v7191_v32  ;;  %v7201_v15 = vld [vmem:[#allocation15_spill] sm:$0xff] }
 0x2ee   :  { %3989 = vmatprep.subr.bf16.mxu0 %v7192_v26  ;;  %4053 = vmatprep.subr.bf16.mxu1 %v7193_v50 }
 0x2f1   :  { %3991 = vmatpush1.bf16.msra.mxu0 %v7194_v39  ;;  %4055 = vmatpush1.bf16.msra.mxu1 %v7195_v21 }
 0x2f2   :  { %3993 = vmatprep.subr.bf16.mxu0 %v7196_v45  ;;  %4057 = vmatprep.subr.bf16.mxu1 %v7197_v52  ;;  %v7204_v52 = vld [vmem:[#allocation18_spill] sm:$0xff] }
 0x2f5   :  { %3995 = vmatpush1.bf16.msra.mxu0 %v7198_v61  ;;  %4059 = vmatpush1.bf16.msra.mxu1 %v7199_v0  ;;  %v7205_v0 = vld [vmem:[#allocation20_spill] sm:$0xff] }
 0x2f6   :  { %4061 = vmatprep.subr.bf16.mxu0 %v7200_v58  ;;  %4093 = vmatprep.subr.bf16.mxu1 %v7201_v15 }
 0x36b   :  { %v1114_v32 = vpop.f32.mrb[6].mxu0  ;;  %v1185_v26 = vpop.f32.mrb[6].mxu1 }
 0x36c   :  { %v1115_v50 = vadd.f32 %v1114_v32, %v7202_v46  ;;  %v1116_v10 = vpop.f32.mrb[7].mxu0  ;;  %v1187_v39 = vpop.f32.mrb[7].mxu1  ;;  %v1186_v56 = vadd.f32 %v1185_v26, %v7205_v0  ;;  %v7206_v26 = vld [vmem:[#allocation83_spill] sm:$0xff] }
 0x36d   :  { %v1117_v21 = vadd.f32 %v1116_v10, %v7203_v30  ;;  %v1188_v61 = vadd.f32 %v1187_v39, %v7204_v52  ;;  %v7209_v30 = vld [vmem:[#allocation86_spill] sm:$0xff] }
 0x36e   :  { %v3390_v28 = vmul.f32 -1.442695, %v1115_v50 }
 0x36f   :  { %v3391_v45 = vmul.f32 -1.442695, %v1117_v21  ;;  %v3392_v34 = vmul.f32 -1.442695, %v1188_v61 }
 0x370   :  { %5103 = vpow2.f32 %v3390_v28 }
 0x371   :  { %5105 = vpow2.f32 %v3391_v45 }
 0x372   :  { %5107 = vpow2.f32 %v3392_v34  ;;  %v7207_v34 = vld [vmem:[#allocation84_spill] sm:$0xff] }
 0x373   :  { %5109 = vtanh.f32 %v1186_v56 }
 0x37a   :  { %v5104_v58 = vpop.eup %5103 }
 0x37b   :  { %v5106_v49 = vpop.eup %5105  ;;  %v1193_v15 = vadd.f32 1.0, %v5104_v58 }
 0x37c   :  { %v1199_v37 = vadd.f32 1.0, %v5106_v49  ;;  %v5108_v32 = vpop.eup %5107 }
 0x37d   :  { %5111 = vrcp.f32 %v1193_v15  ;;  %v5110_v46 = vpop.eup %5109  ;;  %v1206_v28 = vadd.f32 1.0, %v5108_v32 }
 0x37e   :  { %5113 = vrcp.f32 %v1199_v37  ;;  %v7208_v37 = vld [vmem:[#allocation85_spill] sm:$0xff] }
 0x37f   :  { %5115 = vrcp.f32 %v1206_v28 }
 0x387   :  { %v5112_v10 = vpop.eup %5111 }
 0x388   :  { %v5114_v50 = vpop.eup %5113  ;;  %v1210_v21 = vmul.f32 %v5112_v10, %v5110_v46 }
 0x389   :  { %v1209_v45 = vmul.f32 %v5114_v50, %v6126_v5  ;;  %v5116_v5 = vpop.eup %5115 }
 0x38b   :  { %v1285_v39 = vpop.f32.mrb[8].mxu0  ;;  %v1356_v61 = vpop.f32.mrb[8].mxu1  ;;  %v6240_v52 = vadd.f32 %v1210_v21, %v1209_v45 }
 0x38c   :  { %v1361_v58 = vadd.f32 %v1285_v39, %v7206_v26  ;;  %v1363_v56 = vadd.f32 %v1356_v61, %v7207_v34  ;;  %v1287_v49 = vpop.f32.mrb[9].mxu0  ;;  %v1358_v15 = vpop.f32.mrb[9].mxu1 }
 0x38d   :  { %v1362_v0 = vadd.f32 %v1287_v49, %v7208_v37  ;;  %v1364_v1 = vadd.f32 %v1358_v15, %v7209_v30  ;;  %5117 = vtanh.f32 %v6240_v52 }
 0x38e   :  { %v3393_v46 = vmul.f32 -1.442695, %v1361_v58 }
 0x38f   :  { %v3394_v32 = vmul.f32 -1.442695, %v1362_v0  ;;  %v3395_v50 = vmul.f32 -1.442695, %v1364_v1 }
 0x390   :  { %5119 = vpow2.f32 %v3393_v46 }
 0x391   :  { %5121 = vpow2.f32 %v3394_v32 }
 0x392   :  { %5123 = vpow2.f32 %v3395_v50  ;;  %v7214_v50 = vld [vmem:[#allocation27_spill] sm:$0xff] }
 0x393   :  { %5125 = vtanh.f32 %v1363_v56  ;;  %v7211_v56 = vld [vmem:[#allocation23_spill] sm:$0xff] }
 0x397   :  { %v5118_v10 = vpop.eup %5117 }
 0x398   :  { %v1213_v21 = vmul.f32 %v5118_v10, %v5116_v5  ;;  %v7212_v5 = vld [vmem:[#allocation25_spill] sm:$0xff]  ;;  %v7213_v10 = vld [vmem:[#allocation26_spill] sm:$0xff] }
 0x39a   :  { %v5120_v28 = vpop.eup %5119  ;;  %1453 = vmatprep.mubr.f32.mxu0 %v1213_v21  ;;  %1524 = vmatprep.mubr.f32.mxu1 %v1213_v21  ;;  %v7215_v21 = vld [vmem:[#allocation28_spill] sm:$0xff] }
 0x39b   :  { %v5122_v45 = vpop.eup %5121  ;;  %v1368_v39 = vadd.f32 1.0, %v5120_v28  ;;  %v7216_v28 = vld [vmem:[#allocation29_spill] sm:$0xff] }
 0x39c   :  { %v1374_v61 = vadd.f32 1.0, %v5122_v45  ;;  %v5124_v30 = vpop.eup %5123  ;;  %v7217_v45 = vld [vmem:[#allocation30_spill] sm:$0xff] }
 0x39d   :  { %5127 = vrcp.f32 %v1368_v39  ;;  %v5126_v26 = vpop.eup %5125  ;;  %v1381_v49 = vadd.f32 1.0, %v5124_v30  ;;  %v7218_v39 = vld [vmem:[#allocation31_spill] sm:$0xff]  ;;  %v7220_v30 = vld [vmem:[#allocation33_spill] sm:$0xff] }
 0x39e   :  { %5129 = vrcp.f32 %v1374_v61  ;;  %v7219_v61 = vld [vmem:[#allocation32_spill] sm:$0xff] }
 0x39f   :  { %5131 = vrcp.f32 %v1381_v49  ;;  %v7225_v49 = vld [vmem:[#allocation40_spill] sm:$0xff] }
 0x3a7   :  { %v5128_v58 = vpop.eup %5127 }
 0x3a8   :  { %v5130_v0 = vpop.eup %5129  ;;  %v1385_v34 = vmul.f32 %v5128_v58, %v5126_v26  ;;  %v7221_v26 = vld [vmem:[#allocation34_spill] sm:$0xff]  ;;  %v7222_v58 = vld [vmem:[#allocation35_spill] sm:$0xff] }
 0x3a9   :  { %v1384_v15 = vmul.f32 %v5130_v0, %v6134_v12  ;;  %v5132_v37 = vpop.eup %5131  ;;  %v7210_v12 = vld [vmem:[#allocation24_spill] sm:$0xff]  ;;  %v7223_v0 = vld [vmem:[#allocation38_spill] sm:$0xff] }
 0x3ab   :  { %v6248_v1 = vadd.f32 %v1385_v34, %v1384_v15  ;;  %v7224_v34 = vld [vmem:[#allocation39_spill] sm:$0xff]  ;;  %v7226_v15 = vld [vmem:[#allocation41_spill] sm:$0xff] }
 0x3ad   :  { %5133 = vtanh.f32 %v6248_v1 }
 0x3b7   :  { %v5134_v46 = vpop.eup %5133 }
 0x3b8   :  { %v1388_v32 = vmul.f32 %v5134_v46, %v5132_v37  ;;  %v7227_v37 = vld [vmem:[#allocation43_spill] sm:$0xff]  ;;  %v7228_v46 = vld [vmem:[#allocation44_spill] sm:$0xff] }
 0x3ba   :  { %1454 = vmatmul.mubr.f32.vlgmr.msra.gmra.mrb[10].mxu0 %v1388_v32  ;;  %1525 = vmatmul.mubr.f32.vlgmr.msra.gmra.mrb[10].mxu1 %v1388_v32 }
 0x3bb   :  { %4063 = vmatpush1.bf16.msra.mxu0 %v5532_v9  ;;  %4095 = vmatpush1.bf16.msra.mxu1 %v5537_v14 }
 0x3bc   :  { %4065 = vmatprep.subr.bf16.mxu0 %v5540_v18  ;;  %4097 = vmatprep.subr.bf16.mxu1 %v5545_v23 }
 0x3bd   :  { %1624 = vmatprep.mubr.f32.mxu0 %v7074_v13  ;;  %1695 = vmatprep.mubr.f32.mxu1 %v7074_v13 }
 0x3bf   :  { %4067 = vmatpush1.bf16.msra.mxu0 %v5543_v22  ;;  %4099 = vmatpush1.bf16.msra.mxu1 %v5549_v27 }
 0x3c0   :  { %4069 = vmatprep.subr.bf16.mxu0 %v5552_v31  ;;  %4101 = vmatprep.subr.bf16.mxu1 %v5557_v36 }
 0x3c3   :  { %4071 = vmatpush1.bf16.msra.mxu0 %v5555_v35  ;;  %4103 = vmatpush1.bf16.msra.mxu1 %v5563_v44 }
 0x3c4   :  { %4073 = vmatprep.subr.bf16.mxu0 %v5560_v40  ;;  %4105 = vmatprep.subr.bf16.mxu1 %v5566_v47 }
 0x3c7   :  { %4075 = vmatpush1.bf16.msra.mxu0 %v5569_v51  ;;  %4107 = vmatpush1.bf16.msra.mxu1 %v5575_v57 }
 0x3c8   :  { %4077 = vmatprep.subr.bf16.mxu0 %v5572_v54  ;;  %4109 = vmatprep.subr.bf16.mxu1 %v5578_v60 }
 0x3cb   :  { %4079 = vmatpush1.bf16.msra.mxu0 %v5581_v63  ;;  %4111 = vmatpush1.bf16.msra.mxu1 %v5587_v7 }
 0x3cc   :  { %4081 = vmatprep.subr.bf16.mxu0 %v5584_v3  ;;  %4113 = vmatprep.subr.bf16.mxu1 %v5590_v11 }
 0x3cf   :  { %4083 = vmatpush1.bf16.msra.mxu0 %v5593_v16  ;;  %4115 = vmatpush1.bf16.msra.mxu1 %v5599_v25 }
 0x3d0   :  { %4085 = vmatprep.subr.bf16.mxu0 %v5596_v20  ;;  %4117 = vmatprep.subr.bf16.mxu1 %v5602_v29 }
 0x3d3   :  { %4087 = vmatpush1.bf16.msra.mxu0 %v5605_v33  ;;  %4119 = vmatpush1.bf16.msra.mxu1 %v5611_v42 }
 0x3d4   :  { %4089 = vmatprep.subr.bf16.mxu0 %v5608_v38  ;;  %4121 = vmatprep.subr.bf16.mxu1 %v5614_v43 }
 0x3d7   :  { %4091 = vmatpush1.bf16.msra.mxu0 %v5617_v48  ;;  %4123 = vmatpush1.bf16.msra.mxu1 %v5623_v59 }
 0x3d8   :  { %4125 = vmatprep.subr.bf16.mxu0 %v5620_v53  ;;  %4189 = vmatprep.subr.bf16.mxu1 %v5626_v62 }
 0x3da   :  { %1625 = vmatmul.mubr.f32.vlgmr.msra.gmra.mrb[12].mxu0 %v1388_v32  ;;  %1696 = vmatmul.mubr.f32.vlgmr.msra.gmra.mrb[12].mxu1 %v1388_v32  ;;  %v7229_v32 = vld [vmem:[#allocation45_spill] sm:$0xff] }
 0x3db   :  { %4127 = vmatpush1.bf16.msra.mxu0 %v5629_v6  ;;  %4191 = vmatpush1.bf16.msra.mxu1 %v5635_v19 }
 0x3dc   :  { %4129 = vmatprep.subr.bf16.mxu0 %v7075_v55  ;;  %4193 = vmatprep.subr.bf16.mxu1 %v7076_v24 }
 0x3df   :  { %4131 = vmatpush1.bf16.msra.mxu0 %v7077_v2  ;;  %4195 = vmatpush1.bf16.msra.mxu1 %v7078_v17 }
 0x3e0   :  { %4133 = vmatprep.subr.bf16.mxu0 %v7079_v8  ;;  %4197 = vmatprep.subr.bf16.mxu1 %v7080_v41 }
 0x3e3   :  { %4135 = vmatpush1.bf16.msra.mxu0 %v7081_v4  ;;  %4199 = vmatpush1.bf16.msra.mxu1 %v7210_v12 }
 0x3e4   :  { %4137 = vmatprep.subr.bf16.mxu0 %v7211_v56  ;;  %4201 = vmatprep.subr.bf16.mxu1 %v7212_v5 }
 0x3e7   :  { %4139 = vmatpush1.bf16.msra.mxu0 %v7213_v10  ;;  %4203 = vmatpush1.bf16.msra.mxu1 %v7214_v50 }
 0x3e8   :  { %4141 = vmatprep.subr.bf16.mxu0 %v7215_v21  ;;  %4205 = vmatprep.subr.bf16.mxu1 %v7216_v28  ;;  %v7266_v28 = vld [vmem:[#allocation17_spill] sm:$0xff] }
 0x3eb   :  { %4143 = vmatpush1.bf16.msra.mxu0 %v7217_v45  ;;  %4207 = vmatpush1.bf16.msra.mxu1 %v7218_v39  ;;  %v7265_v39 = vld [vmem:[#allocation16_spill] sm:$0xff] }
 0x3ec   :  { %4145 = vmatprep.subr.bf16.mxu0 %v7219_v61  ;;  %4209 = vmatprep.subr.bf16.mxu1 %v7220_v30  ;;  %v7230_v61 = vld [vmem:[#allocation46_spill] sm:$0xff]  ;;  %v7231_v30 = vld [vmem:[#allocation48_spill] sm:$0xff] }
 0x3ef   :  { %4147 = vmatpush1.bf16.msra.mxu0 %v7221_v26  ;;  %4211 = vmatpush1.bf16.msra.mxu1 %v7222_v58  ;;  %v7232_v26 = vld [vmem:[#allocation49_spill] sm:$0xff]  ;;  %v7233_v58 = vld [vmem:[#allocation50_spill] sm:$0xff] }
 0x3f0   :  { %4149 = vmatprep.subr.bf16.mxu0 %v7223_v0  ;;  %4213 = vmatprep.subr.bf16.mxu1 %v7224_v34  ;;  %v7234_v0 = vld [vmem:[#allocation51_spill] sm:$0xff]  ;;  %v7235_v34 = vld [vmem:[#allocation52_spill] sm:$0xff] }
 0x3f3   :  { %4151 = vmatpush1.bf16.msra.mxu0 %v7225_v49  ;;  %4215 = vmatpush1.bf16.msra.mxu1 %v7226_v15  ;;  %v7236_v49 = vld [vmem:[#allocation53_spill] sm:$0xff]  ;;  %v7237_v15 = vld [vmem:[#allocation54_spill] sm:$0xff] }
 0x3f4   :  { %4153 = vmatprep.subr.bf16.mxu0 %v7227_v37  ;;  %4217 = vmatprep.subr.bf16.mxu1 %v7228_v46  ;;  %v7238_v37 = vld [vmem:[#allocation55_spill] sm:$0xff]  ;;  %v7239_v46 = vld [vmem:[#allocation56_spill] sm:$0xff] }
 0x3f7   :  { %4155 = vmatpush1.bf16.msra.mxu0 %v7229_v32  ;;  %4219 = vmatpush1.bf16.msra.mxu1 %v7230_v61  ;;  %v7240_v32 = vld [vmem:[#allocation57_spill] sm:$0xff]  ;;  %v7241_v61 = vld [vmem:[#allocation58_spill] sm:$0xff] }
 0x3f8   :  { %4157 = vmatprep.subr.bf16.mxu0 %v7231_v30  ;;  %4221 = vmatprep.subr.bf16.mxu1 %v7232_v26  ;;  %v7242_v30 = vld [vmem:[#allocation59_spill] sm:$0xff]  ;;  %v7243_v26 = vld [vmem:[#allocation60_spill] sm:$0xff] }
 0x3fb   :  { %4159 = vmatpush1.bf16.msra.mxu0 %v7233_v58  ;;  %4223 = vmatpush1.bf16.msra.mxu1 %v7234_v0  ;;  %v7244_v58 = vld [vmem:[#allocation61_spill] sm:$0xff]  ;;  %v7245_v0 = vld [vmem:[#allocation62_spill] sm:$0xff] }
 0x3fc   :  { %4161 = vmatprep.subr.bf16.mxu0 %v7235_v34  ;;  %4225 = vmatprep.subr.bf16.mxu1 %v7236_v49  ;;  %v7246_v34 = vld [vmem:[#allocation63_spill] sm:$0xff]  ;;  %v7247_v49 = vld [vmem:[#allocation64_spill] sm:$0xff] }
 0x3ff   :  { %4163 = vmatpush1.bf16.msra.mxu0 %v7237_v15  ;;  %4227 = vmatpush1.bf16.msra.mxu1 %v7238_v37  ;;  %v7248_v15 = vld [vmem:[#allocation65_spill] sm:$0xff]  ;;  %v7249_v37 = vld [vmem:[#allocation66_spill] sm:$0xff] }
 0x400   :  { %4165 = vmatprep.subr.bf16.mxu0 %v7239_v46  ;;  %4229 = vmatprep.subr.bf16.mxu1 %v7240_v32  ;;  %v7250_v46 = vld [vmem:[#allocation67_spill] sm:$0xff]  ;;  %v7251_v32 = vld [vmem:[#allocation68_spill] sm:$0xff] }
 0x403   :  { %4167 = vmatpush1.bf16.msra.mxu0 %v7241_v61  ;;  %4231 = vmatpush1.bf16.msra.mxu1 %v7242_v30  ;;  %v7252_v61 = vld [vmem:[#allocation69_spill] sm:$0xff]  ;;  %v7253_v30 = vld [vmem:[#allocation70_spill] sm:$0xff] }
 0x404   :  { %4169 = vmatprep.subr.bf16.mxu0 %v7243_v26  ;;  %4233 = vmatprep.subr.bf16.mxu1 %v7244_v58  ;;  %v7254_v26 = vld [vmem:[#allocation71_spill] sm:$0xff]  ;;  %v7255_v58 = vld [vmem:[#allocation72_spill] sm:$0xff] }
 0x407   :  { %4171 = vmatpush1.bf16.msra.mxu0 %v7245_v0  ;;  %4235 = vmatpush1.bf16.msra.mxu1 %v7246_v34  ;;  %v7256_v0 = vld [vmem:[#allocation73_spill] sm:$0xff]  ;;  %v7257_v34 = vld [vmem:[#allocation74_spill] sm:$0xff] }
 0x408   :  { %4173 = vmatprep.subr.bf16.mxu0 %v7247_v49  ;;  %4237 = vmatprep.subr.bf16.mxu1 %v7248_v15  ;;  %v7258_v49 = vld [vmem:[#allocation76_spill] sm:$0xff]  ;;  %v7259_v15 = vld [vmem:[#allocation75_spill] sm:$0xff] }
 0x40b   :  { %4175 = vmatpush1.bf16.msra.mxu0 %v7249_v37  ;;  %4239 = vmatpush1.bf16.msra.mxu1 %v7250_v46  ;;  %v7260_v37 = vld [vmem:[#allocation77_spill] sm:$0xff]  ;;  %v7261_v46 = vld [vmem:[#allocation78_spill] sm:$0xff] }
 0x40c   :  { %4177 = vmatprep.subr.bf16.mxu0 %v7251_v32  ;;  %4241 = vmatprep.subr.bf16.mxu1 %v7252_v61  ;;  %v7262_v32 = vld [vmem:[#allocation79_spill] sm:$0xff]  ;;  %v7263_v61 = vld [vmem:[#allocation14_spill] sm:$0xff] }
 0x40f   :  { %4179 = vmatpush1.bf16.msra.mxu0 %v7253_v30  ;;  %4243 = vmatpush1.bf16.msra.mxu1 %v7254_v26  ;;  %v7264_v30 = vld [vmem:[#allocation15_spill] sm:$0xff] }
 0x410   :  { %4181 = vmatprep.subr.bf16.mxu0 %v7255_v58  ;;  %4245 = vmatprep.subr.bf16.mxu1 %v7256_v0 }
 0x413   :  { %4183 = vmatpush1.bf16.msra.mxu0 %v7257_v34  ;;  %4247 = vmatpush1.bf16.msra.mxu1 %v7258_v49 }
 0x414   :  { %4185 = vmatprep.subr.bf16.mxu0 %v7259_v15  ;;  %4249 = vmatprep.subr.bf16.mxu1 %v7260_v37  ;;  %v7267_v37 = vld [vmem:[#allocation18_spill] sm:$0xff] }
 0x417   :  { %4187 = vmatpush1.bf16.msra.mxu0 %v7261_v46  ;;  %4251 = vmatpush1.bf16.msra.mxu1 %v7262_v32  ;;  %v7268_v32 = vld [vmem:[#allocation20_spill] sm:$0xff] }
 0x418   :  { %4253 = vmatprep.subr.bf16.mxu0 %v7263_v61  ;;  %4285 = vmatprep.subr.bf16.mxu1 %v7264_v30 }
 0x48d   :  { %v1455_v26 = vpop.f32.mrb[10].mxu0  ;;  %v1526_v58 = vpop.f32.mrb[10].mxu1 }
 0x48e   :  { %v1456_v0 = vadd.f32 %v1455_v26, %v7265_v39  ;;  %v1457_v45 = vpop.f32.mrb[11].mxu0  ;;  %v1528_v34 = vpop.f32.mrb[11].mxu1  ;;  %v1527_v10 = vadd.f32 %v1526_v58, %v7268_v32  ;;  %v7269_v58 = vld [vmem:[#allocation87_spill] sm:$0xff] }
 0x48f   :  { %v1458_v49 = vadd.f32 %v1457_v45, %v7266_v28  ;;  %v1529_v46 = vadd.f32 %v1528_v34, %v7267_v37  ;;  %v7272_v28 = vld [vmem:[#allocation90_spill] sm:$0xff] }
 0x490   :  { %v3396_v21 = vmul.f32 -1.442695, %v1456_v0 }
 0x491   :  { %v3397_v15 = vmul.f32 -1.442695, %v1458_v49  ;;  %v3398_v50 = vmul.f32 -1.442695, %v1529_v46 }
 0x492   :  { %5135 = vpow2.f32 %v3396_v21 }
 0x493   :  { %5137 = vpow2.f32 %v3397_v15 }
 0x494   :  { %5139 = vpow2.f32 %v3398_v50  ;;  %v7270_v50 = vld [vmem:[#allocation88_spill] sm:$0xff] }
 0x495   :  { %5141 = vtanh.f32 %v1527_v10 }
 0x49c   :  { %v5136_v61 = vpop.eup %5135 }
 0x49d   :  { %v5138_v5 = vpop.eup %5137  ;;  %v1534_v30 = vadd.f32 1.0, %v5136_v61 }
 0x49e   :  { %v1540_v56 = vadd.f32 1.0, %v5138_v5  ;;  %v5140_v26 = vpop.eup %5139 }
 0x49f   :  { %5143 = vrcp.f32 %v1534_v30  ;;  %v5142_v39 = vpop.eup %5141  ;;  %v1547_v21 = vadd.f32 1.0, %v5140_v26 }
 0x4a0   :  { %5145 = vrcp.f32 %v1540_v56  ;;  %v7271_v56 = vld [vmem:[#allocation89_spill] sm:$0xff] }
 0x4a1   :  { %5147 = vrcp.f32 %v1547_v21 }
 0x4a9   :  { %v5144_v45 = vpop.eup %5143 }
 0x4aa   :  { %v5146_v0 = vpop.eup %5145  ;;  %v1551_v49 = vmul.f32 %v5144_v45, %v5142_v39 }
 0x4ab   :  { %v1550_v15 = vmul.f32 %v5146_v0, %v6240_v52  ;;  %v5148_v52 = vpop.eup %5147 }
 0x4ad   :  { %v1626_v34 = vpop.f32.mrb[12].mxu0  ;;  %v1697_v46 = vpop.f32.mrb[12].mxu1  ;;  %v6354_v37 = vadd.f32 %v1551_v49, %v1550_v15 }
 0x4ae   :  { %v1702_v61 = vadd.f32 %v1626_v34, %v7269_v58  ;;  %v1704_v10 = vadd.f32 %v1697_v46, %v7270_v50  ;;  %v1628_v5 = vpop.f32.mrb[13].mxu0  ;;  %v1699_v30 = vpop.f32.mrb[13].mxu1 }
 0x4af   :  { %v1703_v32 = vadd.f32 %v1628_v5, %v7271_v56  ;;  %v1705_v12 = vadd.f32 %v1699_v30, %v7272_v28  ;;  %5149 = vtanh.f32 %v6354_v37 }
 0x4b0   :  { %v3399_v39 = vmul.f32 -1.442695, %v1702_v61 }
 0x4b1   :  { %v3400_v26 = vmul.f32 -1.442695, %v1703_v32  ;;  %v3401_v0 = vmul.f32 -1.442695, %v1705_v12 }
 0x4b2   :  { %5151 = vpow2.f32 %v3399_v39 }
 0x4b3   :  { %5153 = vpow2.f32 %v3400_v26 }
 0x4b4   :  { %5155 = vpow2.f32 %v3401_v0  ;;  %v7277_v0 = vld [vmem:[#allocation27_spill] sm:$0xff] }
 0x4b5   :  { %5157 = vtanh.f32 %v1704_v10  ;;  %v7274_v10 = vld [vmem:[#allocation23_spill] sm:$0xff] }
 0x4b9   :  { %v5150_v45 = vpop.eup %5149 }
 0x4ba   :  { %v1554_v49 = vmul.f32 %v5150_v45, %v5148_v52  ;;  %v7275_v52 = vld [vmem:[#allocation25_spill] sm:$0xff]  ;;  %v7276_v45 = vld [vmem:[#allocation26_spill] sm:$0xff] }
 0x4bc   :  { %v5152_v21 = vpop.eup %5151  ;;  %1794 = vmatprep.mubr.f32.mxu0 %v1554_v49  ;;  %1865 = vmatprep.mubr.f32.mxu1 %v1554_v49  ;;  %v7278_v49 = vld [vmem:[#allocation28_spill] sm:$0xff] }
 0x4bd   :  { %v5154_v15 = vpop.eup %5153  ;;  %v1709_v34 = vadd.f32 1.0, %v5152_v21  ;;  %v7279_v21 = vld [vmem:[#allocation29_spill] sm:$0xff] }
 0x4be   :  { %v1715_v46 = vadd.f32 1.0, %v5154_v15  ;;  %v5156_v28 = vpop.eup %5155  ;;  %v7280_v15 = vld [vmem:[#allocation30_spill] sm:$0xff] }
 0x4bf   :  { %5159 = vrcp.f32 %v1709_v34  ;;  %v5158_v58 = vpop.eup %5157  ;;  %v1722_v5 = vadd.f32 1.0, %v5156_v28  ;;  %v7281_v34 = vld [vmem:[#allocation31_spill] sm:$0xff]  ;;  %v7283_v28 = vld [vmem:[#allocation33_spill] sm:$0xff] }
 0x4c0   :  { %5161 = vrcp.f32 %v1715_v46  ;;  %v7282_v46 = vld [vmem:[#allocation32_spill] sm:$0xff] }
 0x4c1   :  { %5163 = vrcp.f32 %v1722_v5  ;;  %v7288_v5 = vld [vmem:[#allocation40_spill] sm:$0xff] }
 0x4c9   :  { %v5160_v61 = vpop.eup %5159 }
 0x4ca   :  { %v5162_v32 = vpop.eup %5161  ;;  %v1726_v50 = vmul.f32 %v5160_v61, %v5158_v58  ;;  %v7284_v58 = vld [vmem:[#allocation34_spill] sm:$0xff]  ;;  %v7285_v61 = vld [vmem:[#allocation35_spill] sm:$0xff] }
 0x4cb   :  { %v1725_v30 = vmul.f32 %v5162_v32, %v6248_v1  ;;  %v5164_v56 = vpop.eup %5163  ;;  %v7273_v1 = vld [vmem:[#allocation24_spill] sm:$0xff]  ;;  %v7286_v32 = vld [vmem:[#allocation38_spill] sm:$0xff] }
 0x4cd   :  { %v6362_v12 = vadd.f32 %v1726_v50, %v1725_v30  ;;  %v7287_v50 = vld [vmem:[#allocation39_spill] sm:$0xff]  ;;  %v7289_v30 = vld [vmem:[#allocation41_spill] sm:$0xff] }
 0x4cf   :  { %5165 = vtanh.f32 %v6362_v12 }
 0x4d9   :  { %v5166_v39 = vpop.eup %5165 }
 0x4da   :  { %v1729_v26 = vmul.f32 %v5166_v39, %v5164_v56  ;;  %v7290_v56 = vld [vmem:[#allocation43_spill] sm:$0xff]  ;;  %v7291_v39 = vld [vmem:[#allocation44_spill] sm:$0xff] }
 0x4dc   :  { %1795 = vmatmul.mubr.f32.vlgmr.msra.gmra.mrb[14].mxu0 %v1729_v26  ;;  %1866 = vmatmul.mubr.f32.vlgmr.msra.gmra.mrb[14].mxu1 %v1729_v26 }
 0x4dd   :  { %4255 = vmatpush1.bf16.msra.mxu0 %v5532_v9  ;;  %4287 = vmatpush1.bf16.msra.mxu1 %v5537_v14 }
 0x4de   :  { %4257 = vmatprep.subr.bf16.mxu0 %v5540_v18  ;;  %4289 = vmatprep.subr.bf16.mxu1 %v5545_v23 }
 0x4df   :  { %1965 = vmatprep.mubr.f32.mxu0 %v7074_v13  ;;  %2036 = vmatprep.mubr.f32.mxu1 %v7074_v13 }
 0x4e1   :  { %4259 = vmatpush1.bf16.msra.mxu0 %v5543_v22  ;;  %4291 = vmatpush1.bf16.msra.mxu1 %v5549_v27 }
 0x4e2   :  { %4261 = vmatprep.subr.bf16.mxu0 %v5552_v31  ;;  %4293 = vmatprep.subr.bf16.mxu1 %v5557_v36 }
 0x4e5   :  { %4263 = vmatpush1.bf16.msra.mxu0 %v5555_v35  ;;  %4295 = vmatpush1.bf16.msra.mxu1 %v5563_v44 }
 0x4e6   :  { %4265 = vmatprep.subr.bf16.mxu0 %v5560_v40  ;;  %4297 = vmatprep.subr.bf16.mxu1 %v5566_v47 }
 0x4e9   :  { %4267 = vmatpush1.bf16.msra.mxu0 %v5569_v51  ;;  %4299 = vmatpush1.bf16.msra.mxu1 %v5575_v57 }
 0x4ea   :  { %4269 = vmatprep.subr.bf16.mxu0 %v5572_v54  ;;  %4301 = vmatprep.subr.bf16.mxu1 %v5578_v60 }
 0x4ed   :  { %4271 = vmatpush1.bf16.msra.mxu0 %v5581_v63  ;;  %4303 = vmatpush1.bf16.msra.mxu1 %v5587_v7 }
 0x4ee   :  { %4273 = vmatprep.subr.bf16.mxu0 %v5584_v3  ;;  %4305 = vmatprep.subr.bf16.mxu1 %v5590_v11 }
 0x4f1   :  { %4275 = vmatpush1.bf16.msra.mxu0 %v5593_v16  ;;  %4307 = vmatpush1.bf16.msra.mxu1 %v5599_v25 }
 0x4f2   :  { %4277 = vmatprep.subr.bf16.mxu0 %v5596_v20  ;;  %4309 = vmatprep.subr.bf16.mxu1 %v5602_v29 }
 0x4f5   :  { %4279 = vmatpush1.bf16.msra.mxu0 %v5605_v33  ;;  %4311 = vmatpush1.bf16.msra.mxu1 %v5611_v42 }
 0x4f6   :  { %4281 = vmatprep.subr.bf16.mxu0 %v5608_v38  ;;  %4313 = vmatprep.subr.bf16.mxu1 %v5614_v43 }
 0x4f9   :  { %4283 = vmatpush1.bf16.msra.mxu0 %v5617_v48  ;;  %4315 = vmatpush1.bf16.msra.mxu1 %v5623_v59 }
 0x4fa   :  { %4317 = vmatprep.subr.bf16.mxu0 %v5620_v53  ;;  %4381 = vmatprep.subr.bf16.mxu1 %v5626_v62 }
 0x4fc   :  { %1966 = vmatmul.mubr.f32.vlgmr.msra.gmra.mrb[16].mxu0 %v1729_v26  ;;  %2037 = vmatmul.mubr.f32.vlgmr.msra.gmra.mrb[16].mxu1 %v1729_v26  ;;  %v7292_v26 = vld [vmem:[#allocation45_spill] sm:$0xff] }
 0x4fd   :  { %4319 = vmatpush1.bf16.msra.mxu0 %v5629_v6  ;;  %4383 = vmatpush1.bf16.msra.mxu1 %v5635_v19 }
 0x4fe   :  { %4321 = vmatprep.subr.bf16.mxu0 %v7075_v55  ;;  %4385 = vmatprep.subr.bf16.mxu1 %v7076_v24 }
 0x501   :  { %4323 = vmatpush1.bf16.msra.mxu0 %v7077_v2  ;;  %4387 = vmatpush1.bf16.msra.mxu1 %v7078_v17 }
 0x502   :  { %4325 = vmatprep.subr.bf16.mxu0 %v7079_v8  ;;  %4389 = vmatprep.subr.bf16.mxu1 %v7080_v41 }
 0x505   :  { %4327 = vmatpush1.bf16.msra.mxu0 %v7081_v4  ;;  %4391 = vmatpush1.bf16.msra.mxu1 %v7273_v1 }
 0x506   :  { %4329 = vmatprep.subr.bf16.mxu0 %v7274_v10  ;;  %4393 = vmatprep.subr.bf16.mxu1 %v7275_v52 }
 0x509   :  { %4331 = vmatpush1.bf16.msra.mxu0 %v7276_v45  ;;  %4395 = vmatpush1.bf16.msra.mxu1 %v7277_v0 }
 0x50a   :  { %4333 = vmatprep.subr.bf16.mxu0 %v7278_v49  ;;  %4397 = vmatprep.subr.bf16.mxu1 %v7279_v21  ;;  %v7329_v21 = vld [vmem:[#allocation17_spill] sm:$0xff] }
 0x50d   :  { %4335 = vmatpush1.bf16.msra.mxu0 %v7280_v15  ;;  %4399 = vmatpush1.bf16.msra.mxu1 %v7281_v34  ;;  %v7328_v34 = vld [vmem:[#allocation16_spill] sm:$0xff] }
 0x50e   :  { %4337 = vmatprep.subr.bf16.mxu0 %v7282_v46  ;;  %4401 = vmatprep.subr.bf16.mxu1 %v7283_v28  ;;  %v7293_v46 = vld [vmem:[#allocation46_spill] sm:$0xff]  ;;  %v7294_v28 = vld [vmem:[#allocation48_spill] sm:$0xff] }
 0x511   :  { %4339 = vmatpush1.bf16.msra.mxu0 %v7284_v58  ;;  %4403 = vmatpush1.bf16.msra.mxu1 %v7285_v61  ;;  %v7295_v58 = vld [vmem:[#allocation49_spill] sm:$0xff]  ;;  %v7296_v61 = vld [vmem:[#allocation50_spill] sm:$0xff] }
 0x512   :  { %4341 = vmatprep.subr.bf16.mxu0 %v7286_v32  ;;  %4405 = vmatprep.subr.bf16.mxu1 %v7287_v50  ;;  %v7297_v32 = vld [vmem:[#allocation51_spill] sm:$0xff]  ;;  %v7298_v50 = vld [vmem:[#allocation52_spill] sm:$0xff] }
 0x515   :  { %4343 = vmatpush1.bf16.msra.mxu0 %v7288_v5  ;;  %4407 = vmatpush1.bf16.msra.mxu1 %v7289_v30  ;;  %v7299_v5 = vld [vmem:[#allocation53_spill] sm:$0xff]  ;;  %v7300_v30 = vld [vmem:[#allocation54_spill] sm:$0xff] }
 0x516   :  { %4345 = vmatprep.subr.bf16.mxu0 %v7290_v56  ;;  %4409 = vmatprep.subr.bf16.mxu1 %v7291_v39  ;;  %v7301_v56 = vld [vmem:[#allocation55_spill] sm:$0xff]  ;;  %v7302_v39 = vld [vmem:[#allocation56_spill] sm:$0xff] }
 0x519   :  { %4347 = vmatpush1.bf16.msra.mxu0 %v7292_v26  ;;  %4411 = vmatpush1.bf16.msra.mxu1 %v7293_v46  ;;  %v7303_v26 = vld [vmem:[#allocation57_spill] sm:$0xff]  ;;  %v7304_v46 = vld [vmem:[#allocation58_spill] sm:$0xff] }
 0x51a   :  { %4349 = vmatprep.subr.bf16.mxu0 %v7294_v28  ;;  %4413 = vmatprep.subr.bf16.mxu1 %v7295_v58  ;;  %v7305_v28 = vld [vmem:[#allocation59_spill] sm:$0xff]  ;;  %v7306_v58 = vld [vmem:[#allocation60_spill] sm:$0xff] }
 0x51d   :  { %4351 = vmatpush1.bf16.msra.mxu0 %v7296_v61  ;;  %4415 = vmatpush1.bf16.msra.mxu1 %v7297_v32  ;;  %v7307_v61 = vld [vmem:[#allocation61_spill] sm:$0xff]  ;;  %v7308_v32 = vld [vmem:[#allocation62_spill] sm:$0xff] }
 0x51e   :  { %4353 = vmatprep.subr.bf16.mxu0 %v7298_v50  ;;  %4417 = vmatprep.subr.bf16.mxu1 %v7299_v5  ;;  %v7309_v50 = vld [vmem:[#allocation63_spill] sm:$0xff]  ;;  %v7310_v5 = vld [vmem:[#allocation64_spill] sm:$0xff] }
 0x521   :  { %4355 = vmatpush1.bf16.msra.mxu0 %v7300_v30  ;;  %4419 = vmatpush1.bf16.msra.mxu1 %v7301_v56  ;;  %v7311_v30 = vld [vmem:[#allocation65_spill] sm:$0xff]  ;;  %v7312_v56 = vld [vmem:[#allocation66_spill] sm:$0xff] }
 0x522   :  { %4357 = vmatprep.subr.bf16.mxu0 %v7302_v39  ;;  %4421 = vmatprep.subr.bf16.mxu1 %v7303_v26  ;;  %v7313_v39 = vld [vmem:[#allocation67_spill] sm:$0xff]  ;;  %v7314_v26 = vld [vmem:[#allocation68_spill] sm:$0xff] }
 0x525   :  { %4359 = vmatpush1.bf16.msra.mxu0 %v7304_v46  ;;  %4423 = vmatpush1.bf16.msra.mxu1 %v7305_v28  ;;  %v7315_v46 = vld [vmem:[#allocation69_spill] sm:$0xff]  ;;  %v7316_v28 = vld [vmem:[#allocation70_spill] sm:$0xff] }
 0x526   :  { %4361 = vmatprep.subr.bf16.mxu0 %v7306_v58  ;;  %4425 = vmatprep.subr.bf16.mxu1 %v7307_v61  ;;  %v7317_v58 = vld [vmem:[#allocation71_spill] sm:$0xff]  ;;  %v7318_v61 = vld [vmem:[#allocation72_spill] sm:$0xff] }
 0x529   :  { %4363 = vmatpush1.bf16.msra.mxu0 %v7308_v32  ;;  %4427 = vmatpush1.bf16.msra.mxu1 %v7309_v50  ;;  %v7319_v32 = vld [vmem:[#allocation73_spill] sm:$0xff]  ;;  %v7320_v50 = vld [vmem:[#allocation74_spill] sm:$0xff] }
 0x52a   :  { %4365 = vmatprep.subr.bf16.mxu0 %v7310_v5  ;;  %4429 = vmatprep.subr.bf16.mxu1 %v7311_v30  ;;  %v7321_v5 = vld [vmem:[#allocation76_spill] sm:$0xff]  ;;  %v7322_v30 = vld [vmem:[#allocation75_spill] sm:$0xff] }
 0x52d   :  { %4367 = vmatpush1.bf16.msra.mxu0 %v7312_v56  ;;  %4431 = vmatpush1.bf16.msra.mxu1 %v7313_v39  ;;  %v7323_v56 = vld [vmem:[#allocation77_spill] sm:$0xff]  ;;  %v7324_v39 = vld [vmem:[#allocation78_spill] sm:$0xff] }
 0x52e   :  { %4369 = vmatprep.subr.bf16.mxu0 %v7314_v26  ;;  %4433 = vmatprep.subr.bf16.mxu1 %v7315_v46  ;;  %v7325_v26 = vld [vmem:[#allocation79_spill] sm:$0xff]  ;;  %v7326_v46 = vld [vmem:[#allocation14_spill] sm:$0xff] }
 0x531   :  { %4371 = vmatpush1.bf16.msra.mxu0 %v7316_v28  ;;  %4435 = vmatpush1.bf16.msra.mxu1 %v7317_v58  ;;  %v7327_v28 = vld [vmem:[#allocation15_spill] sm:$0xff] }
 0x532   :  { %4373 = vmatprep.subr.bf16.mxu0 %v7318_v61  ;;  %4437 = vmatprep.subr.bf16.mxu1 %v7319_v32 }
 0x535   :  { %4375 = vmatpush1.bf16.msra.mxu0 %v7320_v50  ;;  %4439 = vmatpush1.bf16.msra.mxu1 %v7321_v5 }
 0x536   :  { %4377 = vmatprep.subr.bf16.mxu0 %v7322_v30  ;;  %4441 = vmatprep.subr.bf16.mxu1 %v7323_v56  ;;  %v7330_v56 = vld [vmem:[#allocation18_spill] sm:$0xff] }
 0x539   :  { %4379 = vmatpush1.bf16.msra.mxu0 %v7324_v39  ;;  %4443 = vmatpush1.bf16.msra.mxu1 %v7325_v26  ;;  %v7331_v26 = vld [vmem:[#allocation20_spill] sm:$0xff] }
 0x53a   :  { %4445 = vmatprep.subr.bf16.mxu0 %v7326_v46  ;;  %4477 = vmatprep.subr.bf16.mxu1 %v7327_v28 }
 0x5af   :  { %v1796_v58 = vpop.f32.mrb[14].mxu0  ;;  %v1867_v61 = vpop.f32.mrb[14].mxu1 }
 0x5b0   :  { %v1797_v32 = vadd.f32 %v1796_v58, %v7328_v34  ;;  %v1798_v15 = vpop.f32.mrb[15].mxu0  ;;  %v1869_v50 = vpop.f32.mrb[15].mxu1  ;;  %v1868_v45 = vadd.f32 %v1867_v61, %v7331_v26  ;;  %v7332_v61 = vld [vmem:[#allocation91_spill] sm:$0xff] }
 0x5b1   :  { %v1799_v5 = vadd.f32 %v1798_v15, %v7329_v21  ;;  %v1870_v39 = vadd.f32 %v1869_v50, %v7330_v56  ;;  %v7335_v21 = vld [vmem:[#allocation94_spill] sm:$0xff] }
 0x5b2   :  { %v3402_v49 = vmul.f32 -1.442695, %v1797_v32 }
 0x5b3   :  { %v3403_v30 = vmul.f32 -1.442695, %v1799_v5  ;;  %v3404_v0 = vmul.f32 -1.442695, %v1870_v39 }
 0x5b4   :  { %5167 = vpow2.f32 %v3402_v49 }
 0x5b5   :  { %5169 = vpow2.f32 %v3403_v30 }
 0x5b6   :  { %5171 = vpow2.f32 %v3404_v0  ;;  %v7333_v0 = vld [vmem:[#allocation92_spill] sm:$0xff] }
 0x5b7   :  { %5173 = vtanh.f32 %v1868_v45 }
 0x5be   :  { %v5168_v46 = vpop.eup %5167 }
 0x5bf   :  { %v5170_v52 = vpop.eup %5169  ;;  %v1875_v28 = vadd.f32 1.0, %v5168_v46 }
 0x5c0   :  { %v1881_v10 = vadd.f32 1.0, %v5170_v52  ;;  %v5172_v58 = vpop.eup %5171 }
 0x5c1   :  { %5175 = vrcp.f32 %v1875_v28  ;;  %v5174_v34 = vpop.eup %5173  ;;  %v1888_v49 = vadd.f32 1.0, %v5172_v58 }
 0x5c2   :  { %5177 = vrcp.f32 %v1881_v10  ;;  %v7334_v10 = vld [vmem:[#allocation93_spill] sm:$0xff] }
 0x5c3   :  { %5179 = vrcp.f32 %v1888_v49 }
 0x5cb   :  { %v5176_v15 = vpop.eup %5175 }
 0x5cc   :  { %v5178_v32 = vpop.eup %5177  ;;  %v1892_v5 = vmul.f32 %v5176_v15, %v5174_v34 }
 0x5cd   :  { %v1891_v30 = vmul.f32 %v5178_v32, %v6354_v37  ;;  %v5180_v37 = vpop.eup %5179 }
 0x5cf   :  { %v1967_v50 = vpop.f32.mrb[16].mxu0  ;;  %v2038_v39 = vpop.f32.mrb[16].mxu1  ;;  %v6468_v56 = vadd.f32 %v1892_v5, %v1891_v30 }
 0x5d0   :  { %v2043_v46 = vadd.f32 %v1967_v50, %v7332_v61  ;;  %v2045_v45 = vadd.f32 %v2038_v39, %v7333_v0  ;;  %v1969_v52 = vpop.f32.mrb[17].mxu0  ;;  %v2040_v28 = vpop.f32.mrb[17].mxu1 }
 0x5d1   :  { %v2044_v26 = vadd.f32 %v1969_v52, %v7334_v10  ;;  %v2046_v1 = vadd.f32 %v2040_v28, %v7335_v21  ;;  %5181 = vtanh.f32 %v6468_v56 }
 0x5d2   :  { %v3405_v34 = vmul.f32 -1.442695, %v2043_v46 }
 0x5d3   :  { %v3406_v58 = vmul.f32 -1.442695, %v2044_v26  ;;  %v3407_v32 = vmul.f32 -1.442695, %v2046_v1 }
 0x5d4   :  { %5183 = vpow2.f32 %v3405_v34 }
 0x5d5   :  { %5185 = vpow2.f32 %v3406_v58 }
 0x5d6   :  { %5187 = vpow2.f32 %v3407_v32  ;;  %v7340_v32 = vld [vmem:[#allocation27_spill] sm:$0xff] }
 0x5d7   :  { %5189 = vtanh.f32 %v2045_v45  ;;  %v7337_v45 = vld [vmem:[#allocation23_spill] sm:$0xff] }
 0x5db   :  { %v5182_v15 = vpop.eup %5181 }
 0x5dc   :  { %v1895_v5 = vmul.f32 %v5182_v15, %v5180_v37  ;;  %v7338_v37 = vld [vmem:[#allocation25_spill] sm:$0xff]  ;;  %v7339_v15 = vld [vmem:[#allocation26_spill] sm:$0xff] }
 0x5de   :  { %v5184_v49 = vpop.eup %5183  ;;  %2135 = vmatprep.mubr.f32.mxu0 %v1895_v5  ;;  %2206 = vmatprep.mubr.f32.mxu1 %v1895_v5  ;;  %v7341_v5 = vld [vmem:[#allocation28_spill] sm:$0xff] }
 0x5df   :  { %v5186_v30 = vpop.eup %5185  ;;  %v2050_v50 = vadd.f32 1.0, %v5184_v49  ;;  %v7342_v49 = vld [vmem:[#allocation29_spill] sm:$0xff] }
 0x5e0   :  { %v2056_v39 = vadd.f32 1.0, %v5186_v30  ;;  %v5188_v21 = vpop.eup %5187  ;;  %v7343_v30 = vld [vmem:[#allocation30_spill] sm:$0xff] }
 0x5e1   :  { %5191 = vrcp.f32 %v2050_v50  ;;  %v5190_v61 = vpop.eup %5189  ;;  %v2063_v52 = vadd.f32 1.0, %v5188_v21  ;;  %v7344_v50 = vld [vmem:[#allocation31_spill] sm:$0xff]  ;;  %v7346_v21 = vld [vmem:[#allocation33_spill] sm:$0xff] }
 0x5e2   :  { %5193 = vrcp.f32 %v2056_v39  ;;  %v7345_v39 = vld [vmem:[#allocation32_spill] sm:$0xff] }
 0x5e3   :  { %5195 = vrcp.f32 %v2063_v52  ;;  %v7351_v52 = vld [vmem:[#allocation40_spill] sm:$0xff] }
 0x5eb   :  { %v5192_v46 = vpop.eup %5191 }
 0x5ec   :  { %v5194_v26 = vpop.eup %5193  ;;  %v2067_v0 = vmul.f32 %v5192_v46, %v5190_v61  ;;  %v7347_v61 = vld [vmem:[#allocation34_spill] sm:$0xff]  ;;  %v7348_v46 = vld [vmem:[#allocation35_spill] sm:$0xff] }
 0x5ed   :  { %v2066_v28 = vmul.f32 %v5194_v26, %v6362_v12  ;;  %v5196_v10 = vpop.eup %5195  ;;  %v7336_v12 = vld [vmem:[#allocation24_spill] sm:$0xff]  ;;  %v7349_v26 = vld [vmem:[#allocation38_spill] sm:$0xff] }
 0x5ef   :  { %v6476_v1 = vadd.f32 %v2067_v0, %v2066_v28  ;;  %v7350_v0 = vld [vmem:[#allocation39_spill] sm:$0xff]  ;;  %v7352_v28 = vld [vmem:[#allocation41_spill] sm:$0xff] }
 0x5f1   :  { %5197 = vtanh.f32 %v6476_v1 }
 0x5fb   :  { %v5198_v34 = vpop.eup %5197 }
 0x5fc   :  { %v2070_v58 = vmul.f32 %v5198_v34, %v5196_v10  ;;  %v7353_v10 = vld [vmem:[#allocation43_spill] sm:$0xff]  ;;  %v7354_v34 = vld [vmem:[#allocation44_spill] sm:$0xff] }
 0x5fe   :  { %2136 = vmatmul.mubr.f32.vlgmr.msra.gmra.mrb[18].mxu0 %v2070_v58  ;;  %2207 = vmatmul.mubr.f32.vlgmr.msra.gmra.mrb[18].mxu1 %v2070_v58 }
 0x5ff   :  { %4447 = vmatpush1.bf16.msra.mxu0 %v5532_v9  ;;  %4479 = vmatpush1.bf16.msra.mxu1 %v5537_v14 }
 0x600   :  { %4449 = vmatprep.subr.bf16.mxu0 %v5540_v18  ;;  %4481 = vmatprep.subr.bf16.mxu1 %v5545_v23 }
 0x601   :  { %2306 = vmatprep.mubr.f32.mxu0 %v7074_v13  ;;  %2377 = vmatprep.mubr.f32.mxu1 %v7074_v13 }
 0x603   :  { %4451 = vmatpush1.bf16.msra.mxu0 %v5543_v22  ;;  %4483 = vmatpush1.bf16.msra.mxu1 %v5549_v27 }
 0x604   :  { %4453 = vmatprep.subr.bf16.mxu0 %v5552_v31  ;;  %4485 = vmatprep.subr.bf16.mxu1 %v5557_v36 }
 0x607   :  { %4455 = vmatpush1.bf16.msra.mxu0 %v5555_v35  ;;  %4487 = vmatpush1.bf16.msra.mxu1 %v5563_v44 }
 0x608   :  { %4457 = vmatprep.subr.bf16.mxu0 %v5560_v40  ;;  %4489 = vmatprep.subr.bf16.mxu1 %v5566_v47 }
 0x60b   :  { %4459 = vmatpush1.bf16.msra.mxu0 %v5569_v51  ;;  %4491 = vmatpush1.bf16.msra.mxu1 %v5575_v57 }
 0x60c   :  { %4461 = vmatprep.subr.bf16.mxu0 %v5572_v54  ;;  %4493 = vmatprep.subr.bf16.mxu1 %v5578_v60 }
 0x60f   :  { %4463 = vmatpush1.bf16.msra.mxu0 %v5581_v63  ;;  %4495 = vmatpush1.bf16.msra.mxu1 %v5587_v7 }
 0x610   :  { %4465 = vmatprep.subr.bf16.mxu0 %v5584_v3  ;;  %4497 = vmatprep.subr.bf16.mxu1 %v5590_v11 }
 0x613   :  { %4467 = vmatpush1.bf16.msra.mxu0 %v5593_v16  ;;  %4499 = vmatpush1.bf16.msra.mxu1 %v5599_v25 }
 0x614   :  { %4469 = vmatprep.subr.bf16.mxu0 %v5596_v20  ;;  %4501 = vmatprep.subr.bf16.mxu1 %v5602_v29 }
 0x617   :  { %4471 = vmatpush1.bf16.msra.mxu0 %v5605_v33  ;;  %4503 = vmatpush1.bf16.msra.mxu1 %v5611_v42 }
 0x618   :  { %4473 = vmatprep.subr.bf16.mxu0 %v5608_v38  ;;  %4505 = vmatprep.subr.bf16.mxu1 %v5614_v43 }
 0x61b   :  { %4475 = vmatpush1.bf16.msra.mxu0 %v5617_v48  ;;  %4507 = vmatpush1.bf16.msra.mxu1 %v5623_v59 }
 0x61c   :  { %4509 = vmatprep.subr.bf16.mxu0 %v5620_v53  ;;  %4573 = vmatprep.subr.bf16.mxu1 %v5626_v62 }
 0x61e   :  { %2307 = vmatmul.mubr.f32.vlgmr.msra.gmra.mrb[20].mxu0 %v2070_v58  ;;  %2378 = vmatmul.mubr.f32.vlgmr.msra.gmra.mrb[20].mxu1 %v2070_v58  ;;  %v7355_v58 = vld [vmem:[#allocation45_spill] sm:$0xff] }
 0x61f   :  { %4511 = vmatpush1.bf16.msra.mxu0 %v5629_v6  ;;  %4575 = vmatpush1.bf16.msra.mxu1 %v5635_v19 }
 0x620   :  { %4513 = vmatprep.subr.bf16.mxu0 %v7075_v55  ;;  %4577 = vmatprep.subr.bf16.mxu1 %v7076_v24 }
 0x623   :  { %4515 = vmatpush1.bf16.msra.mxu0 %v7077_v2  ;;  %4579 = vmatpush1.bf16.msra.mxu1 %v7078_v17 }
 0x624   :  { %4517 = vmatprep.subr.bf16.mxu0 %v7079_v8  ;;  %4581 = vmatprep.subr.bf16.mxu1 %v7080_v41 }
 0x627   :  { %4519 = vmatpush1.bf16.msra.mxu0 %v7081_v4  ;;  %4583 = vmatpush1.bf16.msra.mxu1 %v7336_v12 }
 0x628   :  { %4521 = vmatprep.subr.bf16.mxu0 %v7337_v45  ;;  %4585 = vmatprep.subr.bf16.mxu1 %v7338_v37 }
 0x62b   :  { %4523 = vmatpush1.bf16.msra.mxu0 %v7339_v15  ;;  %4587 = vmatpush1.bf16.msra.mxu1 %v7340_v32 }
 0x62c   :  { %4525 = vmatprep.subr.bf16.mxu0 %v7341_v5  ;;  %4589 = vmatprep.subr.bf16.mxu1 %v7342_v49  ;;  %v7392_v49 = vld [vmem:[#allocation17_spill] sm:$0xff] }
 0x62f   :  { %4527 = vmatpush1.bf16.msra.mxu0 %v7343_v30  ;;  %4591 = vmatpush1.bf16.msra.mxu1 %v7344_v50  ;;  %v7391_v50 = vld [vmem:[#allocation16_spill] sm:$0xff] }
 0x630   :  { %4529 = vmatprep.subr.bf16.mxu0 %v7345_v39  ;;  %4593 = vmatprep.subr.bf16.mxu1 %v7346_v21  ;;  %v7356_v39 = vld [vmem:[#allocation46_spill] sm:$0xff]  ;;  %v7357_v21 = vld [vmem:[#allocation48_spill] sm:$0xff] }
 0x633   :  { %4531 = vmatpush1.bf16.msra.mxu0 %v7347_v61  ;;  %4595 = vmatpush1.bf16.msra.mxu1 %v7348_v46  ;;  %v7358_v61 = vld [vmem:[#allocation49_spill] sm:$0xff]  ;;  %v7359_v46 = vld [vmem:[#allocation50_spill] sm:$0xff] }
 0x634   :  { %4533 = vmatprep.subr.bf16.mxu0 %v7349_v26  ;;  %4597 = vmatprep.subr.bf16.mxu1 %v7350_v0  ;;  %v7360_v26 = vld [vmem:[#allocation51_spill] sm:$0xff]  ;;  %v7361_v0 = vld [vmem:[#allocation52_spill] sm:$0xff] }
 0x637   :  { %4535 = vmatpush1.bf16.msra.mxu0 %v7351_v52  ;;  %4599 = vmatpush1.bf16.msra.mxu1 %v7352_v28  ;;  %v7362_v52 = vld [vmem:[#allocation53_spill] sm:$0xff]  ;;  %v7363_v28 = vld [vmem:[#allocation54_spill] sm:$0xff] }
 0x638   :  { %4537 = vmatprep.subr.bf16.mxu0 %v7353_v10  ;;  %4601 = vmatprep.subr.bf16.mxu1 %v7354_v34  ;;  %v7364_v10 = vld [vmem:[#allocation55_spill] sm:$0xff]  ;;  %v7365_v34 = vld [vmem:[#allocation56_spill] sm:$0xff] }
 0x63b   :  { %4539 = vmatpush1.bf16.msra.mxu0 %v7355_v58  ;;  %4603 = vmatpush1.bf16.msra.mxu1 %v7356_v39  ;;  %v7366_v58 = vld [vmem:[#allocation57_spill] sm:$0xff]  ;;  %v7367_v39 = vld [vmem:[#allocation58_spill] sm:$0xff] }
 0x63c   :  { %4541 = vmatprep.subr.bf16.mxu0 %v7357_v21  ;;  %4605 = vmatprep.subr.bf16.mxu1 %v7358_v61  ;;  %v7368_v21 = vld [vmem:[#allocation59_spill] sm:$0xff]  ;;  %v7369_v61 = vld [vmem:[#allocation60_spill] sm:$0xff] }
 0x63f   :  { %4543 = vmatpush1.bf16.msra.mxu0 %v7359_v46  ;;  %4607 = vmatpush1.bf16.msra.mxu1 %v7360_v26  ;;  %v7370_v46 = vld [vmem:[#allocation61_spill] sm:$0xff]  ;;  %v7371_v26 = vld [vmem:[#allocation62_spill] sm:$0xff] }
 0x640   :  { %4545 = vmatprep.subr.bf16.mxu0 %v7361_v0  ;;  %4609 = vmatprep.subr.bf16.mxu1 %v7362_v52  ;;  %v7372_v0 = vld [vmem:[#allocation63_spill] sm:$0xff]  ;;  %v7373_v52 = vld [vmem:[#allocation64_spill] sm:$0xff] }
 0x643   :  { %4547 = vmatpush1.bf16.msra.mxu0 %v7363_v28  ;;  %4611 = vmatpush1.bf16.msra.mxu1 %v7364_v10  ;;  %v7374_v28 = vld [vmem:[#allocation65_spill] sm:$0xff]  ;;  %v7375_v10 = vld [vmem:[#allocation66_spill] sm:$0xff] }
 0x644   :  { %4549 = vmatprep.subr.bf16.mxu0 %v7365_v34  ;;  %4613 = vmatprep.subr.bf16.mxu1 %v7366_v58  ;;  %v7376_v34 = vld [vmem:[#allocation67_spill] sm:$0xff]  ;;  %v7377_v58 = vld [vmem:[#allocation68_spill] sm:$0xff] }
 0x647   :  { %4551 = vmatpush1.bf16.msra.mxu0 %v7367_v39  ;;  %4615 = vmatpush1.bf16.msra.mxu1 %v7368_v21  ;;  %v7378_v39 = vld [vmem:[#allocation69_spill] sm:$0xff]  ;;  %v7379_v21 = vld [vmem:[#allocation70_spill] sm:$0xff] }
 0x648   :  { %4553 = vmatprep.subr.bf16.mxu0 %v7369_v61  ;;  %4617 = vmatprep.subr.bf16.mxu1 %v7370_v46  ;;  %v7380_v61 = vld [vmem:[#allocation71_spill] sm:$0xff]  ;;  %v7381_v46 = vld [vmem:[#allocation72_spill] sm:$0xff] }
 0x64b   :  { %4555 = vmatpush1.bf16.msra.mxu0 %v7371_v26  ;;  %4619 = vmatpush1.bf16.msra.mxu1 %v7372_v0  ;;  %v7382_v26 = vld [vmem:[#allocation73_spill] sm:$0xff]  ;;  %v7383_v0 = vld [vmem:[#allocation74_spill] sm:$0xff] }
 0x64c   :  { %4557 = vmatprep.subr.bf16.mxu0 %v7373_v52  ;;  %4621 = vmatprep.subr.bf16.mxu1 %v7374_v28  ;;  %v7384_v52 = vld [vmem:[#allocation76_spill] sm:$0xff]  ;;  %v7385_v28 = vld [vmem:[#allocation75_spill] sm:$0xff] }
 0x64f   :  { %4559 = vmatpush1.bf16.msra.mxu0 %v7375_v10  ;;  %4623 = vmatpush1.bf16.msra.mxu1 %v7376_v34  ;;  %v7386_v10 = vld [vmem:[#allocation77_spill] sm:$0xff]  ;;  %v7387_v34 = vld [vmem:[#allocation78_spill] sm:$0xff] }
 0x650   :  { %4561 = vmatprep.subr.bf16.mxu0 %v7377_v58  ;;  %4625 = vmatprep.subr.bf16.mxu1 %v7378_v39  ;;  %v7388_v58 = vld [vmem:[#allocation79_spill] sm:$0xff]  ;;  %v7389_v39 = vld [vmem:[#allocation14_spill] sm:$0xff] }
 0x653   :  { %4563 = vmatpush1.bf16.msra.mxu0 %v7379_v21  ;;  %4627 = vmatpush1.bf16.msra.mxu1 %v7380_v61  ;;  %v7390_v21 = vld [vmem:[#allocation15_spill] sm:$0xff] }
 0x654   :  { %4565 = vmatprep.subr.bf16.mxu0 %v7381_v46  ;;  %4629 = vmatprep.subr.bf16.mxu1 %v7382_v26 }
 0x657   :  { %4567 = vmatpush1.bf16.msra.mxu0 %v7383_v0  ;;  %4631 = vmatpush1.bf16.msra.mxu1 %v7384_v52 }
 0x658   :  { %4569 = vmatprep.subr.bf16.mxu0 %v7385_v28  ;;  %4633 = vmatprep.subr.bf16.mxu1 %v7386_v10  ;;  %v7393_v10 = vld [vmem:[#allocation18_spill] sm:$0xff] }
 0x65b   :  { %4571 = vmatpush1.bf16.msra.mxu0 %v7387_v34  ;;  %4635 = vmatpush1.bf16.msra.mxu1 %v7388_v58  ;;  %v7394_v58 = vld [vmem:[#allocation20_spill] sm:$0xff] }
 0x65c   :  { %4637 = vmatprep.subr.bf16.mxu0 %v7389_v39  ;;  %4669 = vmatprep.subr.bf16.mxu1 %v7390_v21 }
 0x6d1   :  { %v2137_v61 = vpop.f32.mrb[18].mxu0  ;;  %v2208_v46 = vpop.f32.mrb[18].mxu1 }
 0x6d2   :  { %v2138_v26 = vadd.f32 %v2137_v61, %v7391_v50  ;;  %v2139_v30 = vpop.f32.mrb[19].mxu0  ;;  %v2210_v0 = vpop.f32.mrb[19].mxu1  ;;  %v2209_v15 = vadd.f32 %v2208_v46, %v7394_v58  ;;  %v7395_v46 = vld [vmem:[#allocation95_spill] sm:$0xff] }
 0x6d3   :  { %v2140_v52 = vadd.f32 %v2139_v30, %v7392_v49  ;;  %v2211_v34 = vadd.f32 %v2210_v0, %v7393_v10  ;;  %v7398_v49 = vld [vmem:[#allocation98_spill] sm:$0xff] }
 0x6d4   :  { %v3408_v5 = vmul.f32 -1.442695, %v2138_v26 }
 0x6d5   :  { %v3409_v28 = vmul.f32 -1.442695, %v2140_v52  ;;  %v3410_v32 = vmul.f32 -1.442695, %v2211_v34 }
 0x6d6   :  { %5199 = vpow2.f32 %v3408_v5 }
 0x6d7   :  { %5201 = vpow2.f32 %v3409_v28 }
 0x6d8   :  { %5203 = vpow2.f32 %v3410_v32  ;;  %v7396_v32 = vld [vmem:[#allocation96_spill] sm:$0xff] }
 0x6d9   :  { %5205 = vtanh.f32 %v2209_v15 }
 0x6e0   :  { %v5200_v39 = vpop.eup %5199 }
 0x6e1   :  { %v5202_v37 = vpop.eup %5201  ;;  %v2216_v21 = vadd.f32 1.0, %v5200_v39 }
 0x6e2   :  { %v2222_v45 = vadd.f32 1.0, %v5202_v37  ;;  %v5204_v61 = vpop.eup %5203 }
 0x6e3   :  { %5207 = vrcp.f32 %v2216_v21  ;;  %v5206_v50 = vpop.eup %5205  ;;  %v2229_v5 = vadd.f32 1.0, %v5204_v61 }
 0x6e4   :  { %5209 = vrcp.f32 %v2222_v45  ;;  %v7397_v45 = vld [vmem:[#allocation97_spill] sm:$0xff] }
 0x6e5   :  { %5211 = vrcp.f32 %v2229_v5 }
 0x6ed   :  { %v5208_v30 = vpop.eup %5207 }
 0x6ee   :  { %v5210_v26 = vpop.eup %5209  ;;  %v2233_v52 = vmul.f32 %v5208_v30, %v5206_v50 }
 0x6ef   :  { %v2232_v28 = vmul.f32 %v5210_v26, %v6468_v56  ;;  %v5212_v56 = vpop.eup %5211 }
 0x6f1   :  { %v2308_v0 = vpop.f32.mrb[20].mxu0  ;;  %v2379_v34 = vpop.f32.mrb[20].mxu1  ;;  %v6582_v10 = vadd.f32 %v2233_v52, %v2232_v28 }
 0x6f2   :  { %v2384_v39 = vadd.f32 %v2308_v0, %v7395_v46  ;;  %v2386_v15 = vadd.f32 %v2379_v34, %v7396_v32  ;;  %v2310_v37 = vpop.f32.mrb[21].mxu0  ;;  %v2381_v21 = vpop.f32.mrb[21].mxu1 }
 0x6f3   :  { %v2385_v58 = vadd.f32 %v2310_v37, %v7397_v45  ;;  %v2387_v12 = vadd.f32 %v2381_v21, %v7398_v49  ;;  %5213 = vtanh.f32 %v6582_v10 }
 0x6f4   :  { %v3411_v50 = vmul.f32 -1.442695, %v2384_v39 }
 0x6f5   :  { %v3412_v61 = vmul.f32 -1.442695, %v2385_v58  ;;  %v3413_v26 = vmul.f32 -1.442695, %v2387_v12 }
 0x6f6   :  { %5215 = vpow2.f32 %v3411_v50 }
 0x6f7   :  { %5217 = vpow2.f32 %v3412_v61 }
 0x6f8   :  { %5219 = vpow2.f32 %v3413_v26  ;;  %v7403_v26 = vld [vmem:[#allocation27_spill] sm:$0xff] }
 0x6f9   :  { %5221 = vtanh.f32 %v2386_v15  ;;  %v7400_v15 = vld [vmem:[#allocation23_spill] sm:$0xff] }
 0x6fd   :  { %v5214_v30 = vpop.eup %5213 }
 0x6fe   :  { %v2236_v52 = vmul.f32 %v5214_v30, %v5212_v56  ;;  %v7401_v56 = vld [vmem:[#allocation25_spill] sm:$0xff]  ;;  %v7402_v30 = vld [vmem:[#allocation26_spill] sm:$0xff] }
 0x700   :  { %v5216_v5 = vpop.eup %5215  ;;  %2476 = vmatprep.mubr.f32.mxu0 %v2236_v52  ;;  %2547 = vmatprep.mubr.f32.mxu1 %v2236_v52  ;;  %v7404_v52 = vld [vmem:[#allocation28_spill] sm:$0xff] }
 0x701   :  { %v5218_v28 = vpop.eup %5217  ;;  %v2391_v0 = vadd.f32 1.0, %v5216_v5  ;;  %v7405_v5 = vld [vmem:[#allocation29_spill] sm:$0xff] }
 0x702   :  { %v2397_v34 = vadd.f32 1.0, %v5218_v28  ;;  %v5220_v49 = vpop.eup %5219  ;;  %v7406_v28 = vld [vmem:[#allocation30_spill] sm:$0xff] }
 0x703   :  { %5223 = vrcp.f32 %v2391_v0  ;;  %v5222_v46 = vpop.eup %5221  ;;  %v2404_v37 = vadd.f32 1.0, %v5220_v49  ;;  %v7407_v0 = vld [vmem:[#allocation31_spill] sm:$0xff]  ;;  %v7409_v49 = vld [vmem:[#allocation33_spill] sm:$0xff] }
 0x704   :  { %5225 = vrcp.f32 %v2397_v34  ;;  %v7408_v34 = vld [vmem:[#allocation32_spill] sm:$0xff] }
 0x705   :  { %5227 = vrcp.f32 %v2404_v37  ;;  %v7414_v37 = vld [vmem:[#allocation40_spill] sm:$0xff] }
 0x70d   :  { %v5224_v39 = vpop.eup %5223 }
 0x70e   :  { %v5226_v58 = vpop.eup %5225  ;;  %v2408_v32 = vmul.f32 %v5224_v39, %v5222_v46  ;;  %v7410_v46 = vld [vmem:[#allocation34_spill] sm:$0xff]  ;;  %v7411_v39 = vld [vmem:[#allocation35_spill] sm:$0xff] }
 0x70f   :  { %v2407_v21 = vmul.f32 %v5226_v58, %v6476_v1  ;;  %v5228_v45 = vpop.eup %5227  ;;  %v7399_v1 = vld [vmem:[#allocation24_spill] sm:$0xff]  ;;  %v7412_v58 = vld [vmem:[#allocation38_spill] sm:$0xff] }
 0x711   :  { %v6590_v12 = vadd.f32 %v2408_v32, %v2407_v21  ;;  %v7413_v32 = vld [vmem:[#allocation39_spill] sm:$0xff]  ;;  %v7415_v21 = vld [vmem:[#allocation41_spill] sm:$0xff] }
 0x713   :  { %5229 = vtanh.f32 %v6590_v12 }
 0x71d   :  { %v5230_v50 = vpop.eup %5229 }
 0x71e   :  { %v2411_v61 = vmul.f32 %v5230_v50, %v5228_v45  ;;  %v7416_v45 = vld [vmem:[#allocation43_spill] sm:$0xff]  ;;  %v7417_v50 = vld [vmem:[#allocation44_spill] sm:$0xff] }
 0x720   :  { %2477 = vmatmul.mubr.f32.vlgmr.msra.gmra.mrb[22].mxu0 %v2411_v61  ;;  %2548 = vmatmul.mubr.f32.vlgmr.msra.gmra.mrb[22].mxu1 %v2411_v61 }
 0x721   :  { %4639 = vmatpush1.bf16.msra.mxu0 %v5532_v9  ;;  %4671 = vmatpush1.bf16.msra.mxu1 %v5537_v14 }
 0x722   :  { %4641 = vmatprep.subr.bf16.mxu0 %v5540_v18  ;;  %4673 = vmatprep.subr.bf16.mxu1 %v5545_v23 }
 0x723   :  { %2647 = vmatprep.mubr.f32.mxu0 %v7074_v13  ;;  %2718 = vmatprep.mubr.f32.mxu1 %v7074_v13 }
 0x725   :  { %4643 = vmatpush1.bf16.msra.mxu0 %v5543_v22  ;;  %4675 = vmatpush1.bf16.msra.mxu1 %v5549_v27 }
 0x726   :  { %4645 = vmatprep.subr.bf16.mxu0 %v5552_v31  ;;  %4677 = vmatprep.subr.bf16.mxu1 %v5557_v36 }
 0x729   :  { %4647 = vmatpush1.bf16.msra.mxu0 %v5555_v35  ;;  %4679 = vmatpush1.bf16.msra.mxu1 %v5563_v44 }
 0x72a   :  { %4649 = vmatprep.subr.bf16.mxu0 %v5560_v40  ;;  %4681 = vmatprep.subr.bf16.mxu1 %v5566_v47 }
 0x72d   :  { %4651 = vmatpush1.bf16.msra.mxu0 %v5569_v51  ;;  %4683 = vmatpush1.bf16.msra.mxu1 %v5575_v57 }
 0x72e   :  { %4653 = vmatprep.subr.bf16.mxu0 %v5572_v54  ;;  %4685 = vmatprep.subr.bf16.mxu1 %v5578_v60 }
 0x731   :  { %4655 = vmatpush1.bf16.msra.mxu0 %v5581_v63  ;;  %4687 = vmatpush1.bf16.msra.mxu1 %v5587_v7 }
 0x732   :  { %4657 = vmatprep.subr.bf16.mxu0 %v5584_v3  ;;  %4689 = vmatprep.subr.bf16.mxu1 %v5590_v11 }
 0x735   :  { %4659 = vmatpush1.bf16.msra.mxu0 %v5593_v16  ;;  %4691 = vmatpush1.bf16.msra.mxu1 %v5599_v25 }
 0x736   :  { %4661 = vmatprep.subr.bf16.mxu0 %v5596_v20  ;;  %4693 = vmatprep.subr.bf16.mxu1 %v5602_v29 }
 0x739   :  { %4663 = vmatpush1.bf16.msra.mxu0 %v5605_v33  ;;  %4695 = vmatpush1.bf16.msra.mxu1 %v5611_v42 }
 0x73a   :  { %4665 = vmatprep.subr.bf16.mxu0 %v5608_v38  ;;  %4697 = vmatprep.subr.bf16.mxu1 %v5614_v43 }
 0x73d   :  { %4667 = vmatpush1.bf16.msra.mxu0 %v5617_v48  ;;  %4699 = vmatpush1.bf16.msra.mxu1 %v5623_v59 }
 0x73e   :  { %4701 = vmatprep.subr.bf16.mxu0 %v5620_v53  ;;  %4765 = vmatprep.subr.bf16.mxu1 %v5626_v62 }
 0x740   :  { %2648 = vmatmul.mubr.f32.vlgmr.msra.gmra.mrb[24].mxu0 %v2411_v61  ;;  %2719 = vmatmul.mubr.f32.vlgmr.msra.gmra.mrb[24].mxu1 %v2411_v61  ;;  %v7418_v61 = vld [vmem:[#allocation45_spill] sm:$0xff] }
 0x741   :  { %4703 = vmatpush1.bf16.msra.mxu0 %v5629_v6  ;;  %4767 = vmatpush1.bf16.msra.mxu1 %v5635_v19 }
 0x742   :  { %4705 = vmatprep.subr.bf16.mxu0 %v7075_v55  ;;  %4769 = vmatprep.subr.bf16.mxu1 %v7076_v24 }
 0x745   :  { %4707 = vmatpush1.bf16.msra.mxu0 %v7077_v2  ;;  %4771 = vmatpush1.bf16.msra.mxu1 %v7078_v17 }
 0x746   :  { %4709 = vmatprep.subr.bf16.mxu0 %v7079_v8  ;;  %4773 = vmatprep.subr.bf16.mxu1 %v7080_v41 }
 0x749   :  { %4711 = vmatpush1.bf16.msra.mxu0 %v7081_v4  ;;  %4775 = vmatpush1.bf16.msra.mxu1 %v7399_v1 }
 0x74a   :  { %4713 = vmatprep.subr.bf16.mxu0 %v7400_v15  ;;  %4777 = vmatprep.subr.bf16.mxu1 %v7401_v56 }
 0x74d   :  { %4715 = vmatpush1.bf16.msra.mxu0 %v7402_v30  ;;  %4779 = vmatpush1.bf16.msra.mxu1 %v7403_v26 }
 0x74e   :  { %4717 = vmatprep.subr.bf16.mxu0 %v7404_v52  ;;  %4781 = vmatprep.subr.bf16.mxu1 %v7405_v5  ;;  %v7455_v5 = vld [vmem:[#allocation17_spill] sm:$0xff] }
 0x751   :  { %4719 = vmatpush1.bf16.msra.mxu0 %v7406_v28  ;;  %4783 = vmatpush1.bf16.msra.mxu1 %v7407_v0  ;;  %v7454_v0 = vld [vmem:[#allocation16_spill] sm:$0xff] }
 0x752   :  { %4721 = vmatprep.subr.bf16.mxu0 %v7408_v34  ;;  %4785 = vmatprep.subr.bf16.mxu1 %v7409_v49  ;;  %v7419_v34 = vld [vmem:[#allocation46_spill] sm:$0xff]  ;;  %v7420_v49 = vld [vmem:[#allocation48_spill] sm:$0xff] }
 0x755   :  { %4723 = vmatpush1.bf16.msra.mxu0 %v7410_v46  ;;  %4787 = vmatpush1.bf16.msra.mxu1 %v7411_v39  ;;  %v7421_v46 = vld [vmem:[#allocation49_spill] sm:$0xff]  ;;  %v7422_v39 = vld [vmem:[#allocation50_spill] sm:$0xff] }
 0x756   :  { %4725 = vmatprep.subr.bf16.mxu0 %v7412_v58  ;;  %4789 = vmatprep.subr.bf16.mxu1 %v7413_v32  ;;  %v7423_v58 = vld [vmem:[#allocation51_spill] sm:$0xff]  ;;  %v7424_v32 = vld [vmem:[#allocation52_spill] sm:$0xff] }
 0x759   :  { %4727 = vmatpush1.bf16.msra.mxu0 %v7414_v37  ;;  %4791 = vmatpush1.bf16.msra.mxu1 %v7415_v21  ;;  %v7425_v37 = vld [vmem:[#allocation53_spill] sm:$0xff]  ;;  %v7426_v21 = vld [vmem:[#allocation54_spill] sm:$0xff] }
 0x75a   :  { %4729 = vmatprep.subr.bf16.mxu0 %v7416_v45  ;;  %4793 = vmatprep.subr.bf16.mxu1 %v7417_v50  ;;  %v7427_v45 = vld [vmem:[#allocation55_spill] sm:$0xff]  ;;  %v7428_v50 = vld [vmem:[#allocation56_spill] sm:$0xff] }
 0x75d   :  { %4731 = vmatpush1.bf16.msra.mxu0 %v7418_v61  ;;  %4795 = vmatpush1.bf16.msra.mxu1 %v7419_v34  ;;  %v7429_v61 = vld [vmem:[#allocation57_spill] sm:$0xff]  ;;  %v7430_v34 = vld [vmem:[#allocation58_spill] sm:$0xff] }
 0x75e   :  { %4733 = vmatprep.subr.bf16.mxu0 %v7420_v49  ;;  %4797 = vmatprep.subr.bf16.mxu1 %v7421_v46  ;;  %v7431_v49 = vld [vmem:[#allocation59_spill] sm:$0xff]  ;;  %v7432_v46 = vld [vmem:[#allocation60_spill] sm:$0xff] }
 0x761   :  { %4735 = vmatpush1.bf16.msra.mxu0 %v7422_v39  ;;  %4799 = vmatpush1.bf16.msra.mxu1 %v7423_v58  ;;  %v7433_v39 = vld [vmem:[#allocation61_spill] sm:$0xff]  ;;  %v7434_v58 = vld [vmem:[#allocation62_spill] sm:$0xff] }
 0x762   :  { %4737 = vmatprep.subr.bf16.mxu0 %v7424_v32  ;;  %4801 = vmatprep.subr.bf16.mxu1 %v7425_v37  ;;  %v7435_v32 = vld [vmem:[#allocation63_spill] sm:$0xff]  ;;  %v7436_v37 = vld [vmem:[#allocation64_spill] sm:$0xff] }
 0x765   :  { %4739 = vmatpush1.bf16.msra.mxu0 %v7426_v21  ;;  %4803 = vmatpush1.bf16.msra.mxu1 %v7427_v45  ;;  %v7437_v21 = vld [vmem:[#allocation65_spill] sm:$0xff]  ;;  %v7438_v45 = vld [vmem:[#allocation66_spill] sm:$0xff] }
 0x766   :  { %4741 = vmatprep.subr.bf16.mxu0 %v7428_v50  ;;  %4805 = vmatprep.subr.bf16.mxu1 %v7429_v61  ;;  %v7439_v50 = vld [vmem:[#allocation67_spill] sm:$0xff]  ;;  %v7440_v61 = vld [vmem:[#allocation68_spill] sm:$0xff] }
 0x769   :  { %4743 = vmatpush1.bf16.msra.mxu0 %v7430_v34  ;;  %4807 = vmatpush1.bf16.msra.mxu1 %v7431_v49  ;;  %v7441_v34 = vld [vmem:[#allocation69_spill] sm:$0xff]  ;;  %v7442_v49 = vld [vmem:[#allocation70_spill] sm:$0xff] }
 0x76a   :  { %4745 = vmatprep.subr.bf16.mxu0 %v7432_v46  ;;  %4809 = vmatprep.subr.bf16.mxu1 %v7433_v39  ;;  %v7443_v46 = vld [vmem:[#allocation71_spill] sm:$0xff]  ;;  %v7444_v39 = vld [vmem:[#allocation72_spill] sm:$0xff] }
 0x76d   :  { %4747 = vmatpush1.bf16.msra.mxu0 %v7434_v58  ;;  %4811 = vmatpush1.bf16.msra.mxu1 %v7435_v32  ;;  %v7445_v58 = vld [vmem:[#allocation73_spill] sm:$0xff]  ;;  %v7446_v32 = vld [vmem:[#allocation74_spill] sm:$0xff] }
 0x76e   :  { %4749 = vmatprep.subr.bf16.mxu0 %v7436_v37  ;;  %4813 = vmatprep.subr.bf16.mxu1 %v7437_v21  ;;  %v7447_v37 = vld [vmem:[#allocation76_spill] sm:$0xff]  ;;  %v7448_v21 = vld [vmem:[#allocation75_spill] sm:$0xff] }
 0x771   :  { %4751 = vmatpush1.bf16.msra.mxu0 %v7438_v45  ;;  %4815 = vmatpush1.bf16.msra.mxu1 %v7439_v50  ;;  %v7449_v45 = vld [vmem:[#allocation77_spill] sm:$0xff]  ;;  %v7450_v50 = vld [vmem:[#allocation78_spill] sm:$0xff] }
 0x772   :  { %4753 = vmatprep.subr.bf16.mxu0 %v7440_v61  ;;  %4817 = vmatprep.subr.bf16.mxu1 %v7441_v34  ;;  %v7451_v61 = vld [vmem:[#allocation79_spill] sm:$0xff]  ;;  %v7452_v34 = vld [vmem:[#allocation14_spill] sm:$0xff] }
 0x775   :  { %4755 = vmatpush1.bf16.msra.mxu0 %v7442_v49  ;;  %4819 = vmatpush1.bf16.msra.mxu1 %v7443_v46  ;;  %v7453_v49 = vld [vmem:[#allocation15_spill] sm:$0xff] }
 0x776   :  { %4757 = vmatprep.subr.bf16.mxu0 %v7444_v39  ;;  %4821 = vmatprep.subr.bf16.mxu1 %v7445_v58 }
 0x779   :  { %4759 = vmatpush1.bf16.msra.mxu0 %v7446_v32  ;;  %4823 = vmatpush1.bf16.msra.mxu1 %v7447_v37 }
 0x77a   :  { %4761 = vmatprep.subr.bf16.mxu0 %v7448_v21  ;;  %4825 = vmatprep.subr.bf16.mxu1 %v7449_v45  ;;  %v7456_v45 = vld [vmem:[#allocation18_spill] sm:$0xff] }
 0x77d   :  { %4763 = vmatpush1.bf16.msra.mxu0 %v7450_v50  ;;  %4827 = vmatpush1.bf16.msra.mxu1 %v7451_v61  ;;  %v7457_v61 = vld [vmem:[#allocation20_spill] sm:$0xff] }
 0x77e   :  { %4829 = vmatprep.subr.bf16.mxu0 %v7452_v34  ;;  %4861 = vmatprep.subr.bf16.mxu1 %v7453_v49 }
 0x7f3   :  { %v2478_v46 = vpop.f32.mrb[22].mxu0  ;;  %v2549_v39 = vpop.f32.mrb[22].mxu1 }
 0x7f4   :  { %v2479_v58 = vadd.f32 %v2478_v46, %v7454_v0  ;;  %v2480_v28 = vpop.f32.mrb[23].mxu0  ;;  %v2551_v32 = vpop.f32.mrb[23].mxu1  ;;  %v2550_v30 = vadd.f32 %v2549_v39, %v7457_v61  ;;  %v7458_v39 = vld [vmem:[#allocation99_spill] sm:$0xff] }
 0x7f5   :  { %v2481_v37 = vadd.f32 %v2480_v28, %v7455_v5  ;;  %v2552_v50 = vadd.f32 %v2551_v32, %v7456_v45  ;;  %v7461_v5 = vld [vmem:[#allocation102_spill] sm:$0xff] }
 0x7f6   :  { %v3414_v52 = vmul.f32 -1.442695, %v2479_v58 }
 0x7f7   :  { %v3415_v21 = vmul.f32 -1.442695, %v2481_v37  ;;  %v3416_v26 = vmul.f32 -1.442695, %v2552_v50 }
 0x7f8   :  { %5231 = vpow2.f32 %v3414_v52 }
 0x7f9   :  { %5233 = vpow2.f32 %v3415_v21 }
 0x7fa   :  { %5235 = vpow2.f32 %v3416_v26  ;;  %v7459_v26 = vld [vmem:[#allocation100_spill] sm:$0xff] }
 0x7fb   :  { %5237 = vtanh.f32 %v2550_v30 }
 0x802   :  { %v5232_v34 = vpop.eup %5231 }
 0x803   :  { %v5234_v56 = vpop.eup %5233  ;;  %v2557_v49 = vadd.f32 1.0, %v5232_v34 }
 0x804   :  { %v2563_v15 = vadd.f32 1.0, %v5234_v56  ;;  %v5236_v46 = vpop.eup %5235 }
 0x805   :  { %5239 = vrcp.f32 %v2557_v49  ;;  %v5238_v0 = vpop.eup %5237  ;;  %v2570_v52 = vadd.f32 1.0, %v5236_v46 }
 0x806   :  { %5241 = vrcp.f32 %v2563_v15  ;;  %v7460_v15 = vld [vmem:[#allocation101_spill] sm:$0xff] }
 0x807   :  { %5243 = vrcp.f32 %v2570_v52 }
 0x80f   :  { %v5240_v28 = vpop.eup %5239 }
 0x810   :  { %v5242_v58 = vpop.eup %5241  ;;  %v2574_v37 = vmul.f32 %v5240_v28, %v5238_v0 }
 0x811   :  { %v2573_v21 = vmul.f32 %v5242_v58, %v6582_v10  ;;  %v5244_v10 = vpop.eup %5243 }
 0x813   :  { %v2649_v32 = vpop.f32.mrb[24].mxu0  ;;  %v2720_v50 = vpop.f32.mrb[24].mxu1  ;;  %v6696_v45 = vadd.f32 %v2574_v37, %v2573_v21 }
 0x814   :  { %v2725_v34 = vadd.f32 %v2649_v32, %v7458_v39  ;;  %v2727_v30 = vadd.f32 %v2720_v50, %v7459_v26  ;;  %v2651_v56 = vpop.f32.mrb[25].mxu0  ;;  %v2722_v49 = vpop.f32.mrb[25].mxu1 }
 0x815   :  { %v2726_v61 = vadd.f32 %v2651_v56, %v7460_v15  ;;  %v2728_v1 = vadd.f32 %v2722_v49, %v7461_v5  ;;  %5245 = vtanh.f32 %v6696_v45 }
 0x816   :  { %v3417_v0 = vmul.f32 -1.442695, %v2725_v34 }
 0x817   :  { %v3418_v46 = vmul.f32 -1.442695, %v2726_v61  ;;  %v3419_v58 = vmul.f32 -1.442695, %v2728_v1 }
 0x818   :  { %5247 = vpow2.f32 %v3417_v0 }
 0x819   :  { %5249 = vpow2.f32 %v3418_v46 }
 0x81a   :  { %5251 = vpow2.f32 %v3419_v58  ;;  %v7507_v58 = vld [vmem:[#allocation72_spill] sm:$0xff] }
 0x81b   :  { %5253 = vtanh.f32 %v2727_v30  ;;  %v7504_v30 = vld [vmem:[#allocation69_spill] sm:$0xff] }
 0x81f   :  { %v5246_v28 = vpop.eup %5245 }
 0x820   :  { %v2577_v37 = vmul.f32 %v5246_v28, %v5244_v10  ;;  %v7505_v10 = vld [vmem:[#allocation70_spill] sm:$0xff]  ;;  %v7506_v28 = vld [vmem:[#allocation71_spill] sm:$0xff] }
 0x822   :  { %v5248_v52 = vpop.eup %5247  ;;  %2817 = vmatprep.mubr.f32.mxu0 %v2577_v37  ;;  %2888 = vmatprep.mubr.f32.mxu1 %v2577_v37  ;;  %v7508_v37 = vld [vmem:[#allocation73_spill] sm:$0xff] }
 0x823   :  { %v5250_v21 = vpop.eup %5249  ;;  %v2732_v32 = vadd.f32 1.0, %v5248_v52  ;;  %v7509_v52 = vld [vmem:[#allocation74_spill] sm:$0xff] }
 0x824   :  { %v2738_v50 = vadd.f32 1.0, %v5250_v21  ;;  %v5252_v5 = vpop.eup %5251  ;;  %v7510_v21 = vld [vmem:[#allocation76_spill] sm:$0xff] }
 0x825   :  { %5255 = vrcp.f32 %v2732_v32  ;;  %v5254_v39 = vpop.eup %5253  ;;  %v2745_v56 = vadd.f32 1.0, %v5252_v5  ;;  %v7511_v32 = vld [vmem:[#allocation75_spill] sm:$0xff]  ;;  %v7513_v5 = vld [vmem:[#allocation78_spill] sm:$0xff] }
 0x826   :  { %5257 = vrcp.f32 %v2738_v50  ;;  %v7512_v50 = vld [vmem:[#allocation77_spill] sm:$0xff] }
 0x827   :  { %5259 = vrcp.f32 %v2745_v56 }
 0x82f   :  { %v5256_v34 = vpop.eup %5255 }
 0x830   :  { %v5258_v61 = vpop.eup %5257  ;;  %v2749_v26 = vmul.f32 %v5256_v34, %v5254_v39  ;;  %v7514_v39 = vld [vmem:[#allocation79_spill] sm:$0xff] }
 0x831   :  { %v2748_v49 = vmul.f32 %v5258_v61, %v6590_v12  ;;  %v5260_v15 = vpop.eup %5259  ;;  %v7503_v12 = vld [vmem:[#allocation68_spill] sm:$0xff] }
 0x833   :  { %v6704_v1 = vadd.f32 %v2749_v26, %v2748_v49  ;;  %v7515_v26 = vld [vmem:[#allocation16_spill] sm:$0xff] }
 0x835   :  { %5261 = vtanh.f32 %v6704_v1 }
 0x83f   :  { %v5262_v0 = vpop.eup %5261 }
 0x840   :  { %v2752_v46 = vmul.f32 %v5262_v0, %v5260_v15  ;;  %v7516_v0 = vld [vmem:[#allocation17_spill] sm:$0xff] }
 0x842   :  { %2818 = vmatmul.mubr.f32.vlgmr.msra.gmra.mrb[26].mxu0 %v2752_v46  ;;  %2889 = vmatmul.mubr.f32.vlgmr.msra.gmra.mrb[26].mxu1 %v2752_v46 }
 0x843   :  { %4831 = vmatpush1.bf16.msra.mxu0 %v5532_v9  ;;  %4863 = vmatpush1.bf16.msra.mxu1 %v5537_v14  ;;  %v7462_v9 = vld [vmem:[#allocation24_spill] sm:$0xff]  ;;  %v7463_v14 = vld [vmem:[#allocation23_spill] sm:$0xff] }
 0x844   :  { %4833 = vmatprep.subr.bf16.mxu0 %v5540_v18  ;;  %4865 = vmatprep.subr.bf16.mxu1 %v5545_v23  ;;  %v7464_v18 = vld [vmem:[#allocation25_spill] sm:$0xff]  ;;  %v7466_v23 = vld [vmem:[#allocation27_spill] sm:$0xff] }
 0x845   :  { %2988 = vmatprep.mubr.f32.mxu0 %v7074_v13  ;;  %3059 = vmatprep.mubr.f32.mxu1 %v7074_v13 }
 0x847   :  { %4835 = vmatpush1.bf16.msra.mxu0 %v5543_v22  ;;  %4867 = vmatpush1.bf16.msra.mxu1 %v5549_v27  ;;  %v7465_v22 = vld [vmem:[#allocation26_spill] sm:$0xff]  ;;  %v7467_v27 = vld [vmem:[#allocation28_spill] sm:$0xff] }
 0x848   :  { %4837 = vmatprep.subr.bf16.mxu0 %v5552_v31  ;;  %4869 = vmatprep.subr.bf16.mxu1 %v5557_v36  ;;  %v7468_v31 = vld [vmem:[#allocation29_spill] sm:$0xff]  ;;  %v7470_v36 = vld [vmem:[#allocation31_spill] sm:$0xff] }
 0x84b   :  { %4839 = vmatpush1.bf16.msra.mxu0 %v5555_v35  ;;  %4871 = vmatpush1.bf16.msra.mxu1 %v5563_v44  ;;  %v7469_v35 = vld [vmem:[#allocation30_spill] sm:$0xff]  ;;  %v7472_v44 = vld [vmem:[#allocation33_spill] sm:$0xff] }
 0x84c   :  { %4841 = vmatprep.subr.bf16.mxu0 %v5560_v40  ;;  %4873 = vmatprep.subr.bf16.mxu1 %v5566_v47  ;;  %v7471_v40 = vld [vmem:[#allocation32_spill] sm:$0xff]  ;;  %v7473_v47 = vld [vmem:[#allocation34_spill] sm:$0xff] }
 0x84f   :  { %4843 = vmatpush1.bf16.msra.mxu0 %v5569_v51  ;;  %4875 = vmatpush1.bf16.msra.mxu1 %v5575_v57  ;;  %v7474_v51 = vld [vmem:[#allocation35_spill] sm:$0xff] }
 0x850   :  { %4845 = vmatprep.subr.bf16.mxu0 %v5572_v54  ;;  %4877 = vmatprep.subr.bf16.mxu1 %v5578_v60  ;;  %v7475_v54 = vld [vmem:[#allocation38_spill] sm:$0xff]  ;;  %v7476_v57 = vld [vmem:[#allocation39_spill] sm:$0xff]  ;;  %v7477_v60 = vld [vmem:[#allocation40_spill] sm:$0xff] }
 0x853   :  { %4847 = vmatpush1.bf16.msra.mxu0 %v5581_v63  ;;  %4879 = vmatpush1.bf16.msra.mxu1 %v5587_v7  ;;  %v7478_v63 = vld [vmem:[#allocation41_spill] sm:$0xff]  ;;  %v7480_v7 = vld [vmem:[#allocation44_spill] sm:$0xff] }
 0x854   :  { %4849 = vmatprep.subr.bf16.mxu0 %v5584_v3  ;;  %4881 = vmatprep.subr.bf16.mxu1 %v5590_v11  ;;  %v7479_v3 = vld [vmem:[#allocation43_spill] sm:$0xff]  ;;  %v7481_v11 = vld [vmem:[#allocation45_spill] sm:$0xff] }
 0x857   :  { %4851 = vmatpush1.bf16.msra.mxu0 %v5593_v16  ;;  %4883 = vmatpush1.bf16.msra.mxu1 %v5599_v25  ;;  %v7482_v16 = vld [vmem:[#allocation46_spill] sm:$0xff]  ;;  %v7484_v25 = vld [vmem:[#allocation49_spill] sm:$0xff] }
 0x858   :  { %4853 = vmatprep.subr.bf16.mxu0 %v5596_v20  ;;  %4885 = vmatprep.subr.bf16.mxu1 %v5602_v29  ;;  %v7483_v20 = vld [vmem:[#allocation48_spill] sm:$0xff]  ;;  %v7485_v29 = vld [vmem:[#allocation50_spill] sm:$0xff] }
 0x85b   :  { %4855 = vmatpush1.bf16.msra.mxu0 %v5605_v33  ;;  %4887 = vmatpush1.bf16.msra.mxu1 %v5611_v42  ;;  %v7486_v33 = vld [vmem:[#allocation51_spill] sm:$0xff]  ;;  %v7488_v42 = vld [vmem:[#allocation53_spill] sm:$0xff] }
 0x85c   :  { %4857 = vmatprep.subr.bf16.mxu0 %v5608_v38  ;;  %4889 = vmatprep.subr.bf16.mxu1 %v5614_v43  ;;  %v7487_v38 = vld [vmem:[#allocation52_spill] sm:$0xff]  ;;  %v7489_v43 = vld [vmem:[#allocation54_spill] sm:$0xff] }
 0x85f   :  { %4859 = vmatpush1.bf16.msra.mxu0 %v5617_v48  ;;  %4891 = vmatpush1.bf16.msra.mxu1 %v5623_v59  ;;  %v7490_v48 = vld [vmem:[#allocation55_spill] sm:$0xff]  ;;  %v7492_v59 = vld [vmem:[#allocation57_spill] sm:$0xff] }
 0x860   :  { %4893 = vmatprep.subr.bf16.mxu0 %v5620_v53  ;;  %4957 = vmatprep.subr.bf16.mxu1 %v5626_v62  ;;  %v7491_v53 = vld [vmem:[#allocation56_spill] sm:$0xff]  ;;  %v7493_v62 = vld [vmem:[#allocation58_spill] sm:$0xff] }
 0x862   :  { %2989 = vmatmul.mubr.f32.vlgmr.msra.gmra.mrb[28].mxu0 %v2752_v46  ;;  %3060 = vmatmul.mubr.f32.vlgmr.msra.gmra.mrb[28].mxu1 %v2752_v46 }
 0x863   :  { %4895 = vmatpush1.bf16.msra.mxu0 %v5629_v6  ;;  %4959 = vmatpush1.bf16.msra.mxu1 %v5635_v19  ;;  %v7494_v6 = vld [vmem:[#allocation59_spill] sm:$0xff]  ;;  %v7495_v19 = vld [vmem:[#allocation60_spill] sm:$0xff] }
 0x864   :  { %4897 = vmatprep.subr.bf16.mxu0 %v7075_v55  ;;  %4961 = vmatprep.subr.bf16.mxu1 %v7076_v24  ;;  %v7496_v55 = vld [vmem:[#allocation61_spill] sm:$0xff]  ;;  %v7497_v24 = vld [vmem:[#allocation62_spill] sm:$0xff] }
 0x867   :  { %4899 = vmatpush1.bf16.msra.mxu0 %v7077_v2  ;;  %4963 = vmatpush1.bf16.msra.mxu1 %v7078_v17  ;;  %v7498_v2 = vld [vmem:[#allocation63_spill] sm:$0xff]  ;;  %v7499_v17 = vld [vmem:[#allocation64_spill] sm:$0xff] }
 0x868   :  { %4901 = vmatprep.subr.bf16.mxu0 %v7079_v8  ;;  %4965 = vmatprep.subr.bf16.mxu1 %v7080_v41  ;;  %v7500_v8 = vld [vmem:[#allocation65_spill] sm:$0xff]  ;;  %v7501_v41 = vld [vmem:[#allocation66_spill] sm:$0xff] }
 0x86b   :  { %4903 = vmatpush1.bf16.msra.mxu0 %v7081_v4  ;;  %4967 = vmatpush1.bf16.msra.mxu1 %v7462_v9  ;;  %v7502_v4 = vld [vmem:[#allocation67_spill] sm:$0xff] }
 0x86c   :  { %4905 = vmatprep.subr.bf16.mxu0 %v7463_v14  ;;  %4969 = vmatprep.subr.bf16.mxu1 %v7464_v18  ;;  %v7517_v18 = vld [vmem:[#allocation18_spill] sm:$0xff] }
 0x86f   :  { %4907 = vmatpush1.bf16.msra.mxu0 %v7465_v22  ;;  %4971 = vmatpush1.bf16.msra.mxu1 %v7466_v23 }
 0x870   :  { %4909 = vmatprep.subr.bf16.mxu0 %v7467_v27  ;;  %4973 = vmatprep.subr.bf16.mxu1 %v7468_v31  ;;  %v7518_v27 = vld [vmem:[#allocation20_spill] sm:$0xff] }
 0x873   :  { %4911 = vmatpush1.bf16.msra.mxu0 %v7469_v35  ;;  %4975 = vmatpush1.bf16.msra.mxu1 %v7470_v36 }
 0x874   :  { %4913 = vmatprep.subr.bf16.mxu0 %v7471_v40  ;;  %4977 = vmatprep.subr.bf16.mxu1 %v7472_v44 }
 0x877   :  { %4915 = vmatpush1.bf16.msra.mxu0 %v7473_v47  ;;  %4979 = vmatpush1.bf16.msra.mxu1 %v7474_v51 }
 0x878   :  { %4917 = vmatprep.subr.bf16.mxu0 %v7475_v54  ;;  %4981 = vmatprep.subr.bf16.mxu1 %v7476_v57 }
 0x87b   :  { %4919 = vmatpush1.bf16.msra.mxu0 %v7477_v60  ;;  %4983 = vmatpush1.bf16.msra.mxu1 %v7478_v63 }
 0x87c   :  { %4921 = vmatprep.subr.bf16.mxu0 %v7479_v3  ;;  %4985 = vmatprep.subr.bf16.mxu1 %v7480_v7 }
 0x87f   :  { %4923 = vmatpush1.bf16.msra.mxu0 %v7481_v11  ;;  %4987 = vmatpush1.bf16.msra.mxu1 %v7482_v16 }
 0x880   :  { %4925 = vmatprep.subr.bf16.mxu0 %v7483_v20  ;;  %4989 = vmatprep.subr.bf16.mxu1 %v7484_v25  ;;  %v7519_v20 = vld [vmem:[#allocation103_spill] sm:$0xff] }
 0x883   :  { %4927 = vmatpush1.bf16.msra.mxu0 %v7485_v29  ;;  %4991 = vmatpush1.bf16.msra.mxu1 %v7486_v33  ;;  %v7520_v29 = vld [vmem:[#allocation104_spill] sm:$0xff] }
 0x884   :  { %4929 = vmatprep.subr.bf16.mxu0 %v7487_v38  ;;  %4993 = vmatprep.subr.bf16.mxu1 %v7488_v42 }
 0x887   :  { %4931 = vmatpush1.bf16.msra.mxu0 %v7489_v43  ;;  %4995 = vmatpush1.bf16.msra.mxu1 %v7490_v48  ;;  %v7521_v43 = vld [vmem:[#allocation105_spill] sm:$0xff] }
 0x888   :  { %4933 = vmatprep.subr.bf16.mxu0 %v7491_v53  ;;  %4997 = vmatprep.subr.bf16.mxu1 %v7492_v59  ;;  %v7522_v53 = vld [vmem:[#allocation106_spill] sm:$0xff] }
 0x88b   :  { %4935 = vmatpush1.bf16.msra.mxu0 %v7493_v62  ;;  %4999 = vmatpush1.bf16.msra.mxu1 %v7494_v6 }
 0x88c   :  { %4937 = vmatprep.subr.bf16.mxu0 %v7495_v19  ;;  %5001 = vmatprep.subr.bf16.mxu1 %v7496_v55 }
 0x88f   :  { %4939 = vmatpush1.bf16.msra.mxu0 %v7497_v24  ;;  %5003 = vmatpush1.bf16.msra.mxu1 %v7498_v2 }
 0x890   :  { %4941 = vmatprep.subr.bf16.mxu0 %v7499_v17  ;;  %5005 = vmatprep.subr.bf16.mxu1 %v7500_v8 }
 0x893   :  { %4943 = vmatpush1.bf16.msra.mxu0 %v7501_v41  ;;  %5007 = vmatpush1.bf16.msra.mxu1 %v7502_v4 }
 0x894   :  { %4945 = vmatprep.subr.bf16.mxu0 %v7503_v12  ;;  %5009 = vmatprep.subr.bf16.mxu1 %v7504_v30 }
 0x897   :  { %4947 = vmatpush1.bf16.msra.mxu0 %v7505_v10  ;;  %5011 = vmatpush1.bf16.msra.mxu1 %v7506_v28 }
 0x898   :  { %4949 = vmatprep.subr.bf16.mxu0 %v7507_v58  ;;  %5013 = vmatprep.subr.bf16.mxu1 %v7508_v37 }
 0x89b   :  { %4951 = vmatpush1.bf16.msra.mxu0 %v7509_v52  ;;  %5015 = vmatpush1.bf16.msra.mxu1 %v7510_v21 }
 0x89c   :  { %4953 = vmatprep.subr.bf16.mxu0 %v7511_v32  ;;  %5017 = vmatprep.subr.bf16.mxu1 %v7512_v50 }
 0x89f   :  { %4955 = vmatpush1.bf16.msra.mxu0 %v7513_v5  ;;  %5019 = vmatpush1.bf16.msra.mxu1 %v7514_v39  ;;  %v3260_v5 = vld [vmem:[#allocation9] sm:$0xff]  ;;  %v3261_v39 = vld [vmem:[#allocation9 + $0x8] sm:$0xff] }
 0x915   :  { %v2819_v34 = vpop.f32.mrb[26].mxu0  ;;  %v2890_v61 = vpop.f32.mrb[26].mxu1 }
 0x916   :  { %v2820_v56 = vadd.f32 %v2819_v34, %v7515_v26  ;;  %v2821_v49 = vpop.f32.mrb[27].mxu0  ;;  %v2892_v15 = vpop.f32.mrb[27].mxu1  ;;  %v2891_v31 = vadd.f32 %v2890_v61, %v7518_v27  ;;  %v5021_v34 = vpack.c.bf16 %v3261_v39, %v3260_v5  ;;  %v5414_v61 = vmov 0.0|0.0  }
 0x917   :  { %v2822_v46 = vadd.f32 %v2821_v49, %v7516_v0  ;;  %v2893_v22 = vadd.f32 %v2892_v15, %v7517_v18  ;;  %5020 = vmatprep.subr.bf16.mxu0 %v5414_v61  ;;  %v3263_v49 = vld [vmem:[#allocation9 + $0x18] sm:$0xff] }
 0x918   :  { %v3420_v9 = vmul.f32 -1.442695, %v2820_v56  ;;  %v3262_v56 = vld [vmem:[#allocation9 + $0x10] sm:$0xff] }
 0x919   :  { %v3421_v14 = vmul.f32 -1.442695, %v2822_v46  ;;  %v3422_v23 = vmul.f32 -1.442695, %v2893_v22  ;;  %v5024_v15 = vpack.c.bf16 %v3263_v49, %v3262_v56  ;;  %v3265_v46 = vld [vmem:[#allocation9 + $0x28] sm:$0xff]  ;;  %v3267_v22 = vld [vmem:[#allocation9 + $0x38] sm:$0xff] }
 0x91a   :  { %5263 = vpow2.f32 %v3420_v9 }
 0x91b   :  { %5265 = vpow2.f32 %v3421_v14  ;;  %v3266_v14 = vld [vmem:[#allocation9 + $0x30] sm:$0xff] }
 0x91c   :  { %5267 = vpow2.f32 %v3422_v23  ;;  %v5030_v23 = vpack.c.bf16 %v3267_v22, %v3266_v14 }
 0x91d   :  { %5269 = vtanh.f32 %v2891_v31  ;;  %v3268_v31 = vld [vmem:[#allocation9 + $0x40] sm:$0xff] }
 0x924   :  { %v5264_v35 = vpop.eup %5263 }
 0x925   :  { %v5266_v36 = vpop.eup %5265  ;;  %v2898_v40 = vadd.f32 1.0, %v5264_v35  ;;  %v3269_v35 = vld [vmem:[#allocation9 + $0x48] sm:$0xff] }
 0x926   :  { %v2904_v44 = vadd.f32 1.0, %v5266_v36  ;;  %v5268_v47 = vpop.eup %5267  ;;  %v5033_v36 = vpack.c.bf16 %v3269_v35, %v3268_v31 }
 0x927   :  { %5271 = vrcp.f32 %v2898_v40  ;;  %v5270_v51 = vpop.eup %5269  ;;  %v2911_v63 = vadd.f32 1.0, %v5268_v47  ;;  %v3270_v40 = vld [vmem:[#allocation9 + $0x50] sm:$0xff]  ;;  %v3272_v47 = vld [vmem:[#allocation9 + $0x60] sm:$0xff] }
 0x928   :  { %5273 = vrcp.f32 %v2904_v44  ;;  %v3271_v44 = vld [vmem:[#allocation9 + $0x58] sm:$0xff] }
 0x929   :  { %5275 = vrcp.f32 %v2911_v63  ;;  %v3275_v63 = vld [vmem:[#allocation9 + $0x78] sm:$0xff] }
 0x931   :  { %v5272_v54 = vpop.eup %5271 }
 0x932   :  { %v5274_v57 = vpop.eup %5273  ;;  %v2915_v60 = vmul.f32 %v5272_v54, %v5270_v51  ;;  %v5036_v51 = vpack.c.bf16 %v3271_v44, %v3270_v40  ;;  %v3273_v54 = vld [vmem:[#allocation9 + $0x68] sm:$0xff] }
 0x933   :  { %v2914_v3 = vmul.f32 %v5274_v57, %v6696_v45  ;;  %v5276_v45 = vpop.eup %5275  ;;  %v5039_v57 = vpack.c.bf16 %v3273_v54, %v3272_v47 }
 0x935   :  { %v2990_v7 = vpop.f32.mrb[28].mxu0  ;;  %v3061_v11 = vpop.f32.mrb[28].mxu1  ;;  %v6808_v16 = vadd.f32 %v2915_v60, %v2914_v3  ;;  %v3274_v60 = vld [vmem:[#allocation9 + $0x70] sm:$0xff] }
 0x936   :  { %v3066_v25 = vadd.f32 %v2990_v7, %v7519_v20  ;;  %v3068_v33 = vadd.f32 %v3061_v11, %v7520_v29  ;;  %v2992_v38 = vpop.f32.mrb[29].mxu0  ;;  %v3063_v42 = vpop.f32.mrb[29].mxu1  ;;  %v5042_v3 = vpack.c.bf16 %v3275_v63, %v3274_v60 }
 0x937   :  { %v3067_v48 = vadd.f32 %v2992_v38, %v7521_v43  ;;  %v3069_v59 = vadd.f32 %v3063_v42, %v7522_v53  ;;  %5277 = vtanh.f32 %v6808_v16 }
 0x938   :  { %v3423_v62 = vmul.f32 -1.442695, %v3066_v25 }
 0x939   :  { %v3424_v6 = vmul.f32 -1.442695, %v3067_v48  ;;  %v3425_v55 = vmul.f32 -1.442695, %v3069_v59 }
 0x93a   :  { %5279 = vpow2.f32 %v3423_v62 }
 0x93b   :  { %5281 = vpow2.f32 %v3424_v6 }
 0x93c   :  { %5283 = vpow2.f32 %v3425_v55 }
 0x93d   :  { %5285 = vtanh.f32 %v3068_v33 }
 0x941   :  { %v5278_v19 = vpop.eup %5277 }
 0x942   :  { %v2918_v24 = vmul.f32 %v5278_v19, %v5276_v45 }
 0x944   :  { %v5280_v2 = vpop.eup %5279  ;;  %3158 = vmatprep.mubr.f32.mxu0 %v2918_v24  ;;  %3229 = vmatprep.mubr.f32.mxu1 %v2918_v24 }
 0x945   :  { %v5282_v17 = vpop.eup %5281  ;;  %v3073_v8 = vadd.f32 1.0, %v5280_v2 }
 0x946   :  { %v3079_v41 = vadd.f32 1.0, %v5282_v17  ;;  %v5284_v4 = vpop.eup %5283 }
 0x947   :  { %5287 = vrcp.f32 %v3073_v8  ;;  %v5286_v12 = vpop.eup %5285  ;;  %v3086_v58 = vadd.f32 1.0, %v5284_v4 }
 0x948   :  { %5289 = vrcp.f32 %v3079_v41  ;;  %v3429_v41 = vld [vmem:[%s6838_s7] ss:$0 sm:$0xff] }
 0x949   :  { %5291 = vrcp.f32 %v3086_v58  ;;  %v3431_v58 = vld [vmem:[#allocation3] ss:$0 sm:$0xff] }
 0x951   :  { %v5288_v30 = vpop.eup %5287 }
 0x952   :  { %v5290_v10 = vpop.eup %5289  ;;  %v3090_v28 = vmul.f32 %v5288_v30, %v5286_v12 }
 0x953   :  { %v3089_v37 = vmul.f32 %v5290_v10, %v6704_v1  ;;  %v5292_v21 = vpop.eup %5291  ;;  %v3264_v1 = vld [vmem:[#allocation9 + $0x20] sm:$0xff]  ;;  %v3430_v10 = vld [vmem:[%s6839_s8] ss:$0 sm:$0xff] }
 0x954   :  { %v5027_v9 = vpack.c.bf16 %v3265_v46, %v3264_v1 }
 0x955   :  { %v3091_v52 = vadd.f32 %v3090_v28, %v3089_v37 }
 0x957   :  { %5293 = vtanh.f32 %v3091_v52 }
 0x961   :  { %v5294_v32 = vpop.eup %5293 }
 0x962   :  { %v3093_v50 = vmul.f32 %v5294_v32, %v5292_v21 }
 0x964   :  { %3159 = vmatmul.mubr.f32.vlgmr.msra.gmra.mrb[30].mxu0 %v3093_v50  ;;  %3230 = vmatmul.mubr.f32.vlgmr.msra.gmra.mrb[30].mxu1 %v3093_v50 }
 0x965   :  { %5022 = vmatpush3.bf16.msra.mxu0 %v5021_v34  ;;  %3481 = vmatprep.mubr.msk.f32.mxu0 %vm5415_vm0, %v7074_v13 }
 0x966   :  { %5023 = vmatprep.subr.bf16.mxu0 %v5414_v61 }
 0x969   :  { %5025 = vmatpush3.bf16.msra.mxu0 %v5024_v15 }
 0x96a   :  { %5026 = vmatprep.subr.bf16.mxu0 %v5414_v61 }
 0x96d   :  { %5028 = vmatpush3.bf16.msra.mxu0 %v5027_v9 }
 0x96e   :  { %5029 = vmatprep.subr.bf16.mxu0 %v5414_v61 }
 0x971   :  { %5031 = vmatpush3.bf16.msra.mxu0 %v5030_v23 }
 0x972   :  { %5032 = vmatprep.subr.bf16.mxu0 %v5414_v61 }
 0x975   :  { %5034 = vmatpush3.bf16.msra.mxu0 %v5033_v36 }
 0x976   :  { %5035 = vmatprep.subr.bf16.mxu0 %v5414_v61 }
 0x979   :  { %5037 = vmatpush3.bf16.msra.mxu0 %v5036_v51 }
 0x97a   :  { %5038 = vmatprep.subr.bf16.mxu0 %v5414_v61 }
 0x97d   :  { %5040 = vmatpush3.bf16.msra.mxu0 %v5039_v57 }
 0x97e   :  { %5041 = vmatprep.subr.bf16.mxu0 %v5414_v61 }
 0x981   :  { %5043 = vmatpush3.bf16.msra.mxu0 %v5042_v3 }
 0xa37   :  { %v3160_v7 = vpop.f32.mrb[30].mxu0  ;;  %v3231_v11 = vpop.f32.mrb[30].mxu1 }
 0xa38   :  { %v3161_v20 = vadd.f32 %v3160_v7, %v7515_v26  ;;  %v3162_v25 = vpop.f32.mrb[31].mxu0  ;;  %v3233_v29 = vpop.f32.mrb[31].mxu1  ;;  %v3232_v48 = vadd.f32 %v3231_v11, %v7518_v27 }
 0xa39   :  { %v3163_v33 = vadd.f32 %v3162_v25, %v7516_v0  ;;  %v3234_v13 = vadd.f32 %v3233_v29, %v7517_v18 }
 0xa3a   :  { %v3426_v38 = vmul.f32 -1.442695, %v3161_v20 }
 0xa3b   :  { %v3427_v42 = vmul.f32 -1.442695, %v3163_v33  ;;  %v3428_v43 = vmul.f32 -1.442695, %v3234_v13 }
 0xa3c   :  { %5295 = vpow2.f32 %v3426_v38 }
 0xa3d   :  { %5297 = vpow2.f32 %v3427_v42 }
 0xa3e   :  { %5299 = vpow2.f32 %v3428_v43 }
 0xa3f   :  { %5301 = vtanh.f32 %v3232_v48 }
 0xa46   :  { %v5296_v53 = vpop.eup %5295 }
 0xa47   :  { %v5298_v59 = vpop.eup %5297  ;;  %v3239_v62 = vadd.f32 1.0, %v5296_v53 }
 0xa48   :  { %v3245_v6 = vadd.f32 1.0, %v5298_v59  ;;  %v5300_v26 = vpop.eup %5299 }
 0xa49   :  { %5303 = vrcp.f32 %v3239_v62  ;;  %v5302_v45 = vpop.eup %5301  ;;  %v3252_v24 = vadd.f32 1.0, %v5300_v26 }
 0xa4a   :  { %5305 = vrcp.f32 %v3245_v6 }
 0xa4b   :  { %5307 = vrcp.f32 %v3252_v24 }
 0xa53   :  { %v5304_v0 = vpop.eup %5303 }
 0xa54   :  { %v5306_v19 = vpop.eup %5305  ;;  %v3256_v55 = vmul.f32 %v5304_v0, %v5302_v45 }
 0xa55   :  { %v3255_v2 = vmul.f32 %v5306_v19, %v6808_v16  ;;  %v5308_v27 = vpop.eup %5307 }
 0xa57   :  { %v3257_v18 = vadd.f32 %v3256_v55, %v3255_v2 }
 0xa59   :  { %5309 = vtanh.f32 %v3257_v18 }
 0xa63   :  { %v5310_v17 = vpop.eup %5309 }
 0xa64   :  { %v3259_v8 = vmul.f32 %v5310_v17, %v5308_v27 }
 0xa66   :  { %3482 = vmatmul.mubr.f32.vlgmr.msra.gmra.mrb[32].mxu0 %v3259_v8 }
 0xb39   :  { %v3349_v4 = vpop.f32.mrb[32].mxu0 }
 0xb3a   :  { %v3350_v12 = vadd.f32 %v3429_v41, %v3349_v4  ;;  %v3483_v30 = vpop.f32.mrb[33].mxu0 }
 0xb3c   :  { %v3353_v28 = vmax.f32 %v3350_v12, 0.0 }
 0xb3e   :  { %v3361_v16 = vmul.f32 %v3430_v10, %v3353_v28 }
 0xb40   :  { %3362 = vadd.xlane.f32.xlu1 %v3361_v16 }
 0xbcd   :  { %v3363_v37 = vpop.xlane.xlu1 %3362 }
 0xbce   :  { %v3371_v52 = vadd.f32 %v3431_v58, %v3363_v37 }
 0xbd0   :  { %3373 = vst.msk [vmem:[%s6841_s10] sm:$0xff] %vm3372_vm1, %v3371_v52 }
 0xbd1   :  { %3378 = vsyncpa [#allocation5], 1 }
 0xbd2   :  { %3379 = vsyncpa [#allocation7], 1 }
 0xbd3   :  { %3380 = vsyncpa [#allocation10], 1 }

</bundles_post_ra>
